<compile_context>
chip_gen: v6e
topology: v6e:2x2x1
jax: 0.10.0
libtpu: 0.0.40
codegen_flags: <defaults>
</compile_context>

<pallas_src>
import functools

import numpy as np

import jax
import jax.numpy as jnp
from jax import lax
from jax.experimental import pallas as pl
from jax.experimental.pallas import tpu as pltpu

FEATS = (1, 4, 8)      # args.feats
FILTS = (3, 3)         # args.filts
POOLS = (2, 2)         # args.pools
LENC = 4               # args.lenc
LL = 11                # args.ll
X_DIM = 16             # image height (train_data.shape[1])
Y_DIM = 32             # image width  (train_data.shape[2])
N = 2                  # batch


# ---------------------------------------------------------------------------
# Host-side (one time) construction of selectors / banded conv matrices.
# ---------------------------------------------------------------------------
def _shift_selector(width, off):
    """(N*W, N*W) with M[nW+i, nW+j] = 1 iff i == j + off (per-sample block).
       A @ M gives the width-`off`-shifted activation (zero pad folded in)."""
    m = np.zeros((N * width, N * width), np.float32)
    for n in range(N):
        for j in range(width):
            i = j + off
            if 0 <= i < width:
                m[n * width + i, n * width + j] = 1.0
    return m


def _colpool_selector(width, parity):
    """(N*W, N*W/2) with M[nW + 2j+parity, nW/2 + j] = 1 (column downsample)."""
    m = np.zeros((N * width, N * (width // 2)), np.float32)
    for n in range(N):
        for j in range(width // 2):
            m[n * width + 2 * j + parity, n * (width // 2) + j] = 1.0
    return m


def _lout_selector(width, dj):
    """(N*W, N*LENC) with M[nW + 2k+dj, nLENC + k] = 1; the out-of-range
       column (2k+dj == W) is simply absent, which implements the width pad."""
    m = np.zeros((N * width, N * LENC), np.float32)
    for n in range(N):
        for k in range(LENC):
            i = 2 * k + dj
            if i < width:
                m[n * width + i, n * LENC + k] = 1.0
    return m


def _band_matrix(w, height):
    """G[co*H + h, dj*cin*H + ci*H + i] = w[co, ci, i-h+pad, dj] (valid taps;
       height zero-padding folded in by omission)."""
    cout, cin, kh, kw = w.shape
    pad = kh // 2
    g = np.zeros((cout * height, kw * cin * height), np.float32)
    for co in range(cout):
        for ci in range(cin):
            for di in range(kh):
                for dj in range(kw):
                    for h in range(height):
                        i = h + di - pad
                        if 0 <= i < height:
                            g[co * height + h,
                              dj * cin * height + ci * height + i] = w[co, ci, di, dj]
    return g


def _stacked_pool_band(w, height):
    """Fold the 2x2 max-pool ROW selection into the banded conv matrix:
       rows [even pooled rows ; odd pooled rows], each (cout*H/2, 3*cin*H)."""
    g = _band_matrix(w, height)
    cout = w.shape[0]
    rows = np.arange(cout * height).reshape(cout, height)
    even = g[rows[:, 0::2].reshape(-1)]
    odd = g[rows[:, 1::2].reshape(-1)]
    return np.concatenate([even, odd], axis=0)


def prepare_params(params):
    """Fold torch-layout conv weights + all selectors into MXU-friendly mats."""
    (w1, b1), (w2, b2), (wf, bf) = params
    w1, b1, w2, b2, wf, bf = (np.asarray(a, np.float32)
                              for a in (w1, b1, w2, b2, wf, bf))
    h1, w1d = X_DIM, Y_DIM
    h2, w2d = h1 // POOLS[0], w1d // POOLS[0]
    w3 = w2d // POOLS[1]

    g1 = _stacked_pool_band(w1, h1)                        # (64, 48)
    g2 = _stacked_pool_band(w2, h2)                        # (64, 96)
    b1h = np.repeat(b1, h1 // 2)[:, None]                  # (32, 1)
    b2h = np.repeat(b2, h2 // 2)[:, None]                  # (32, 1)

    s1m, s1p = _shift_selector(w1d, -1), _shift_selector(w1d, +1)   # (64, 64)
    s2m, s2p = _shift_selector(w2d, -1), _shift_selector(w2d, +1)   # (32, 32)
    p10, p11 = _colpool_selector(w1d, 0), _colpool_selector(w1d, 1)  # (64, 32)
    p20, p21 = _colpool_selector(w2d, 0), _colpool_selector(w2d, 1)  # (32, 16)
    sl0, sl1, sl2 = (_lout_selector(w3, dj) for dj in range(3))      # (16, 8)

    ll, c2, kh2, kw2 = wf.shape                            # (11, 8, 4, 3)
    wfm = np.transpose(wf, (0, 3, 1, 2)).reshape(ll, kw2 * c2 * kh2)  # (11, 96)
    bfc = bf[:, None]                                      # (11, 1)

    arrays = (s1m, s1p, g1, b1h, p10, p11,
              s2m, s2p, g2, b2h, p20, p21,
              sl0, sl1, sl2, wfm, bfc)
    return tuple(jnp.asarray(a) for a in arrays)


# ---------------------------------------------------------------------------
# Fused kernel: full CLEAN.forward for the whole batch.
#   activations live as (channels*height, N*width) matrices, samples folded
#   along lanes; conv/pool/l_out are MXU matmuls against precomputed mats.
# ---------------------------------------------------------------------------
def _clean_kernel(x_ref,
                  s1m_ref, s1p_ref, g1_ref, b1_ref, p10_ref, p11_ref,
                  s2m_ref, s2p_ref, g2_ref, b2_ref, p20_ref, p21_ref,
                  sl0_ref, sl1_ref, sl2_ref, wf_ref, bf_ref,
                  o_ref, a0_ref):
    dot = functools.partial(jnp.dot, preferred_element_type=jnp.float32,
                            precision=lax.Precision.HIGHEST)

    def conv_pool_relu(a, sm_ref, sp_ref, g_ref, b_ref, p0_ref, p1_ref, half):
        # Conv2d(3x3, pad 1): column-shift selectors (dj=1 is the identity and
        # is skipped) + ONE stacked banded-weight matmul whose rows already
        # are the even/odd pool rows.
        z = jnp.concatenate([dot(a, sm_ref[...]), a, dot(a, sp_ref[...])],
                            axis=0)
        c = dot(g_ref[...], z)                     # (cout*H, N*W), [even; odd]
        rmax = jnp.maximum(c[:half], c[half:]) + b_ref[...]
        # MaxPool column step: max over the two column-downsample selectors.
        pooled = jnp.maximum(dot(rmax, p0_ref[...]), dot(rmax, p1_ref[...]))
        return jnp.maximum(pooled, 0.0)            # ReLU (after pool, as ref)

    # Assemble the batch-folded input plane (H, N*W): samples along lanes.
    for n in range(N):
        a0_ref[:, n * Y_DIM:(n + 1) * Y_DIM] = x_ref[n, 0]

    y1 = conv_pool_relu(a0_ref[...], s1m_ref, s1p_ref, g1_ref, b1_ref,
                        p10_ref, p11_ref, FEATS[1] * X_DIM // 2)     # (32, 32)
    y2 = conv_pool_relu(y1, s2m_ref, s2p_ref, g2_ref, b2_ref,
                        p20_ref, p21_ref, FEATS[2] * (X_DIM // 2) // 2)  # (32,16)

    # l_out: width zero-pad (folded into the selectors) +
    # Conv2d(feats[2], ll, [4, 3], stride [1, 2]) as one (11, 96) matmul.
    z = jnp.concatenate([dot(y2, sl0_ref[...]), dot(y2, sl1_ref[...]),
                         dot(y2, sl2_ref[...])], axis=0)             # (96, 8)
    out = dot(wf_ref[...], z) + bf_ref[...]                          # (11, 8)
    for n in range(N):
        o_ref[n] = out[:, n * LENC:(n + 1) * LENC]


# ---------------------------------------------------------------------------
# Full CLEAN.forward: a single fused pallas_call.
# ---------------------------------------------------------------------------
@jax.jit
def clean_forward(x, prepped):
    assert x.shape == (N, FEATS[0], X_DIM, Y_DIM), x.shape
    out = pl.pallas_call(
        _clean_kernel,
        out_shape=jax.ShapeDtypeStruct((N, LL, LENC), jnp.float32),
        scratch_shapes=[pltpu.VMEM((X_DIM, N * Y_DIM), jnp.float32)],
    )(x, *prepped)
    return out[:, :, None, :]      # torch Conv2d output shape (N, ll, 1, lenc)


# ---------------------------------------------------------------------------
# Pure-JAX reference (fp32, HIGHEST precision).
# ---------------------------------------------------------------------------
def ref_forward(x, params):
    (w1, b1), (w2, b2), (wf, bf) = params

    def conv(x, w, b, padding, strides=(1, 1)):
        y = lax.conv_general_dilated(
            x, w, strides, padding,
            dimension_numbers=("NCHW", "OIHW", "NCHW"),
            precision=lax.Precision.HIGHEST)
        return y + b[None, :, None, None]

    def maxpool(x, p):
        init = jnp.array(-jnp.inf, dtype=x.dtype)
        return lax.reduce_window(x, init, lax.max,
                                 (1, 1, p, p), (1, 1, p, p), "VALID")

    y = jnp.maximum(maxpool(conv(x, w1, b1, [(1, 1), (1, 1)]), POOLS[0]), 0.0)
    y = jnp.maximum(maxpool(conv(y, w2, b2, [(1, 1), (1, 1)]), POOLS[1]), 0.0)
    _, _, _, wd2 = y.shape
    sh2a = wd2 // LENC
    pad = sh2a * LENC + 1 - wd2
    y = jnp.pad(y, ((0, 0), (0, 0), (0, 0), (0, pad)))
    return conv(y, wf, bf, "VALID", strides=(1, sh2a))


def init_params(key):
    ks = jax.random.split(key, 6)
    w1 = jax.random.normal(ks[0], (FEATS[1], FEATS[0], FILTS[0], FILTS[0]),
                           jnp.float32) * 0.2
    b1 = jax.random.normal(ks[1], (FEATS[1],), jnp.float32) * 0.1
    w2 = jax.random.normal(ks[2], (FEATS[2], FEATS[1], FILTS[1], FILTS[1]),
                           jnp.float32) * 0.1
    b2 = jax.random.normal(ks[3], (FEATS[2],), jnp.float32) * 0.1
    # l_out shapes implied by the "first forward" bookkeeping:
    h2 = X_DIM // (POOLS[0] * POOLS[1])           # sh[2] = 4
    wd2 = Y_DIM // (POOLS[0] * POOLS[1])          # sh[3] = 8
    sh2a = wd2 // LENC                            # 2
    wf = jax.random.normal(ks[4], (LL, FEATS[2], h2, sh2a + 1), jnp.float32) * 0.1
    bf = jax.random.normal(ks[5], (LL,), jnp.float32) * 0.1
    return (w1, b1), (w2, b2), (wf, bf)


if __name__ == "__main__":
    key = jax.random.PRNGKey(0)
    pkey, xkey = jax.random.split(key)
    params = init_params(pkey)
    # like image / 255.0 in run_epoch
    x = jax.random.uniform(xkey, (N, FEATS[0], X_DIM, Y_DIM), jnp.float32)

    prepped = prepare_params(params)               # once, host side
    out = clean_forward(x, prepped)
    out = jax.block_until_ready(out)
    assert out.shape == (N, LL, 1, LENC), out.shape

    ref = ref_forward(x, params)
    # With precision=HIGHEST the kernel matches to ~1e-6; keep a loose bound
    # purely as a safety net.
    if not bool(jnp.allclose(out, ref, atol=2e-2, rtol=2e-2)):
        raise SystemExit(
            f"mismatch: max abs err {float(jnp.max(jnp.abs(out - ref)))}")
    print("KERNEL_OK")
</pallas_src>

<mosaic_0001>
module attributes {stable_mosaic.version = 11 : i64} {
  func.func @_clean_kernel(%arg0: memref<2x1x16x32xf32, #tpu.memory_space<vmem>>, %arg1: memref<64x64xf32, #tpu.memory_space<vmem>>, %arg2: memref<64x64xf32, #tpu.memory_space<vmem>>, %arg3: memref<64x48xf32, #tpu.memory_space<vmem>>, %arg4: memref<32x1xf32, #tpu.memory_space<vmem>>, %arg5: memref<64x32xf32, #tpu.memory_space<vmem>>, %arg6: memref<64x32xf32, #tpu.memory_space<vmem>>, %arg7: memref<32x32xf32, #tpu.memory_space<vmem>>, %arg8: memref<32x32xf32, #tpu.memory_space<vmem>>, %arg9: memref<64x96xf32, #tpu.memory_space<vmem>>, %arg10: memref<32x1xf32, #tpu.memory_space<vmem>>, %arg11: memref<32x16xf32, #tpu.memory_space<vmem>>, %arg12: memref<32x16xf32, #tpu.memory_space<vmem>>, %arg13: memref<16x8xf32, #tpu.memory_space<vmem>>, %arg14: memref<16x8xf32, #tpu.memory_space<vmem>>, %arg15: memref<16x8xf32, #tpu.memory_space<vmem>>, %arg16: memref<11x96xf32, #tpu.memory_space<vmem>>, %arg17: memref<11x1xf32, #tpu.memory_space<vmem>>, %arg18: memref<2x11x4xf32, #tpu.memory_space<vmem>>, %arg19: memref<16x64xf32, #tpu.memory_space<vmem>>) attributes {dimension_semantics = [], scalar_prefetch = 0 : i64, scratch_operands = 1 : i64, tpu.core_type = #tpu.core_type<tc>} {
    %c0 = arith.constant 0 : index
    %c0_0 = arith.constant 0 : index
    %c0_1 = arith.constant 0 : index
    %c0_2 = arith.constant 0 : index
    %0 = vector.load %arg0[%c0, %c0_0, %c0_1, %c0_2] : memref<2x1x16x32xf32, #tpu.memory_space<vmem>>, vector<1x1x16x32xf32>
    %1 = vector.shape_cast %0 : vector<1x1x16x32xf32> to vector<16x32xf32>
    %c0_3 = arith.constant 0 : index
    %c0_4 = arith.constant 0 : index
    %2 = vector.load %arg19[%c0_3, %c0_4] : memref<16x64xf32, #tpu.memory_space<vmem>>, vector<16x32xf32>
    tpu.vector_store %arg19[%c0_3, %c0_4], %1 {strides = array<i32>} : memref<16x64xf32, #tpu.memory_space<vmem>>, vector<16x32xf32>,
    %c1 = arith.constant 1 : index
    %c0_5 = arith.constant 0 : index
    %c0_6 = arith.constant 0 : index
    %c0_7 = arith.constant 0 : index
    %3 = vector.load %arg0[%c1, %c0_5, %c0_6, %c0_7] : memref<2x1x16x32xf32, #tpu.memory_space<vmem>>, vector<1x1x16x32xf32>
    %4 = vector.shape_cast %3 : vector<1x1x16x32xf32> to vector<16x32xf32>
    %c0_8 = arith.constant 0 : index
    %c32 = arith.constant 32 : index
    %5 = vector.load %arg19[%c0_8, %c32] : memref<16x64xf32, #tpu.memory_space<vmem>>, vector<16x32xf32>
    tpu.vector_store %arg19[%c0_8, %c32], %4 {strides = array<i32>} : memref<16x64xf32, #tpu.memory_space<vmem>>, vector<16x32xf32>,
    %c0_9 = arith.constant 0 : index
    %c0_10 = arith.constant 0 : index
    %6 = vector.load %arg19[%c0_9, %c0_10] : memref<16x64xf32, #tpu.memory_space<vmem>>, vector<16x64xf32>
    %c0_11 = arith.constant 0 : index
    %c0_12 = arith.constant 0 : index
    %7 = vector.load %arg1[%c0_11, %c0_12] : memref<64x64xf32, #tpu.memory_space<vmem>>, vector<64x64xf32>
    %cst = arith.constant dense<0.000000e+00> : vector<16x64xf32>
    %8 = tpu.matmul %6, %7, %cst {dimension_numbers = #tpu.dot_dimension_numbers<[1], [0], [0], [1], [0, 0, 1, 1], [], []>, precision = #tpu.contract_precision<fp32>} : vector<16x64xf32>, vector<64x64xf32>, vector<16x64xf32> -> vector<16x64xf32>
    %c0_13 = arith.constant 0 : index
    %c0_14 = arith.constant 0 : index
    %9 = vector.load %arg2[%c0_13, %c0_14] : memref<64x64xf32, #tpu.memory_space<vmem>>, vector<64x64xf32>
    %cst_15 = arith.constant dense<0.000000e+00> : vector<16x64xf32>
    %10 = tpu.matmul %6, %9, %cst_15 {dimension_numbers = #tpu.dot_dimension_numbers<[1], [0], [0], [1], [0, 0, 1, 1], [], []>, precision = #tpu.contract_precision<fp32>} : vector<16x64xf32>, vector<64x64xf32>, vector<16x64xf32> -> vector<16x64xf32>
    %11 = tpu.concatenate %8, %6, %10 in 0 : vector<16x64xf32>, vector<16x64xf32>, vector<16x64xf32> -> vector<48x64xf32>
    %c0_16 = arith.constant 0 : index
    %c0_17 = arith.constant 0 : index
    %12 = vector.load %arg3[%c0_16, %c0_17] : memref<64x48xf32, #tpu.memory_space<vmem>>, vector<64x48xf32>
    %cst_18 = arith.constant dense<0.000000e+00> : vector<64x64xf32>
    %13 = tpu.matmul %12, %11, %cst_18 {dimension_numbers = #tpu.dot_dimension_numbers<[1], [0], [0], [1], [0, 0, 1, 1], [], []>, precision = #tpu.contract_precision<fp32>} : vector<64x48xf32>, vector<48x64xf32>, vector<64x64xf32> -> vector<64x64xf32>
    %14 = vector.extract_strided_slice %13 {offsets = [0, 0], sizes = [32, 64], strides = [1, 1]} : vector<64x64xf32> to vector<32x64xf32>
    %15 = vector.extract_strided_slice %13 {offsets = [32, 0], sizes = [32, 64], strides = [1, 1]} : vector<64x64xf32> to vector<32x64xf32>
    %16 = arith.maximumf %14, %15 : vector<32x64xf32>
    %c0_19 = arith.constant 0 : index
    %c0_20 = arith.constant 0 : index
    %17 = vector.load %arg4[%c0_19, %c0_20] : memref<32x1xf32, #tpu.memory_space<vmem>>, vector<32x1xf32>
    %18 = vector.broadcast %17 : vector<32x1xf32> to vector<32x64xf32>
    %19 = arith.addf %16, %18 : vector<32x64xf32>
    %c0_21 = arith.constant 0 : index
    %c0_22 = arith.constant 0 : index
    %20 = vector.load %arg5[%c0_21, %c0_22] : memref<64x32xf32, #tpu.memory_space<vmem>>, vector<64x32xf32>
    %cst_23 = arith.constant dense<0.000000e+00> : vector<32x32xf32>
    %21 = tpu.matmul %19, %20, %cst_23 {dimension_numbers = #tpu.dot_dimension_numbers<[1], [0], [0], [1], [0, 0, 1, 1], [], []>, precision = #tpu.contract_precision<fp32>} : vector<32x64xf32>, vector<64x32xf32>, vector<32x32xf32> -> vector<32x32xf32>
    %c0_24 = arith.constant 0 : index
    %c0_25 = arith.constant 0 : index
    %22 = vector.load %arg6[%c0_24, %c0_25] : memref<64x32xf32, #tpu.memory_space<vmem>>, vector<64x32xf32>
    %cst_26 = arith.constant dense<0.000000e+00> : vector<32x32xf32>
    %23 = tpu.matmul %19, %22, %cst_26 {dimension_numbers = #tpu.dot_dimension_numbers<[1], [0], [0], [1], [0, 0, 1, 1], [], []>, precision = #tpu.contract_precision<fp32>} : vector<32x64xf32>, vector<64x32xf32>, vector<32x32xf32> -> vector<32x32xf32>
    %24 = arith.maximumf %21, %23 : vector<32x32xf32>
    %cst_27 = arith.constant 0.000000e+00 : f32
    %25 = vector.broadcast %cst_27 : f32 to vector<32x32xf32>
    %26 = arith.maximumf %24, %25 : vector<32x32xf32>
    %c0_28 = arith.constant 0 : index
    %c0_29 = arith.constant 0 : index
    %27 = vector.load %arg7[%c0_28, %c0_29] : memref<32x32xf32, #tpu.memory_space<vmem>>, vector<32x32xf32>
    %cst_30 = arith.constant dense<0.000000e+00> : vector<32x32xf32>
    %28 = tpu.matmul %26, %27, %cst_30 {dimension_numbers = #tpu.dot_dimension_numbers<[1], [0], [0], [1], [0, 0, 1, 1], [], []>, precision = #tpu.contract_precision<fp32>} : vector<32x32xf32>, vector<32x32xf32>, vector<32x32xf32> -> vector<32x32xf32>
    %c0_31 = arith.constant 0 : index
    %c0_32 = arith.constant 0 : index
    %29 = vector.load %arg8[%c0_31, %c0_32] : memref<32x32xf32, #tpu.memory_space<vmem>>, vector<32x32xf32>
    %cst_33 = arith.constant dense<0.000000e+00> : vector<32x32xf32>
    %30 = tpu.matmul %26, %29, %cst_33 {dimension_numbers = #tpu.dot_dimension_numbers<[1], [0], [0], [1], [0, 0, 1, 1], [], []>, precision = #tpu.contract_precision<fp32>} : vector<32x32xf32>, vector<32x32xf32>, vector<32x32xf32> -> vector<32x32xf32>
    %31 = tpu.concatenate %28, %26, %30 in 0 : vector<32x32xf32>, vector<32x32xf32>, vector<32x32xf32> -> vector<96x32xf32>
    %c0_34 = arith.constant 0 : index
    %c0_35 = arith.constant 0 : index
    %32 = vector.load %arg9[%c0_34, %c0_35] : memref<64x96xf32, #tpu.memory_space<vmem>>, vector<64x96xf32>
    %cst_36 = arith.constant dense<0.000000e+00> : vector<64x32xf32>
    %33 = tpu.matmul %32, %31, %cst_36 {dimension_numbers = #tpu.dot_dimension_numbers<[1], [0], [0], [1], [0, 0, 1, 1], [], []>, precision = #tpu.contract_precision<fp32>} : vector<64x96xf32>, vector<96x32xf32>, vector<64x32xf32> -> vector<64x32xf32>
    %34 = vector.extract_strided_slice %33 {offsets = [0, 0], sizes = [32, 32], strides = [1, 1]} : vector<64x32xf32> to vector<32x32xf32>
    %35 = vector.extract_strided_slice %33 {offsets = [32, 0], sizes = [32, 32], strides = [1, 1]} : vector<64x32xf32> to vector<32x32xf32>
    %36 = arith.maximumf %34, %35 : vector<32x32xf32>
    %c0_37 = arith.constant 0 : index
    %c0_38 = arith.constant 0 : index
    %37 = vector.load %arg10[%c0_37, %c0_38] : memref<32x1xf32, #tpu.memory_space<vmem>>, vector<32x1xf32>
    %38 = vector.broadcast %37 : vector<32x1xf32> to vector<32x32xf32>
    %39 = arith.addf %36, %38 : vector<32x32xf32>
    %c0_39 = arith.constant 0 : index
    %c0_40 = arith.constant 0 : index
    %40 = vector.load %arg11[%c0_39, %c0_40] : memref<32x16xf32, #tpu.memory_space<vmem>>, vector<32x16xf32>
    %cst_41 = arith.constant dense<0.000000e+00> : vector<32x16xf32>
    %41 = tpu.matmul %39, %40, %cst_41 {dimension_numbers = #tpu.dot_dimension_numbers<[1], [0], [0], [1], [0, 0, 1, 1], [], []>, precision = #tpu.contract_precision<fp32>} : vector<32x32xf32>, vector<32x16xf32>, vector<32x16xf32> -> vector<32x16xf32>
    %c0_42 = arith.constant 0 : index
    %c0_43 = arith.constant 0 : index
    %42 = vector.load %arg12[%c0_42, %c0_43] : memref<32x16xf32, #tpu.memory_space<vmem>>, vector<32x16xf32>
    %cst_44 = arith.constant dense<0.000000e+00> : vector<32x16xf32>
    %43 = tpu.matmul %39, %42, %cst_44 {dimension_numbers = #tpu.dot_dimension_numbers<[1], [0], [0], [1], [0, 0, 1, 1], [], []>, precision = #tpu.contract_precision<fp32>} : vector<32x32xf32>, vector<32x16xf32>, vector<32x16xf32> -> vector<32x16xf32>
    %44 = arith.maximumf %41, %43 : vector<32x16xf32>
    %cst_45 = arith.constant 0.000000e+00 : f32
    %45 = vector.broadcast %cst_45 : f32 to vector<32x16xf32>
    %46 = arith.maximumf %44, %45 : vector<32x16xf32>
    %c0_46 = arith.constant 0 : index
    %c0_47 = arith.constant 0 : index
    %47 = vector.load %arg13[%c0_46, %c0_47] : memref<16x8xf32, #tpu.memory_space<vmem>>, vector<16x8xf32>
    %cst_48 = arith.constant dense<0.000000e+00> : vector<32x8xf32>
    %48 = tpu.matmul %46, %47, %cst_48 {dimension_numbers = #tpu.dot_dimension_numbers<[1], [0], [0], [1], [0, 0, 1, 1], [], []>, precision = #tpu.contract_precision<fp32>} : vector<32x16xf32>, vector<16x8xf32>, vector<32x8xf32> -> vector<32x8xf32>
    %c0_49 = arith.constant 0 : index
    %c0_50 = arith.constant 0 : index
    %49 = vector.load %arg14[%c0_49, %c0_50] : memref<16x8xf32, #tpu.memory_space<vmem>>, vector<16x8xf32>
    %cst_51 = arith.constant dense<0.000000e+00> : vector<32x8xf32>
    %50 = tpu.matmul %46, %49, %cst_51 {dimension_numbers = #tpu.dot_dimension_numbers<[1], [0], [0], [1], [0, 0, 1, 1], [], []>, precision = #tpu.contract_precision<fp32>} : vector<32x16xf32>, vector<16x8xf32>, vector<32x8xf32> -> vector<32x8xf32>
    %c0_52 = arith.constant 0 : index
    %c0_53 = arith.constant 0 : index
    %51 = vector.load %arg15[%c0_52, %c0_53] : memref<16x8xf32, #tpu.memory_space<vmem>>, vector<16x8xf32>
    %cst_54 = arith.constant dense<0.000000e+00> : vector<32x8xf32>
    %52 = tpu.matmul %46, %51, %cst_54 {dimension_numbers = #tpu.dot_dimension_numbers<[1], [0], [0], [1], [0, 0, 1, 1], [], []>, precision = #tpu.contract_precision<fp32>} : vector<32x16xf32>, vector<16x8xf32>, vector<32x8xf32> -> vector<32x8xf32>
    %53 = tpu.concatenate %48, %50, %52 in 0 : vector<32x8xf32>, vector<32x8xf32>, vector<32x8xf32> -> vector<96x8xf32>
    %c0_55 = arith.constant 0 : index
    %c0_56 = arith.constant 0 : index
    %54 = vector.load %arg16[%c0_55, %c0_56] : memref<11x96xf32, #tpu.memory_space<vmem>>, vector<11x96xf32>
    %cst_57 = arith.constant dense<0.000000e+00> : vector<11x8xf32>
    %55 = tpu.matmul %54, %53, %cst_57 {dimension_numbers = #tpu.dot_dimension_numbers<[1], [0], [0], [1], [0, 0, 1, 1], [], []>, precision = #tpu.contract_precision<fp32>} : vector<11x96xf32>, vector<96x8xf32>, vector<11x8xf32> -> vector<11x8xf32>
    %c0_58 = arith.constant 0 : index
    %c0_59 = arith.constant 0 : index
    %56 = vector.load %arg17[%c0_58, %c0_59] : memref<11x1xf32, #tpu.memory_space<vmem>>, vector<11x1xf32>
    %57 = vector.broadcast %56 : vector<11x1xf32> to vector<11x8xf32>
    %58 = arith.addf %55, %57 : vector<11x8xf32>
    %59 = vector.extract_strided_slice %58 {offsets = [0, 0], sizes = [11, 4], strides = [1, 1]} : vector<11x8xf32> to vector<11x4xf32>
    %c0_60 = arith.constant 0 : index
    %c0_61 = arith.constant 0 : index
    %c0_62 = arith.constant 0 : index
    %60 = vector.load %arg18[%c0_60, %c0_61, %c0_62] : memref<2x11x4xf32, #tpu.memory_space<vmem>>, vector<1x11x4xf32>
    %61 = vector.shape_cast %60 : vector<1x11x4xf32> to vector<11x4xf32>
    %62 = vector.shape_cast %59 : vector<11x4xf32> to vector<1x11x4xf32>
    tpu.vector_store %arg18[%c0_60, %c0_61, %c0_62], %62 {strides = array<i32>} : memref<2x11x4xf32, #tpu.memory_space<vmem>>, vector<1x11x4xf32>,
    %63 = vector.extract_strided_slice %58 {offsets = [0, 4], sizes = [11, 4], strides = [1, 1]} : vector<11x8xf32> to vector<11x4xf32>
    %c1_63 = arith.constant 1 : index
    %c0_64 = arith.constant 0 : index
    %c0_65 = arith.constant 0 : index
    %64 = vector.load %arg18[%c1_63, %c0_64, %c0_65] : memref<2x11x4xf32, #tpu.memory_space<vmem>>, vector<1x11x4xf32>
    %65 = vector.shape_cast %64 : vector<1x11x4xf32> to vector<11x4xf32>
    %66 = vector.shape_cast %63 : vector<11x4xf32> to vector<1x11x4xf32>
    tpu.vector_store %arg18[%c1_63, %c0_64, %c0_65], %66 {strides = array<i32>} : memref<2x11x4xf32, #tpu.memory_space<vmem>>, vector<1x11x4xf32>,
    return
  }
}

</mosaic_0001>

<bundles_post_ra>
// kernel: clean_forward.1
= control target key start
LH: loop header
LB: loop body
LE: loop exit
PB: predicated region body
PF: predicated region fallthrough
CT: control target
= control target key end

     0   :  { %vm61_vm0 = vcmask 261120   ;;  %s11812_s21 = smov 32   ;;  %vm75_vm1 = vcmask 523520   ;;  %vm88_vm2 = vcmask 523264   ;;  %vm1271_vm3 = vcmask 392192   ;;  %s14752_s0 = inlined_call_operand.vmem [shape: f32[2,1,16,32], index: 0, kind: input, shape index: {}]   ;;  %s14753_s1 = inlined_call_operand.vmem [shape: f32[64,64], index: 1, kind: input, shape index: {}]   ;;  %s14754_s2 = inlined_call_operand.vmem [shape: f32[64,64], index: 2, kind: input, shape index: {}]   ;;  %s14755_s3 = inlined_call_operand.vmem [shape: f32[64,48], index: 3, kind: input, shape index: {}]   ;;  %s14756_s4 = inlined_call_operand.vmem [shape: f32[32,1], index: 4, kind: input, shape index: {}]   ;;  %s14757_s10 = inlined_call_operand.vmem [shape: f32[32,1], index: 10, kind: input, shape index: {}]   ;;  %s14758_s17 = inlined_call_operand.vmem [shape: f32[11,1], index: 17, kind: input, shape index: {}]   ;;  %s14759_s5 = inlined_call_operand.vmem [shape: f32[64,32], index: 5, kind: input, shape index: {}]   ;;  %s14760_s6 = inlined_call_operand.vmem [shape: f32[64,32], index: 6, kind: input, shape index: {}]   ;;  %s14761_s7 = inlined_call_operand.vmem [shape: f32[32,32], index: 7, kind: input, shape index: {}]   ;;  %s14762_s8 = inlined_call_operand.vmem [shape: f32[32,32], index: 8, kind: input, shape index: {}]   ;;  %s14763_s9 = inlined_call_operand.vmem [shape: f32[64,96], index: 9, kind: input, shape index: {}]   ;;  %s14764_s11 = inlined_call_operand.vmem [shape: f32[32,16], index: 11, kind: input, shape index: {}]   ;;  %s14765_s12 = inlined_call_operand.vmem [shape: f32[32,16], index: 12, kind: input, shape index: {}]   ;;  %s14766_s13 = inlined_call_operand.vmem [shape: f32[16,8], index: 13, kind: input, shape index: {}]   ;;  %s14767_s14 = inlined_call_operand.vmem [shape: f32[16,8], index: 14, kind: input, shape index: {}]   ;;  %s14768_s15 = inlined_call_operand.vmem [shape: f32[16,8], index: 15, kind: input, shape index: {}]   ;;  %s14769_s16 = inlined_call_operand.vmem [shape: f32[11,96], index: 16, kind: input, shape index: {}]   ;;  %s14770_s18 = inlined_call_operand.vmem [shape: f32[2,11,4], index: 18, kind: output, shape index: {}]  }
   0x1   :  { %14830 = sst [smem:[#allocation21_spill]] %s14752_s0  ;;  %vm4764_vm4 = vcmask 785408   ;;  %vm6969_vm5 = vcmask 130048   ;;  %vm9404_vm6 = vcmask 26624   ;;  %vm9402_vm7 = vcmask 31744  }
   0x2   :  { %14831 = sst [smem:[#allocation22_spill]] %s14753_s1 }
   0x3   :  { %14832 = sst [smem:[#allocation23_spill]] %s14754_s2 }
   0x4   :  { %s14833_s29 = sld [smem:[#allocation21_spill]] }
   0x5   :  { %s14834_s20 = sld [smem:[#allocation22_spill]] }
   0x6   :  { %s14835_s26 = sld [smem:[#allocation23_spill]] }
   0xa   :  { %v9421_v0 = vld [vmem:[%s14833_s29 + $0x10] sm:$0xff]  ;;  %v9422_v1 = vld [vmem:[%s14833_s29 + $0x18] sm:$0xff]  ;;  %v59_v4 = vld [vmem:[%s14833_s29] sm:$0xff] }
   0xb   :  { %v87_v2 = vld [vmem:[%s14834_s20 + $0x38] sm:$0xff]  ;;  %69 = vrot.lane.b32.xlu0 %v9421_v0, %s11812_s21  ;;  %v86_v5 = vld [vmem:[%s14834_s20 + $0x30] sm:$0xff]  ;;  %v85_v6 = vld [vmem:[%s14834_s20 + $0x28] sm:$0xff]  ;;  %62 = vst.msk [vmem:[#allocation2] sm:$0xff] %vm61_vm0, %v59_v4 }
   0xc   :  { %v11919_v3 = vand.u32 4294901760, %v87_v2  ;;  %v11931_v7 = vand.u32 4294901760, %v86_v5  ;;  %v11933_v8 = vand.u32 4294901760, %v85_v6  ;;  %v60_v9 = vld [vmem:[%s14833_s29 + $0x8] sm:$0xff]  ;;  %v84_v10 = vld [vmem:[%s14834_s20 + $0x20] sm:$0xff]  ;;  %v83_v11 = vld [vmem:[%s14834_s20 + $0x18] sm:$0xff] }
   0xd   :  { %63 = vst.msk [vmem:[#allocation2 + $0x8] sm:$0xff] %vm61_vm0, %v60_v9  ;;  %v11948_v13 = vand.u32 4294901760, %v84_v10  ;;  %v11951_v14 = vand.u32 4294901760, %v83_v11  ;;  %v82_v15 = vld [vmem:[%s14834_s20 + $0x10] sm:$0xff]  ;;  %v81_v16 = vld [vmem:[%s14834_s20 + $0x8] sm:$0xff]  ;;  %v80_v17 = vld [vmem:[%s14834_s20] sm:$0xff] }
   0xe   :  { %v11945_v12 = vsub.f32 %v87_v2, %v11919_v3  ;;  %10277 = vmatprep.subr.mxu0 %v11919_v3  ;;  %v11963_v18 = vsub.f32 %v86_v5, %v11931_v7  ;;  %v11966_v19 = vsub.f32 %v85_v6, %v11933_v8  ;;  %v11969_v20 = vand.u32 4294901760, %v82_v15  ;;  %v682_v5 = vld [vmem:[%s14835_s26 + $0x38] sm:$0xff]  ;;  %v681_v9 = vld [vmem:[%s14835_s26 + $0x30] sm:$0xff] }
   0xf   :  { %10278 = vmatpush3.msra.mxu0 %v11919_v3  ;;  %v11971_v21 = vand.u32 4294901760, %v81_v16  ;;  %71 = vrot.lane.b32.xlu0 %v9422_v1, %s11812_s21  ;;  %v11977_v23 = vsub.f32 %v84_v10, %v11948_v13  ;;  %v11980_v24 = vsub.f32 %v83_v11, %v11951_v14  ;;  %v11983_v25 = vand.u32 4294901760, %v80_v17  ;;  %v680_v10 = vld [vmem:[%s14835_s26 + $0x28] sm:$0xff] }
  0x10   :  { %v11974_v22 = vand.u32 4294901760, %v11945_v12  ;;  %10279 = vmatprep.subr.mxu0 %v11931_v7  ;;  %v11986_v26 = vand.u32 4294901760, %v11963_v18  ;;  %v11989_v27 = vand.u32 4294901760, %v11966_v19  ;;  %v11992_v28 = vsub.f32 %v82_v15, %v11969_v20  ;;  %v679_v15 = vld [vmem:[%s14835_s26 + $0x20] sm:$0xff] }
  0x11   :  { %10280 = vmatpush3.msra.mxu0 %v11931_v7  ;;  %v11998_v30 = vand.u32 4294901760, %v11977_v23  ;;  %v12001_v31 = vand.u32 4294901760, %v11980_v24  ;;  %v12005_v32 = vsub.f32 %v81_v16, %v11971_v21  ;;  %v12019_v38 = vsub.f32 %v80_v17, %v11983_v25 }
  0x12   :  { %v208_v29 = vsub.f32 %v11945_v12, %v11974_v22  ;;  %10281 = vmatprep.subr.mxu0 %v11933_v8  ;;  %v215_v33 = vsub.f32 %v11963_v18, %v11986_v26  ;;  %v222_v34 = vsub.f32 %v11966_v19, %v11989_v27  ;;  %v12015_v37 = vand.u32 4294901760, %v11992_v28 }
  0x13   :  { %10282 = vmatpush3.msra.mxu0 %v11933_v8  ;;  %v229_v36 = vsub.f32 %v11977_v23, %v11998_v30  ;;  %v236_v41 = vsub.f32 %v11980_v24, %v12001_v31  ;;  %v12025_v42 = vand.u32 4294901760, %v12005_v32  ;;  %v12032_v45 = vand.u32 4294901760, %v12019_v38 }
  0x14   :  { %v209_v35 = vand.u32 4294901760, %v208_v29  ;;  %10283 = vmatprep.subr.mxu0 %v11948_v13  ;;  %v216_v39 = vand.u32 4294901760, %v215_v33  ;;  %v223_v40 = vand.u32 4294901760, %v222_v34  ;;  %v243_v44 = vsub.f32 %v11992_v28, %v12015_v37  ;;  %v676_v29 = vld [vmem:[%s14835_s26 + $0x8] sm:$0xff] }
  0x15   :  { %10284 = vmatpush3.msra.mxu0 %v11948_v13  ;;  %v230_v43 = vand.u32 4294901760, %v229_v36  ;;  %v237_v46 = vand.u32 4294901760, %v236_v41  ;;  %v250_v47 = vsub.f32 %v12005_v32, %v12025_v42  ;;  %v257_v49 = vsub.f32 %v12019_v38, %v12032_v45 }
  0x16   :  { %10296 = vmatprep.subr.mxu1 %v209_v35  ;;  %10285 = vmatprep.subr.mxu0 %v11951_v14  ;;  %v244_v48 = vand.u32 4294901760, %v243_v44  ;;  %v12108_v6 = vand.u32 4294901760, %v682_v5  ;;  %v12122_v11 = vand.u32 4294901760, %v681_v9  ;;  %v12134_v16 = vand.u32 4294901760, %v680_v10 }
  0x17   :  { %10297 = vmatpush3.msra.mxu1 %v209_v35  ;;  %10286 = vmatpush3.msra.mxu0 %v11951_v14  ;;  %v251_v50 = vand.u32 4294901760, %v250_v47  ;;  %v258_v51 = vand.u32 4294901760, %v257_v49  ;;  %v12195_v35 = vand.u32 4294901760, %v676_v29 }
  0x18   :  { %10298 = vmatprep.subr.mxu1 %v216_v39  ;;  %10287 = vmatprep.subr.mxu0 %v11969_v20  ;;  %v12144_v17 = vsub.f32 %v681_v9, %v12122_v11 }
  0x19   :  { %10299 = vmatpush3.msra.mxu1 %v216_v39  ;;  %10288 = vmatpush3.msra.mxu0 %v11969_v20 }
  0x1a   :  { %10300 = vmatprep.subr.mxu1 %v223_v40  ;;  %10289 = vmatprep.subr.mxu0 %v11971_v21 }
  0x1b   :  { %10301 = vmatpush3.msra.mxu1 %v223_v40  ;;  %10290 = vmatpush3.msra.mxu0 %v11971_v21 }
  0x1c   :  { %10302 = vmatprep.subr.mxu1 %v230_v43  ;;  %10291 = vmatprep.subr.mxu0 %v11983_v25 }
  0x1d   :  { %10303 = vmatpush3.msra.mxu1 %v230_v43  ;;  %10292 = vmatpush3.msra.mxu0 %v11983_v25 }
  0x1e   :  { %10304 = vmatprep.subr.mxu1 %v237_v46  ;;  %10315 = vmatprep.subr.mxu0 %v11945_v12 }
  0x1f   :  { %10305 = vmatpush3.msra.mxu1 %v237_v46 }
  0x20   :  { %10306 = vmatprep.subr.mxu1 %v244_v48 }
  0x21   :  { %10307 = vmatpush3.msra.mxu1 %v244_v48 }
  0x22   :  { %10308 = vmatprep.subr.mxu1 %v251_v50 }
  0x23   :  { %10309 = vmatpush3.msra.mxu1 %v251_v50 }
  0x24   :  { %10310 = vmatprep.subr.mxu1 %v258_v51 }
  0x25   :  { %10311 = vmatpush3.msra.mxu1 %v258_v51 }
  0x26   :  { %10334 = vmatprep.subr.mxu1 %v11919_v3 }
  0x7d   :  { %v70_v52 = vpop.permute.xlu0 %69 }
  0x7e   :  { %76 = vst.msk [vmem:[#allocation2] sm:$0xff] %vm75_vm1, %v70_v52  ;;  %v1263_v52 = vld [vmem:[%s14755_s3] sm:$0xff] }
  0x81   :  { %v72_v53 = vpop.permute.xlu0 %71 }
  0x82   :  { %77 = vst.msk [vmem:[#allocation2 + $0x8] sm:$0xff] %vm75_vm1, %v72_v53  ;;  %v1273_v53 = vsel %vm1271_vm3, %v1263_v52, 0 }
  0x85   :  { %v12046_v54 = vld [vmem:[#allocation2] sm:$0xff] }
  0x86   :  { %v90_v55 = vsel %vm88_vm2, %v12046_v54, 0 }
  0x87   :  { %v12050_v56 = vand.u32 4294901760, %v90_v55 }
  0x89   :  { %10312 = vmatprep.mubr.f32.mxu1 %v12050_v56  ;;  %v12053_v57 = vld [vmem:[#allocation2 + $0x8] sm:$0xff]  ;;  %v12056_v58 = vsub.f32 %v90_v55, %v12050_v56 }
  0x8a   :  { %v93_v59 = vsel %vm88_vm2, %v12053_v57, 0  ;;  %v1264_v55 = vld [vmem:[%s14755_s3 + $0x8] sm:$0xff] }
  0x8b   :  { %v12060_v60 = vand.u32 4294901760, %v93_v59  ;;  %v12063_v61 = vand.u32 4294901760, %v12056_v58 }
  0x8d   :  { %10313 = vmatmul.mubr.f32.vlgmr.msra.gmra.mxu1 %v12060_v60  ;;  %v171_v62 = vsub.f32 %v12056_v58, %v12063_v61  ;;  %v12069_v63 = vsub.f32 %v93_v59, %v12060_v60 }
  0x8e   :  { %10335 = vmatpush3.msra.mxu1 %v11919_v3  ;;  %10350 = vmatprep.mubr.f32.mxu1 %v12063_v61 }
  0x8f   :  { %10336 = vmatprep.subr.mxu1 %v11931_v7  ;;  %v12074_v0 = vand.u32 4294901760, %v171_v62  ;;  %v12077_v1 = vand.u32 4294901760, %v12069_v63  ;;  %v1266_v62 = vld [vmem:[%s14755_s3 + $0x18] sm:$0xff] }
  0x90   :  { %10337 = vmatpush3.msra.mxu1 %v11931_v7 }
  0x91   :  { %10338 = vmatprep.subr.mxu1 %v11933_v8  ;;  %10293 = vmatprep.mubr.f32.mxu0 %v12074_v0  ;;  %v181_v2 = vsub.f32 %v12069_v63, %v12077_v1 }
  0x92   :  { %10339 = vmatpush3.msra.mxu1 %v11933_v8 }
  0x93   :  { %10340 = vmatprep.subr.mxu1 %v11948_v13  ;;  %v12086_v4 = vand.u32 4294901760, %v181_v2  ;;  %v1267_v2 = vld [vmem:[%s14755_s3 + $0x20] sm:$0xff] }
  0x94   :  { %10341 = vmatpush3.msra.mxu1 %v11948_v13 }
  0x95   :  { %10342 = vmatprep.subr.mxu1 %v11951_v14  ;;  %10294 = vmatmul.mubr.f32.vlgmr.msra.gmra.mxu0 %v12086_v4 }
  0x96   :  { %10316 = vmatpush3.msra.mxu0 %v11945_v12  ;;  %10343 = vmatpush3.msra.mxu1 %v11951_v14  ;;  %v12127_v12 = vsub.f32 %v682_v5, %v12108_v6  ;;  %v12384_v5 = vsel %vm1271_vm3, %v1267_v2, 0  ;;  %v12438_v2 = vand.u32 4294901760, %v12053_v57 }
  0x97   :  { %10317 = vmatprep.subr.mxu0 %v11963_v18  ;;  %10331 = vmatprep.mubr.f32.mxu0 %v12056_v58 }
  0x98   :  { %10344 = vmatprep.subr.mxu1 %v11969_v20  ;;  %10318 = vmatpush3.msra.mxu0 %v11963_v18  ;;  %v12146_v18 = vand.u32 4294901760, %v679_v15 }
  0x99   :  { %10345 = vmatpush3.msra.mxu1 %v11969_v20  ;;  %10319 = vmatprep.subr.mxu0 %v11966_v19 }
  0x9a   :  { %10346 = vmatprep.subr.mxu1 %v11971_v21  ;;  %10320 = vmatpush3.msra.mxu0 %v11966_v19  ;;  %v12156_v19 = vsub.f32 %v680_v10, %v12134_v16  ;;  %v1269_v10 = vld [vmem:[%s14755_s3 + $0x30] sm:$0xff] }
  0x9b   :  { %10347 = vmatpush3.msra.mxu1 %v11971_v21  ;;  %10321 = vmatprep.subr.mxu0 %v11977_v23 }
  0x9c   :  { %10348 = vmatprep.subr.mxu1 %v11983_v25  ;;  %10322 = vmatpush3.msra.mxu0 %v11977_v23  ;;  %v12185_v33 = vand.u32 4294901760, %v12156_v19 }
  0x9d   :  { %10349 = vmatpush3.msra.mxu1 %v11983_v25  ;;  %10323 = vmatprep.subr.mxu0 %v11980_v24 }
  0x9e   :  { %10351 = vmatmul.mubr.f32.vlgmr.msra.gmra.mxu1 %v12077_v1  ;;  %10372 = vmatprep.subr.mxu1 %v11919_v3 }
  0x9f   :  { %10324 = vmatpush3.msra.mxu0 %v11980_v24  ;;  %10373 = vmatpush3.msra.mxu1 %v11919_v3  ;;  %v678_v3 = vld [vmem:[%s14835_s26 + $0x18] sm:$0xff]  ;;  %v677_v24 = vld [vmem:[%s14835_s26 + $0x10] sm:$0xff] }
  0xa0   :  { %10388 = vmatprep.mubr.f32.mxu1 %v12050_v56  ;;  %10325 = vmatprep.subr.mxu0 %v11992_v28  ;;  %v12158_v23 = vand.u32 4294901760, %v678_v3 }
  0xa1   :  { %10374 = vmatprep.subr.mxu1 %v11931_v7  ;;  %10326 = vmatpush3.msra.mxu0 %v11992_v28  ;;  %v12171_v28 = vsub.f32 %v679_v15, %v12146_v18 }
  0xa2   :  { %10375 = vmatpush3.msra.mxu1 %v11931_v7  ;;  %10327 = vmatprep.subr.mxu0 %v12005_v32  ;;  %v12151_v7 = vand.u32 4294901760, %v12127_v12  ;;  %v12188_v34 = vsub.f32 %v678_v3, %v12158_v23  ;;  %v2112_v3 = vld [vmem:[%s14756_s4] sm:$0xff] }
  0xa3   :  { %10376 = vmatprep.subr.mxu1 %v11933_v8  ;;  %10328 = vmatpush3.msra.mxu0 %v12005_v32  ;;  %v12180_v32 = vand.u32 4294901760, %v677_v24  ;;  %v12202_v36 = vand.u32 4294901760, %v12171_v28 }
  0xa4   :  { %10377 = vmatpush3.msra.mxu1 %v11933_v8  ;;  %10329 = vmatprep.subr.mxu0 %v12019_v38  ;;  %v12168_v8 = vand.u32 4294901760, %v12144_v17  ;;  %v12216_v40 = vand.u32 4294901760, %v12188_v34 }
  0xa5   :  { %10378 = vmatprep.subr.mxu1 %v11948_v13  ;;  %10330 = vmatpush3.msra.mxu0 %v12019_v38  ;;  %v12207_v39 = vsub.f32 %v677_v24, %v12180_v32  ;;  %v817_v41 = vsub.f32 %v12171_v28, %v12202_v36  ;;  %v5683_v24 = vld [vmem:[%s14757_s10] sm:$0xff] }
  0xa6   :  { %10379 = vmatpush3.msra.mxu1 %v11948_v13  ;;  %10332 = vmatmul.mubr.f32.vlgmr.msra.gmra.mxu0 %v12069_v63  ;;  %v796_v13 = vsub.f32 %v12127_v12, %v12151_v7 }
  0xa7   :  { %10353 = vmatprep.subr.mxu0 %v11974_v22  ;;  %10380 = vmatprep.subr.mxu1 %v11951_v14  ;;  %v12229_v43 = vand.u32 4294901760, %v12207_v39  ;;  %v818_v47 = vand.u32 4294901760, %v817_v41 }
  0xa8   :  { %10354 = vmatpush3.msra.mxu0 %v11974_v22  ;;  %10369 = vmatprep.mubr.f32.mxu0 %v12050_v56  ;;  %v675_v22 = vld [vmem:[%s14835_s26] sm:$0xff]  ;;  %v797_v38 = vand.u32 4294901760, %v796_v13 }
  0xa9   :  { %10381 = vmatpush3.msra.mxu1 %v11951_v14  ;;  %10355 = vmatprep.subr.mxu0 %v11986_v26  ;;  %v803_v14 = vsub.f32 %v12144_v17, %v12168_v8 }
  0xaa   :  { %10382 = vmatprep.subr.mxu1 %v11969_v20  ;;  %10356 = vmatpush3.msra.mxu0 %v11986_v26  ;;  %v12209_v26 = vand.u32 4294901760, %v675_v22 }
  0xab   :  { %10383 = vmatpush3.msra.mxu1 %v11969_v20  ;;  %10357 = vmatprep.subr.mxu0 %v11989_v27  ;;  %v810_v20 = vsub.f32 %v12156_v19, %v12185_v33 }
  0xac   :  { %10384 = vmatprep.subr.mxu1 %v11971_v21  ;;  %10358 = vmatpush3.msra.mxu0 %v11989_v27  ;;  %v12221_v27 = vsub.f32 %v676_v29, %v12195_v35  ;;  %v12232_v44 = vsub.f32 %v675_v22, %v12209_v26  ;;  %v5685_v29 = vld [vmem:[%s14757_s10 + $0x10] sm:$0xff] }
  0xad   :  { %10385 = vmatpush3.msra.mxu1 %v11971_v21  ;;  %10359 = vmatprep.subr.mxu0 %v11998_v30  ;;  %v804_v21 = vand.u32 4294901760, %v803_v14 }
  0xae   :  { %10386 = vmatprep.subr.mxu1 %v11983_v25  ;;  %10360 = vmatpush3.msra.mxu0 %v11998_v30  ;;  %v811_v30 = vand.u32 4294901760, %v810_v20  ;;  %v12240_v46 = vand.u32 4294901760, %v12221_v27  ;;  %v12247_v48 = vand.u32 4294901760, %v12232_v44 }
  0xaf   :  { %10387 = vmatpush3.msra.mxu1 %v11983_v25  ;;  %10361 = vmatprep.subr.mxu0 %v12001_v31  ;;  %v824_v25 = vsub.f32 %v12188_v34, %v12216_v40 }
  0xb0   :  { %10389 = vmatmul.mubr.f32.vlgmr.msra.gmra.mxu1 %v12060_v60  ;;  %10410 = vmatprep.subr.mxu1 %v797_v38  ;;  %v845_v51 = vsub.f32 %v12232_v44, %v12247_v48 }
  0xb1   :  { %10362 = vmatpush3.msra.mxu0 %v12001_v31  ;;  %10411 = vmatpush3.msra.mxu1 %v797_v38  ;;  %v831_v31 = vsub.f32 %v12207_v39, %v12229_v43  ;;  %v825_v49 = vand.u32 4294901760, %v824_v25 }
  0xb2   :  { %10426 = vmatprep.mubr.f32.mxu1 %v12050_v56  ;;  %10363 = vmatprep.subr.mxu0 %v12015_v37 }
  0xb3   :  { %10412 = vmatprep.subr.mxu1 %v804_v21  ;;  %10364 = vmatpush3.msra.mxu0 %v12015_v37  ;;  %v838_v37 = vsub.f32 %v12221_v27, %v12240_v46  ;;  %v832_v50 = vand.u32 4294901760, %v831_v31 }
  0xb4   :  { %10413 = vmatpush3.msra.mxu1 %v804_v21  ;;  %10365 = vmatprep.subr.mxu0 %v12025_v42 }
  0xb5   :  { %10414 = vmatprep.subr.mxu1 %v811_v30  ;;  %10366 = vmatpush3.msra.mxu0 %v12025_v42  ;;  %v839_v42 = vand.u32 4294901760, %v838_v37 }
  0xb6   :  { %10415 = vmatpush3.msra.mxu1 %v811_v30  ;;  %10367 = vmatprep.subr.mxu0 %v12032_v45 }
  0xb7   :  { %10416 = vmatprep.subr.mxu1 %v818_v47  ;;  %10368 = vmatpush3.msra.mxu0 %v12032_v45  ;;  %v846_v45 = vand.u32 4294901760, %v845_v51 }
  0xb8   :  { %10417 = vmatpush3.msra.mxu1 %v818_v47  ;;  %10370 = vmatmul.mubr.f32.vlgmr.msra.gmra.mxu0 %v12060_v60 }
  0xb9   :  { %10391 = vmatprep.subr.mxu0 %v12108_v6  ;;  %10418 = vmatprep.subr.mxu1 %v825_v49 }
  0xba   :  { %10392 = vmatpush3.msra.mxu0 %v12108_v6  ;;  %10407 = vmatprep.mubr.f32.mxu0 %v12074_v0  ;;  %v12375_v0 = vsel %vm1271_vm3, %v1266_v62, 0 }
  0xbb   :  { %10419 = vmatpush3.msra.mxu1 %v825_v49  ;;  %10393 = vmatprep.subr.mxu0 %v12122_v11 }
  0xbc   :  { %10420 = vmatprep.subr.mxu1 %v832_v50  ;;  %10394 = vmatpush3.msra.mxu0 %v12122_v11 }
  0xbd   :  { %10421 = vmatpush3.msra.mxu1 %v832_v50  ;;  %10395 = vmatprep.subr.mxu0 %v12134_v16 }
  0xbe   :  { %10422 = vmatprep.subr.mxu1 %v839_v42  ;;  %10396 = vmatpush3.msra.mxu0 %v12134_v16 }
  0xbf   :  { %10423 = vmatpush3.msra.mxu1 %v839_v42  ;;  %10397 = vmatprep.subr.mxu0 %v12146_v18 }
  0xc0   :  { %10424 = vmatprep.subr.mxu1 %v846_v45  ;;  %10398 = vmatpush3.msra.mxu0 %v12146_v18 }
  0xc1   :  { %10425 = vmatpush3.msra.mxu1 %v846_v45  ;;  %10399 = vmatprep.subr.mxu0 %v12158_v23 }
  0xc2   :  { %10427 = vmatmul.mubr.f32.vlgmr.msra.gmra.mxu1 %v12060_v60  ;;  %10448 = vmatprep.subr.mxu1 %v12108_v6 }
  0xc3   :  { %10400 = vmatpush3.msra.mxu0 %v12158_v23  ;;  %10449 = vmatpush3.msra.mxu1 %v12108_v6 }
  0xc4   :  { %10464 = vmatprep.mubr.f32.mxu1 %v12063_v61  ;;  %10401 = vmatprep.subr.mxu0 %v12180_v32 }
  0xc5   :  { %10450 = vmatprep.subr.mxu1 %v12122_v11  ;;  %10402 = vmatpush3.msra.mxu0 %v12180_v32 }
  0xc6   :  { %10451 = vmatpush3.msra.mxu1 %v12122_v11  ;;  %10403 = vmatprep.subr.mxu0 %v12195_v35 }
  0xc7   :  { %10452 = vmatprep.subr.mxu1 %v12134_v16  ;;  %10404 = vmatpush3.msra.mxu0 %v12195_v35 }
  0xc8   :  { %10453 = vmatpush3.msra.mxu1 %v12134_v16  ;;  %10405 = vmatprep.subr.mxu0 %v12209_v26 }
  0xc9   :  { %10454 = vmatprep.subr.mxu1 %v12146_v18  ;;  %10406 = vmatpush3.msra.mxu0 %v12209_v26 }
  0xca   :  { %10455 = vmatpush3.msra.mxu1 %v12146_v18  ;;  %10408 = vmatmul.mubr.f32.vlgmr.msra.gmra.mxu0 %v12086_v4 }
  0xcb   :  { %10429 = vmatprep.subr.mxu0 %v12127_v12  ;;  %10456 = vmatprep.subr.mxu1 %v12158_v23 }
  0xcc   :  { %10430 = vmatpush3.msra.mxu0 %v12127_v12  ;;  %10445 = vmatprep.mubr.f32.mxu0 %v12056_v58  ;;  %v12358_v58 = vsel %vm1271_vm3, %v1264_v55, 0  ;;  %v1270_v12 = vld [vmem:[%s14755_s3 + $0x38] sm:$0xff] }
  0xcd   :  { %10457 = vmatpush3.msra.mxu1 %v12158_v23  ;;  %10431 = vmatprep.subr.mxu0 %v12144_v17  ;;  %v12402_v15 = vsel %vm1271_vm3, %v1270_v12, 0  ;;  %v12435_v55 = vand.u32 4294901760, %v12358_v58 }
  0xce   :  { %10458 = vmatprep.subr.mxu1 %v12180_v32  ;;  %10432 = vmatpush3.msra.mxu0 %v12144_v17  ;;  %v2113_v17 = vld [vmem:[%s14756_s4 + $0x8] sm:$0xff] }
  0xcf   :  { %10459 = vmatpush3.msra.mxu1 %v12180_v32  ;;  %10433 = vmatprep.subr.mxu0 %v12156_v19 }
  0xd0   :  { %10460 = vmatprep.subr.mxu1 %v12195_v35  ;;  %10434 = vmatpush3.msra.mxu0 %v12156_v19  ;;  %v2115_v19 = vld [vmem:[%s14756_s4 + $0x18] sm:$0xff] }
  0xd1   :  { %10461 = vmatpush3.msra.mxu1 %v12195_v35  ;;  %10435 = vmatprep.subr.mxu0 %v12171_v28 }
  0xd2   :  { %10462 = vmatprep.subr.mxu1 %v12209_v26  ;;  %10436 = vmatpush3.msra.mxu0 %v12171_v28 }
  0xd3   :  { %10463 = vmatpush3.msra.mxu1 %v12209_v26  ;;  %10437 = vmatprep.subr.mxu0 %v12188_v34 }
  0xd4   :  { %10465 = vmatmul.mubr.f32.vlgmr.msra.gmra.mxu1 %v12077_v1  ;;  %10486 = vmatprep.subr.mxu1 %v12108_v6 }
  0xd5   :  { %10438 = vmatpush3.msra.mxu0 %v12188_v34  ;;  %10487 = vmatpush3.msra.mxu1 %v12108_v6  ;;  %v1268_v6 = vld [vmem:[%s14755_s3 + $0x28] sm:$0xff] }
  0xd6   :  { %10502 = vmatprep.mubr.f32.mxu1 %v12050_v56  ;;  %10439 = vmatprep.subr.mxu0 %v12207_v39  ;;  %v12390_v9 = vsel %vm1271_vm3, %v1268_v6, 0 }
  0xd7   :  { %10488 = vmatprep.subr.mxu1 %v12122_v11  ;;  %10440 = vmatpush3.msra.mxu0 %v12207_v39 }
  0xd8   :  { %10489 = vmatpush3.msra.mxu1 %v12122_v11  ;;  %10441 = vmatprep.subr.mxu0 %v12221_v27  ;;  %v12396_v11 = vsel %vm1271_vm3, %v1269_v10, 0 }
  0xd9   :  { %10490 = vmatprep.subr.mxu1 %v12134_v16  ;;  %10442 = vmatpush3.msra.mxu0 %v12221_v27 }
  0xda   :  { %10491 = vmatpush3.msra.mxu1 %v12134_v16  ;;  %10443 = vmatprep.subr.mxu0 %v12232_v44  ;;  %v11813_v16 = vmov 0  }
  0xdb   :  { %10492 = vmatprep.subr.mxu1 %v12146_v18  ;;  %10444 = vmatpush3.msra.mxu0 %v12232_v44 }
  0xdc   :  { %10493 = vmatpush3.msra.mxu1 %v12146_v18  ;;  %10446 = vmatmul.mubr.f32.vlgmr.msra.gmra.mxu0 %v12069_v63  ;;  %v2114_v18 = vld [vmem:[%s14756_s4 + $0x10] sm:$0xff] }
  0xdd   :  { %10467 = vmatprep.subr.mxu0 %v12151_v7  ;;  %10494 = vmatprep.subr.mxu1 %v12158_v23 }
  0xde   :  { %10468 = vmatpush3.msra.mxu0 %v12151_v7  ;;  %10483 = vmatprep.mubr.f32.mxu0 %v12050_v56  ;;  %v12355_v56 = vand.u32 4294901760, %v1273_v53  ;;  %v5684_v7 = vld [vmem:[%s14757_s10 + $0x8] sm:$0xff] }
  0xdf   :  { %10495 = vmatpush3.msra.mxu1 %v12158_v23  ;;  %10469 = vmatprep.subr.mxu0 %v12168_v8  ;;  %v5686_v23 = vld [vmem:[%s14757_s10 + $0x18] sm:$0xff] }
  0xe0   :  { %10496 = vmatprep.subr.mxu1 %v12180_v32  ;;  %10470 = vmatpush3.msra.mxu0 %v12168_v8  ;;  %v12361_v59 = vsub.f32 %v1273_v53, %v12355_v56  ;;  %v8753_v8 = vld [vmem:[%s14758_s17 + $0x8] sm:$0x7] }
  0xe1   :  { %10497 = vmatpush3.msra.mxu1 %v12180_v32  ;;  %10471 = vmatprep.subr.mxu0 %v12185_v33 }
  0xe2   :  { %10498 = vmatprep.subr.mxu1 %v12195_v35  ;;  %10472 = vmatpush3.msra.mxu0 %v12185_v33  ;;  %v1369_v63 = vand.u32 4294901760, %v12361_v59  ;;  %v8752_v33 = vld [vmem:[%s14758_s17] sm:$0xff] }
  0xe3   :  { %10499 = vmatpush3.msra.mxu1 %v12195_v35  ;;  %10473 = vmatprep.subr.mxu0 %v12202_v36 }
  0xe4   :  { %10500 = vmatprep.subr.mxu1 %v12209_v26  ;;  %10474 = vmatpush3.msra.mxu0 %v12202_v36  ;;  %v1370_v1 = vsub.f32 %v12361_v59, %v1369_v63 }
  0xe5   :  { %10501 = vmatpush3.msra.mxu1 %v12209_v26  ;;  %10475 = vmatprep.subr.mxu0 %v12216_v40 }
  0xe6   :  { %10503 = vmatmul.mubr.f32.vlgmr.msra.gmra.mxu1 %v12060_v60  ;;  %10476 = vmatpush3.msra.mxu0 %v12216_v40  ;;  %v1371_v4 = vand.u32 4294901760, %v1370_v1 }
  0xe7   :  { %10477 = vmatprep.subr.mxu0 %v12229_v43  ;;  %10541 = vmatprep.mubr.f32.mxu1 %v12355_v56 }
  0xe8   :  { %10478 = vmatpush3.msra.mxu0 %v12229_v43  ;;  %11810 = vset.pattern.permute.xlu1 %v11813_v16 }
  0xe9   :  { %10479 = vmatprep.subr.mxu0 %v12240_v46  ;;  %11811 = vset.pattern.permute.xlu0 %v11813_v16  ;;  %v12441_v16 = vand.u32 4294901760, %v12046_v54 }
  0xea   :  { %10480 = vmatpush3.msra.mxu0 %v12240_v46  ;;  %2118 = vperm.xlu1 %11810, %v2112_v3  }
  0xeb   :  { %10481 = vmatprep.subr.mxu0 %v12247_v48  ;;  %2128 = vperm.xlu0 %11811, %v2114_v18  }
  0xec   :  { %10482 = vmatpush3.msra.mxu0 %v12247_v48 }
  0xed   :  { %10484 = vmatmul.mubr.f32.vlgmr.msra.gmra.mxu0 %v12060_v60  ;;  %v1265_v60 = vld [vmem:[%s14755_s3 + $0x10] sm:$0xff] }
  0xee   :  { %v12368_v61 = vsel %vm1271_vm3, %v1265_v60, 0  ;;  %10517 = vmatprep.mubr.f32.mxu0 %v1371_v4  ;;  %2123 = vperm.xlu1 %11810, %v2113_v17  }
  0xef   :  { %5694 = vperm.xlu0 %11811, %v5684_v7   ;;  %v12444_v3 = vand.u32 4294901760, %v12368_v61  ;;  %v12448_v7 = vsub.f32 %v12358_v58, %v12435_v55 }
  0xf1   :  { %v12467_v58 = vsub.f32 %v12368_v61, %v12444_v3 }
  0xf2   :  { %2133 = vperm.xlu1 %11810, %v2115_v19  }
  0xf3   :  { %5704 = vperm.xlu0 %11811, %v5686_v23  }
  0xf6   :  { %5689 = vperm.xlu1 %11810, %v5683_v24   ;;  %v12452_v24 = vsub.f32 %v12053_v57, %v12438_v2 }
  0xf7   :  { %8761 = vperm.xlu0 %11811, %v8753_v8   ;;  %v12455_v8 = vand.u32 4294901760, %v12375_v0 }
  0xf9   :  { %v12487_v61 = vsub.f32 %v12375_v0, %v12455_v8  ;;  %v1389_v0 = vand.u32 4294901760, %v12467_v58 }
  0xfa   :  { %5699 = vperm.xlu1 %11810, %v5685_v29  }
  0xfe   :  { %8756 = vperm.xlu1 %11810, %v8752_v33  }
 0x14d   :  { %v10314_v13 = vpop.f32.mrf.mxu1 }
 0x14f   :  { %v295_v22 = vpop.f32.mrf.mxu1 }
 0x155   :  { %v10295_v28 = vpop.f32.mrf.mxu0 }
 0x156   :  { %v302_v41 = vadd.f32 %v10314_v13, %v10295_v28 }
 0x157   :  { %v174_v32 = vpop.f32.mrf.mxu0 }
 0x158   :  { %v296_v44 = vadd.f32 %v295_v22, %v174_v32  ;;  %v12463_v32 = vsub.f32 %v12046_v54, %v12441_v16  ;;  %v12477_v22 = vand.u32 4294901760, %v12384_v5  ;;  %v12483_v54 = vand.u32 4294901760, %v12452_v24 }
 0x15e   :  { %v10352_v35 = vpop.f32.mrf.mxu1 }
 0x160   :  { %v477_v38 = vpop.f32.mrf.mxu1 }
 0x166   :  { %v10333_v34 = vpop.f32.mrf.mxu0 }
 0x167   :  { %v397_v30 = vadd.f32 %v10333_v34, %v302_v41  ;;  %v1379_v34 = vand.u32 4294901760, %v12448_v7 }
 0x168   :  { %v389_v14 = vpop.f32.mrf.mxu0 }
 0x169   :  { %v390_v47 = vadd.f32 %v389_v14, %v296_v44  ;;  %v486_v50 = vadd.f32 %v10352_v35, %v397_v30  ;;  %v1399_v44 = vand.u32 4294901760, %v12487_v61 }
 0x16b   :  { %v478_v45 = vadd.f32 %v477_v38, %v390_v47  ;;  %v12495_v38 = vand.u32 4294901760, %v12390_v9 }
 0x170   :  { %v10390_v39 = vpop.f32.mrf.mxu1 }
 0x172   :  { %v665_v40 = vpop.f32.mrf.mxu1 }
 0x178   :  { %v10371_v36 = vpop.f32.mrf.mxu0 }
 0x179   :  { %v587_v42 = vadd.f32 %v10371_v36, %v486_v50  ;;  %v12545_v50 = vand.u32 4294901760, %v12402_v15 }
 0x17a   :  { %v580_v26 = vpop.f32.mrf.mxu0 }
 0x17b   :  { %v581_v60 = vadd.f32 %v580_v26, %v478_v45  ;;  %v672_v10 = vadd.f32 %v10390_v39, %v587_v42  ;;  %v12502_v26 = vand.u32 4294901760, %v12463_v32 }
 0x17d   :  { %v666_v19 = vadd.f32 %v665_v40, %v581_v60  ;;  %v12459_v13 = vand.u32 4294901760, %v672_v10  ;;  %v1492_v47 = vsub.f32 %v12463_v32, %v12502_v26 }
 0x17f   :  { %v12479_v35 = vand.u32 4294901760, %v666_v19  ;;  %v12498_v39 = vsub.f32 %v672_v10, %v12459_v13 }
 0x181   :  { %v12518_v41 = vsub.f32 %v666_v19, %v12479_v35 }
 0x182   :  { %v10428_v27 = vpop.f32.mrf.mxu1 }
 0x183   :  { %v12552_v42 = vand.u32 4294901760, %v12518_v41 }
 0x184   :  { %v883_v25 = vpop.f32.mrf.mxu1 }
 0x185   :  { %v1506_v10 = vsub.f32 %v12518_v41, %v12552_v42 }
 0x18a   :  { %v10409_v20 = vpop.f32.mrf.mxu0 }
 0x18b   :  { %v890_v46 = vadd.f32 %v10428_v27, %v10409_v20  ;;  %v1380_v27 = vsub.f32 %v12448_v7, %v1379_v34 }
 0x18c   :  { %v762_v21 = vpop.f32.mrf.mxu0 }
 0x18d   :  { %v884_v49 = vadd.f32 %v883_v25, %v762_v21  ;;  %v12515_v21 = vsub.f32 %v12384_v5, %v12477_v22  ;;  %v12531_v5 = vand.u32 4294901760, %v12396_v11 }
 0x194   :  { %v10466_v31 = vpop.f32.mrf.mxu1 }
 0x196   :  { %v1065_v52 = vpop.f32.mrf.mxu1 }
 0x19c   :  { %v10447_v43 = vpop.f32.mrf.mxu0 }
 0x19d   :  { %v985_v37 = vadd.f32 %v10447_v43, %v890_v46  ;;  %v1485_v43 = vsub.f32 %v12452_v24, %v12483_v54  ;;  %v12528_v46 = vsub.f32 %v12390_v9, %v12495_v38 }
 0x19e   :  { %v977_v48 = vpop.f32.mrf.mxu0 }
 0x19f   :  { %v978_v51 = vadd.f32 %v977_v48, %v884_v49  ;;  %v1074_v53 = vadd.f32 %v10466_v31, %v985_v37  ;;  %v1390_v31 = vsub.f32 %v12467_v58, %v1389_v0  ;;  %v12540_v48 = vand.u32 4294901760, %v12498_v39 }
 0x1a0   :  { %v1381_v49 = vand.u32 4294901760, %v1380_v27  ;;  %v1409_v37 = vand.u32 4294901760, %v12515_v21  ;;  %v1486_v45 = vand.u32 4294901760, %v1485_v43 }
 0x1a1   :  { %v1066_v6 = vadd.f32 %v1065_v52, %v978_v51  ;;  %v1400_v51 = vsub.f32 %v12487_v61, %v1399_v44  ;;  %v1419_v52 = vand.u32 4294901760, %v12528_v46  ;;  %v1391_v60 = vand.u32 4294901760, %v1390_v31 }
 0x1a6   :  { %v10504_v62 = vpop.f32.mrf.mxu1 }
 0x1a8   :  { %v1253_v23 = vpop.f32.mrf.mxu1 }
 0x1ad   :  { %v10485_v1 = vpop.f32.mrf.mxu0 }
 0x1ae   :  { %v1175_v4 = vadd.f32 %v10485_v1, %v1074_v53  ;;  %v12558_v53 = vsub.f32 %v12396_v11, %v12531_v5  ;;  %v1493_v1 = vand.u32 4294901760, %v1492_v47  ;;  %v1401_v11 = vand.u32 4294901760, %v1400_v51 }
 0x1af   :  { %v1168_v12 = vpop.f32.mrf.mxu0 }
 0x1b0   :  { %v1260_v17 = vadd.f32 %v10504_v62, %v1175_v4  ;;  %v1169_v18 = vadd.f32 %v1168_v12, %v1066_v6  ;;  %v1499_v62 = vsub.f32 %v12498_v39, %v12540_v48  ;;  %v1410_v4 = vsub.f32 %v12515_v21, %v1409_v37 }
 0x1b1   :  { %v12568_v6 = vsub.f32 %v12402_v15, %v12545_v50  ;;  %v1420_v12 = vsub.f32 %v12528_v46, %v1419_v52 }
 0x1b2   :  { %v12457_v28 = vand.u32 4294901760, %v1260_v17  ;;  %v1254_v29 = vadd.f32 %v1253_v23, %v1169_v18  ;;  %v1500_v15 = vand.u32 4294901760, %v1499_v62  ;;  %v1411_v18 = vand.u32 4294901760, %v1410_v4 }
 0x1b3   :  { %v1439_v19 = vand.u32 4294901760, %v12568_v6  ;;  %v1507_v23 = vand.u32 4294901760, %v1506_v10 }
 0x1b4   :  { %v12470_v33 = vsub.f32 %v1260_v17, %v12457_v28  ;;  %v12472_v57 = vand.u32 4294901760, %v1254_v29  ;;  %10505 = vmatprep.subr.mxu0 %v12457_v28  ;;  %v1429_v17 = vand.u32 4294901760, %v12558_v53 }
 0x1b5   :  { %10506 = vmatpush3.msra.mxu0 %v12457_v28 }
 0x1b6   :  { %v1476_v14 = vsub.f32 %v1254_v29, %v12472_v57  ;;  %10507 = vmatprep.subr.mxu0 %v12472_v57  ;;  %v12492_v36 = vand.u32 4294901760, %v12470_v33  ;;  %v1421_v29 = vand.u32 4294901760, %v1420_v12 }
 0x1b7   :  { %10508 = vmatpush3.msra.mxu0 %v12472_v57 }
 0x1b8   :  { %10509 = vmatprep.subr.mxu0 %v12438_v2  ;;  %v1471_v20 = vsub.f32 %v12470_v33, %v12492_v36  ;;  %v12508_v40 = vand.u32 4294901760, %v1476_v14 }
 0x1b9   :  { %10510 = vmatpush3.msra.mxu0 %v12438_v2 }
 0x1ba   :  { %10511 = vmatprep.subr.mxu0 %v12441_v16  ;;  %v1472_v30 = vand.u32 4294901760, %v1471_v20  ;;  %v1478_v25 = vsub.f32 %v1476_v14, %v12508_v40 }
 0x1bb   :  { %10512 = vmatpush3.msra.mxu0 %v12441_v16 }
 0x1bc   :  { %10513 = vmatprep.subr.mxu0 %v12459_v13  ;;  %10529 = vmatprep.subr.mxu1 %v1472_v30  ;;  %v1479_v9 = vand.u32 4294901760, %v1478_v25 }
 0x1bd   :  { %10514 = vmatpush3.msra.mxu0 %v12459_v13  ;;  %10530 = vmatpush3.msra.mxu1 %v1472_v30 }
 0x1be   :  { %10515 = vmatprep.subr.mxu0 %v12479_v35  ;;  %10531 = vmatprep.subr.mxu1 %v1479_v9 }
 0x1bf   :  { %10516 = vmatpush3.msra.mxu0 %v12479_v35  ;;  %10532 = vmatpush3.msra.mxu1 %v1479_v9 }
 0x1c0   :  { %10518 = vmatmul.mubr.f32.vlgmr.msra.gmra.mxu0 %v1381_v49  ;;  %10533 = vmatprep.subr.mxu1 %v1486_v45 }
 0x1c1   :  { %10553 = vmatprep.subr.mxu0 %v12470_v33  ;;  %10534 = vmatpush3.msra.mxu1 %v1486_v45 }
 0x1c2   :  { %10554 = vmatpush3.msra.mxu0 %v12470_v33  ;;  %10535 = vmatprep.subr.mxu1 %v1493_v1  ;;  %v1430_v33 = vsub.f32 %v12558_v53, %v1429_v17 }
 0x1c3   :  { %10555 = vmatprep.subr.mxu0 %v1476_v14  ;;  %10520 = vmatprep.mubr.f32.mxu0 %v1391_v60 }
 0x1c4   :  { %10536 = vmatpush3.msra.mxu1 %v1493_v1  ;;  %10556 = vmatpush3.msra.mxu0 %v1476_v14  ;;  %v1440_v14 = vsub.f32 %v12568_v6, %v1439_v19  ;;  %v1431_v20 = vand.u32 4294901760, %v1430_v33 }
 0x1c5   :  { %10521 = vmatmul.mubr.f32.gmra.mxu0 %v1401_v11  ;;  %10537 = vmatprep.subr.mxu1 %v1500_v15 }
 0x1c6   :  { %10557 = vmatprep.subr.mxu0 %v12452_v24  ;;  %10538 = vmatpush3.msra.mxu1 %v1500_v15 }
 0x1c7   :  { %10558 = vmatpush3.msra.mxu0 %v12452_v24  ;;  %10539 = vmatprep.subr.mxu1 %v1507_v23  ;;  %v1441_v24 = vand.u32 4294901760, %v1440_v14 }
 0x1c8   :  { %10559 = vmatprep.subr.mxu0 %v12463_v32  ;;  %10523 = vmatprep.mubr.f32.mxu0 %v1411_v18 }
 0x1c9   :  { %10540 = vmatpush3.msra.mxu1 %v1507_v23  ;;  %10560 = vmatpush3.msra.mxu0 %v12463_v32 }
 0x1ca   :  { %10524 = vmatmul.mubr.f32.gmra.mxu0 %v1421_v29  ;;  %10542 = vmatmul.mubr.f32.vlgmr.msra.gmra.mxu1 %v12435_v55 }
 0x1cb   :  { %10561 = vmatprep.subr.mxu0 %v12498_v39  ;;  %10577 = vmatprep.subr.mxu1 %v12457_v28 }
 0x1cc   :  { %10562 = vmatpush3.msra.mxu0 %v12498_v39  ;;  %10578 = vmatpush3.msra.mxu1 %v12457_v28 }
 0x1cd   :  { %10563 = vmatprep.subr.mxu0 %v12518_v41  ;;  %10579 = vmatprep.subr.mxu1 %v12472_v57 }
 0x1ce   :  { %10526 = vmatprep.mubr.f32.mxu0 %v1431_v20  ;;  %10544 = vmatprep.mubr.f32.mxu1 %v12444_v3 }
 0x1cf   :  { %10564 = vmatpush3.msra.mxu0 %v12518_v41  ;;  %10580 = vmatpush3.msra.mxu1 %v12472_v57 }
 0x1d0   :  { %10527 = vmatmul.mubr.f32.gmra.mxu0 %v1441_v24  ;;  %10545 = vmatmul.mubr.f32.gmra.mxu1 %v12455_v8 }
 0x1d1   :  { %10581 = vmatprep.subr.mxu1 %v12438_v2  ;;  %10601 = vmatprep.subr.mxu0 %v12492_v36 }
 0x1d2   :  { %10582 = vmatpush3.msra.mxu1 %v12438_v2  ;;  %10547 = vmatprep.mubr.f32.mxu1 %v12477_v22 }
 0x1d3   :  { %10583 = vmatprep.subr.mxu1 %v12441_v16  ;;  %10565 = vmatprep.mubr.f32.mxu0 %v12361_v59 }
 0x1d4   :  { %10584 = vmatpush3.msra.mxu1 %v12441_v16  ;;  %10566 = vmatmul.mubr.f32.vlgmr.msra.gmra.mxu0 %v12448_v7 }
 0x1d5   :  { %10548 = vmatmul.mubr.f32.gmra.mxu1 %v12495_v38  ;;  %10585 = vmatprep.subr.mxu1 %v12459_v13 }
 0x1d6   :  { %10602 = vmatpush3.msra.mxu0 %v12492_v36  ;;  %10586 = vmatpush3.msra.mxu1 %v12459_v13 }
 0x1d7   :  { %10603 = vmatprep.subr.mxu0 %v12508_v40  ;;  %10587 = vmatprep.subr.mxu1 %v12479_v35 }
 0x1d8   :  { %10604 = vmatpush3.msra.mxu0 %v12508_v40  ;;  %10550 = vmatprep.mubr.f32.mxu1 %v12531_v5 }
 0x1d9   :  { %10568 = vmatprep.mubr.f32.mxu0 %v12467_v58  ;;  %10588 = vmatpush3.msra.mxu1 %v12479_v35 }
 0x1da   :  { %10605 = vmatprep.subr.mxu0 %v12483_v54  ;;  %10551 = vmatmul.mubr.f32.gmra.mxu1 %v12545_v50 }
 0x1db   :  { %10569 = vmatmul.mubr.f32.gmra.mxu0 %v12487_v61  ;;  %10625 = vmatprep.subr.mxu1 %v12457_v28 }
 0x1dc   :  { %10606 = vmatpush3.msra.mxu0 %v12483_v54  ;;  %10571 = vmatprep.mubr.f32.mxu0 %v12515_v21  ;;  %v2141_v21 = vld [vmem:[%s14759_s5 + $0x8] sm:$0xff] }
 0x1dd   :  { %10607 = vmatprep.subr.mxu0 %v12502_v26  ;;  %10589 = vmatprep.mubr.f32.mxu1 %v1369_v63  ;;  %v2146_v63 = vld [vmem:[%s14759_s5 + $0x30] sm:$0xff]  ;;  %v12756_v30 = vand.u32 4294901760, %v2141_v21 }
 0x1de   :  { %10608 = vmatpush3.msra.mxu0 %v12502_v26  ;;  %10590 = vmatmul.mubr.f32.vlgmr.msra.gmra.mxu1 %v1379_v34  ;;  %v2143_v34 = vld [vmem:[%s14759_s5 + $0x18] sm:$0xff] }
 0x1df   :  { %10609 = vmatprep.subr.mxu0 %v12540_v48  ;;  %10572 = vmatmul.mubr.f32.gmra.mxu0 %v12528_v46  ;;  %v12731_v36 = vand.u32 4294901760, %v2143_v34  ;;  %14846 = vst [vmem:[#allocation13_spill] sm:$0xff] %v12756_v30  ;;  %v2140_v46 = vld [vmem:[%s14759_s5] sm:$0xff]  ;;  %v12770_v31 = vsub.f32 %v2141_v21, %v12756_v30 }
 0x1e0   :  { %10610 = vmatpush3.msra.mxu0 %v12540_v48  ;;  %10626 = vmatpush3.msra.mxu1 %v12457_v28  ;;  %v2144_v28 = vld [vmem:[%s14759_s5 + $0x20] sm:$0xff]  ;;  %v12772_v48 = vand.u32 4294901760, %v2140_v46 }
 0x1e1   :  { %10611 = vmatprep.subr.mxu0 %v12552_v42  ;;  %10627 = vmatprep.subr.mxu1 %v12472_v57  ;;  %v12745_v27 = vsub.f32 %v2143_v34, %v12731_v36  ;;  %14849 = vst [vmem:[#allocation16_spill] sm:$0xff] %v12770_v31 }
 0x1e2   :  { %10612 = vmatpush3.msra.mxu0 %v12552_v42  ;;  %10628 = vmatpush3.msra.mxu1 %v12472_v57  ;;  %v12715_v57 = vand.u32 4294901760, %v2144_v28  ;;  %14850 = vst [vmem:[#allocation17_spill] sm:$0xff] %v12772_v48 }
 0x1e3   :  { %10574 = vmatprep.mubr.f32.mxu0 %v12558_v53  ;;  %10592 = vmatprep.mubr.f32.mxu1 %v1389_v0  ;;  %14844 = vst [vmem:[#allocation11_spill] sm:$0xff] %v12745_v27  ;;  %v12760_v25 = vand.u32 4294901760, %v12745_v27 }
 0x1e4   :  { %10629 = vmatprep.subr.mxu1 %v12438_v2  ;;  %10575 = vmatmul.mubr.f32.gmra.mxu0 %v12568_v6  ;;  %v12728_v61 = vsub.f32 %v2144_v28, %v12715_v57 }
 0x1e5   :  { %10593 = vmatmul.mubr.f32.gmra.mxu1 %v1399_v44  ;;  %10613 = vmatprep.mubr.f32.mxu0 %v12355_v56  ;;  %14847 = vst [vmem:[#allocation14_spill] sm:$0xff] %v12760_v25  ;;  %v2321_v9 = vsub.f32 %v12745_v27, %v12760_v25 }
 0x1e6   :  { %10630 = vmatpush3.msra.mxu1 %v12438_v2  ;;  %10595 = vmatprep.mubr.f32.mxu1 %v1409_v37  ;;  %v12687_v2 = vand.u32 4294901760, %v2146_v63  ;;  %14841 = vst [vmem:[#allocation8_spill] sm:$0xff] %v12728_v61  ;;  %v12740_v0 = vand.u32 4294901760, %v12728_v61  ;;  %v12781_v37 = vand.u32 4294901760, %v12770_v31 }
 0x1e7   :  { %10631 = vmatprep.subr.mxu1 %v12441_v16  ;;  %v2322_v51 = vand.u32 4294901760, %v2321_v9 }
 0x1e8   :  { %10632 = vmatpush3.msra.mxu1 %v12441_v16  ;;  %10614 = vmatmul.mubr.f32.vlgmr.msra.gmra.mxu0 %v12435_v55  ;;  %v2145_v16 = vld [vmem:[%s14759_s5 + $0x28] sm:$0xff]  ;;  %v12698_v7 = vsub.f32 %v2146_v63, %v12687_v2  ;;  %14842 = vst [vmem:[#allocation9_spill] sm:$0xff] %v12740_v0  ;;  %v2314_v43 = vsub.f32 %v12728_v61, %v12740_v0  ;;  %14851 = vst [vmem:[#allocation18_spill] sm:$0xff] %v12781_v37 }
 0x1e9   :  { %10633 = vmatprep.subr.mxu1 %v12459_v13  ;;  %10596 = vmatmul.mubr.f32.gmra.mxu1 %v1419_v52  ;;  %v2335_v45 = vsub.f32 %v12770_v31, %v12781_v37 }
 0x1ea   :  { %10634 = vmatpush3.msra.mxu1 %v12459_v13  ;;  %10598 = vmatprep.mubr.f32.mxu1 %v1429_v17  ;;  %14837 = vst [vmem:[#allocation4_spill] sm:$0xff] %v12698_v7  ;;  %v12710_v32 = vand.u32 4294901760, %v12698_v7 }
 0x1eb   :  { %10635 = vmatprep.subr.mxu1 %v12479_v35  ;;  %10616 = vmatprep.mubr.f32.mxu0 %v12444_v3  ;;  %v2336_v53 = vand.u32 4294901760, %v2335_v45 }
 0x1ec   :  { %10636 = vmatpush3.msra.mxu1 %v12479_v35  ;;  %10617 = vmatmul.mubr.f32.gmra.mxu0 %v12455_v8  ;;  %14838 = vst [vmem:[#allocation5_spill] sm:$0xff] %v12710_v32  ;;  %v2300_v35 = vsub.f32 %v12698_v7, %v12710_v32  ;;  %v2119_v32 = vpop.permute.xlu1 %2118 }
 0x1ed   :  { %10599 = vmatmul.mubr.f32.gmra.mxu1 %v1439_v19  ;;  %10619 = vmatprep.mubr.f32.mxu0 %v12477_v22 }
 0x1ee   :  { %10637 = vmatprep.mubr.f32.mxu1 %v12355_v56  ;;  %v2147_v56 = vld [vmem:[%s14759_s5 + $0x38] sm:$0xff]  ;;  %v2301_v39 = vand.u32 4294901760, %v2300_v35 }
 0x1ef   :  { %v12679_v59 = vand.u32 4294901760, %v2147_v56 }
 0x1f0   :  { %10620 = vmatmul.mubr.f32.gmra.mxu0 %v12495_v38 }
 0x1f1   :  { %10638 = vmatmul.mubr.f32.vlgmr.msra.gmra.mxu1 %v12435_v55  ;;  %10622 = vmatprep.mubr.f32.mxu0 %v12531_v5  ;;  %v12685_v55 = vsub.f32 %v2147_v56, %v12679_v59 }
 0x1f2   :  { %10640 = vmatprep.mubr.f32.mxu1 %v12444_v3  ;;  %10649 = vmatprep.subr.mxu0 %v12679_v59 }
 0x1f3   :  { %10650 = vmatpush3.msra.mxu0 %v12679_v59  ;;  %v12695_v3 = vand.u32 4294901760, %v12685_v55 }
 0x1f4   :  { %10623 = vmatmul.mubr.f32.gmra.mxu0 %v12545_v50  ;;  %10651 = vmatprep.subr.mxu0 %v12687_v2 }
 0x1f5   :  { %10641 = vmatmul.mubr.f32.gmra.mxu1 %v12455_v8  ;;  %14836 = vst [vmem:[#allocation3_spill] sm:$0xff] %v12695_v3  ;;  %v12700_v8 = vand.u32 4294901760, %v2145_v16  ;;  %10652 = vmatpush3.msra.mxu0 %v12687_v2  ;;  %v2293_v13 = vsub.f32 %v12685_v55, %v12695_v3 }
 0x1f6   :  { %10643 = vmatprep.mubr.f32.mxu1 %v12477_v22 }
 0x1f7   :  { %v12713_v58 = vsub.f32 %v2145_v16, %v12700_v8  ;;  %10653 = vmatprep.subr.mxu0 %v12700_v8  ;;  %v2294_v22 = vand.u32 4294901760, %v2293_v13 }
 0x1f8   :  { %10654 = vmatpush3.msra.mxu0 %v12700_v8 }
 0x1f9   :  { %10644 = vmatmul.mubr.f32.gmra.mxu1 %v12495_v38  ;;  %14839 = vst [vmem:[#allocation6_spill] sm:$0xff] %v12713_v58  ;;  %v12725_v54 = vand.u32 4294901760, %v12713_v58  ;;  %10655 = vmatprep.subr.mxu0 %v12715_v57  ;;  %v2142_v38 = vld [vmem:[%s14759_s5 + $0x10] sm:$0xff] }
 0x1fa   :  { %10646 = vmatprep.mubr.f32.mxu1 %v12531_v5  ;;  %10656 = vmatpush3.msra.mxu0 %v12715_v57  ;;  %v12742_v40 = vand.u32 4294901760, %v2142_v38  ;;  %v2315_v5 = vand.u32 4294901760, %v2314_v43 }
 0x1fb   :  { %14840 = vst [vmem:[#allocation7_spill] sm:$0xff] %v12725_v54  ;;  %10671 = vmatprep.subr.mxu1 %v2294_v22  ;;  %v2307_v26 = vsub.f32 %v12713_v58, %v12725_v54  ;;  %10657 = vmatprep.subr.mxu0 %v12731_v36 }
 0x1fc   :  { %14843 = vst [vmem:[#allocation10_spill] sm:$0xff] %v12742_v40  ;;  %10672 = vmatpush3.msra.mxu1 %v2294_v22  ;;  %v12754_v44 = vsub.f32 %v2142_v38, %v12742_v40  ;;  %10658 = vmatpush3.msra.mxu0 %v12731_v36 }
 0x1fd   :  { %10647 = vmatmul.mubr.f32.gmra.mxu1 %v12545_v50  ;;  %10673 = vmatprep.subr.mxu1 %v2301_v39  ;;  %v2308_v41 = vand.u32 4294901760, %v2307_v26  ;;  %v12784_v50 = vsub.f32 %v2140_v46, %v12772_v48 }
 0x1fe   :  { %14845 = vst [vmem:[#allocation12_spill] sm:$0xff] %v12754_v44  ;;  %10674 = vmatpush3.msra.mxu1 %v2301_v39  ;;  %10659 = vmatprep.subr.mxu0 %v12742_v40  ;;  %v12767_v47 = vand.u32 4294901760, %v12754_v44 }
 0x1ff   :  { %10675 = vmatprep.subr.mxu1 %v2308_v41  ;;  %10660 = vmatpush3.msra.mxu0 %v12742_v40  ;;  %14852 = vst [vmem:[#allocation19_spill] sm:$0xff] %v12784_v50  ;;  %v12791_v52 = vand.u32 4294901760, %v12784_v50 }
 0x200   :  { %14848 = vst [vmem:[#allocation15_spill] sm:$0xff] %v12767_v47  ;;  %10676 = vmatpush3.msra.mxu1 %v2308_v41  ;;  %10661 = vmatprep.subr.mxu0 %v12756_v30  ;;  %v2328_v49 = vsub.f32 %v12754_v44, %v12767_v47 }
 0x201   :  { %10677 = vmatprep.subr.mxu1 %v2315_v5  ;;  %10662 = vmatpush3.msra.mxu0 %v12756_v30  ;;  %14853 = vst [vmem:[#allocation20_spill] sm:$0xff] %v12791_v52  ;;  %v2342_v60 = vsub.f32 %v12784_v50, %v12791_v52 }
 0x202   :  { %10678 = vmatpush3.msra.mxu1 %v2315_v5  ;;  %10663 = vmatprep.subr.mxu0 %v12772_v48  ;;  %v2329_v42 = vand.u32 4294901760, %v2328_v49 }
 0x203   :  { %10664 = vmatpush3.msra.mxu0 %v12772_v48  ;;  %10679 = vmatprep.subr.mxu1 %v2322_v51  ;;  %v2343_v62 = vand.u32 4294901760, %v2342_v60 }
 0x204   :  { %10693 = vmatprep.subr.mxu0 %v12685_v55  ;;  %10680 = vmatpush3.msra.mxu1 %v2322_v51 }
 0x205   :  { %10681 = vmatprep.subr.mxu1 %v2329_v42 }
 0x206   :  { %10682 = vmatpush3.msra.mxu1 %v2329_v42 }
 0x207   :  { %10683 = vmatprep.subr.mxu1 %v2336_v53 }
 0x208   :  { %10684 = vmatpush3.msra.mxu1 %v2336_v53 }
 0x209   :  { %10685 = vmatprep.subr.mxu1 %v2343_v62 }
 0x20a   :  { %10686 = vmatpush3.msra.mxu1 %v2343_v62 }
 0x20b   :  { %10715 = vmatprep.subr.mxu1 %v12679_v59 }
 0x280   :  { %v10519_v1 = vpop.f32.mrf.mxu0 }
 0x282   :  { %v1373_v4 = vpop.f32.mrf.mxu0 }
 0x285   :  { %v10522_v6 = vpop.f32.mrf.mxu0 }
 0x287   :  { %v1393_v11 = vpop.f32.mrf.mxu0 }
 0x28a   :  { %v10525_v10 = vpop.f32.mrf.mxu0  ;;  %v10543_v12 = vpop.f32.mrf.mxu1 }
 0x28b   :  { %v1551_v60 = vadd.f32 %v10543_v12, %v10519_v1 }
 0x28c   :  { %v1413_v17 = vpop.f32.mrf.mxu0  ;;  %v1544_v15 = vpop.f32.mrf.mxu1 }
 0x28d   :  { %v1545_v52 = vadd.f32 %v1544_v15, %v1373_v4 }
 0x290   :  { %v10528_v18 = vpop.f32.mrf.mxu0  ;;  %v10546_v19 = vpop.f32.mrf.mxu1 }
 0x291   :  { %v1563_v3 = vadd.f32 %v10546_v19, %v10522_v6  ;;  %v2124_v19 = vpop.permute.xlu1 %2123 }
 0x292   :  { %v1433_v23 = vpop.f32.mrf.mxu0  ;;  %v1556_v29 = vpop.f32.mrf.mxu1 }
 0x293   :  { %v1557_v30 = vadd.f32 %v1556_v29, %v1393_v11 }
 0x294   :  { %v10567_v33 = vpop.f32.mrf.mxu0 }
 0x295   :  { %v10549_v14 = vpop.f32.mrf.mxu1  ;;  %v1678_v25 = vadd.f32 %v10567_v33, %v1551_v60 }
 0x296   :  { %v1670_v24 = vpop.f32.mrf.mxu0  ;;  %v1575_v62 = vadd.f32 %v10549_v14, %v10525_v10 }
 0x297   :  { %v1568_v20 = vpop.f32.mrf.mxu1  ;;  %v1671_v50 = vadd.f32 %v1670_v24, %v1545_v52 }
 0x298   :  { %v1569_v0 = vadd.f32 %v1568_v20, %v1413_v17 }
 0x29a   :  { %v10552_v56 = vpop.f32.mrf.mxu1 }
 0x29b   :  { %v10570_v63 = vpop.f32.mrf.mxu0  ;;  %v1587_v44 = vadd.f32 %v10552_v56, %v10528_v18 }
 0x29c   :  { %v1580_v16 = vpop.f32.mrf.mxu1  ;;  %v1692_v58 = vadd.f32 %v10570_v63, %v1563_v3 }
 0x29d   :  { %v1684_v28 = vpop.f32.mrf.mxu0  ;;  %v1581_v40 = vadd.f32 %v1580_v16, %v1433_v23 }
 0x29e   :  { %v10591_v13 = vpop.f32.mrf.mxu1  ;;  %v1685_v17 = vadd.f32 %v1684_v28, %v1557_v30 }
 0x29f   :  { %v10573_v34 = vpop.f32.mrf.mxu0  ;;  %v1807_v27 = vadd.f32 %v10591_v13, %v1678_v25 }
 0x2a0   :  { %v1798_v35 = vpop.f32.mrf.mxu1  ;;  %v1706_v54 = vadd.f32 %v10573_v34, %v1575_v62 }
 0x2a1   :  { %v1698_v22 = vpop.f32.mrf.mxu0  ;;  %v1799_v7 = vadd.f32 %v1798_v35, %v1671_v50  ;;  %v2134_v35 = vpop.permute.xlu1 %2133 }
 0x2a2   :  { %v1699_v48 = vadd.f32 %v1698_v22, %v1569_v0 }
 0x2a4   :  { %v10576_v38 = vpop.f32.mrf.mxu0 }
 0x2a5   :  { %v10594_v39 = vpop.f32.mrf.mxu1  ;;  %v1720_v4 = vadd.f32 %v10576_v38, %v1587_v44 }
 0x2a6   :  { %v1712_v26 = vpop.f32.mrf.mxu0  ;;  %v1823_v14 = vadd.f32 %v10594_v39, %v1692_v58 }
 0x2a7   :  { %v1814_v21 = vpop.f32.mrf.mxu1  ;;  %v1713_v20 = vadd.f32 %v1712_v26, %v1581_v40 }
 0x2a8   :  { %v10615_v41 = vpop.f32.mrf.mxu0  ;;  %v1815_v11 = vadd.f32 %v1814_v21, %v1685_v17 }
 0x2a9   :  { %v10597_v43 = vpop.f32.mrf.mxu1  ;;  %v1950_v12 = vadd.f32 %v10615_v41, %v1807_v27  ;;  %v2129_v41 = vpop.permute.xlu0 %2128 }
 0x2aa   :  { %v1943_v46 = vpop.f32.mrf.mxu0  ;;  %v1839_v61 = vadd.f32 %v10597_v43, %v1706_v54 }
 0x2ab   :  { %v1830_v5 = vpop.f32.mrf.mxu1  ;;  %v1944_v6 = vadd.f32 %v1943_v46, %v1799_v7 }
 0x2ac   :  { %v10618_v9 = vpop.f32.mrf.mxu0  ;;  %v1831_v15 = vadd.f32 %v1830_v5, %v1699_v48 }
 0x2ad   :  { %v10600_v49 = vpop.f32.mrf.mxu1  ;;  %v1962_v3 = vadd.f32 %v10618_v9, %v1823_v14  ;;  %v14854_v14 = vld [vmem:[#allocation4_spill] sm:$0xff] }
 0x2ae   :  { %v1955_v51 = vpop.f32.mrf.mxu0  ;;  %v1855_v18 = vadd.f32 %v10600_v49, %v1720_v4 }
 0x2af   :  { %v1846_v42 = vpop.f32.mrf.mxu1 }
 0x2b0   :  { %v10621_v45 = vpop.f32.mrf.mxu0  ;;  %v1847_v23 = vadd.f32 %v1846_v42, %v1713_v20  ;;  %v14855_v20 = vld [vmem:[#allocation10_spill] sm:$0xff] }
 0x2b1   :  { %v10639_v53 = vpop.f32.mrf.mxu1  ;;  %v1974_v33 = vadd.f32 %v10621_v45, %v1839_v61  ;;  %v1956_v61 = vadd.f32 %v1955_v51, %v1815_v11  ;;  %v2832_v11 = vld [vmem:[%s14760_s6 + $0x30] sm:$0xff] }
 0x2b2   :  { %v1967_v37 = vpop.f32.mrf.mxu0  ;;  %v2069_v25 = vadd.f32 %v10639_v53, %v1950_v12 }
 0x2b3   :  { %v2062_v47 = vpop.f32.mrf.mxu1  ;;  %v1968_v0 = vadd.f32 %v1967_v37, %v1831_v15 }
 0x2b4   :  { %v10624_v1 = vpop.f32.mrf.mxu0  ;;  %v2063_v24 = vadd.f32 %v2062_v47, %v1944_v6 }
 0x2b5   :  { %v10642_v31 = vpop.f32.mrf.mxu1  ;;  %v1986_v44 = vadd.f32 %v10624_v1, %v1855_v18  ;;  %v2833_v18 = vld [vmem:[%s14760_s6 + $0x38] sm:$0xff] }
 0x2b6   :  { %v1979_v50 = vpop.f32.mrf.mxu0  ;;  %v2081_v30 = vadd.f32 %v10642_v31, %v1962_v3  ;;  %v14861_v3 = vld [vmem:[#allocation12_spill] sm:$0xff] }
 0x2b7   :  { %v2074_v10 = vpop.f32.mrf.mxu1  ;;  %v1980_v40 = vadd.f32 %v1979_v50, %v1847_v23  ;;  %v2831_v23 = vld [vmem:[%s14760_s6 + $0x28] sm:$0xff]  ;;  %v12902_v50 = vand.u32 4294901760, %v2832_v11 }
 0x2b8   :  { %v2075_v16 = vadd.f32 %v2074_v10, %v1956_v61 }
 0x2b9   :  { %v10645_v52 = vpop.f32.mrf.mxu1 }
 0x2ba   :  { %v2093_v54 = vadd.f32 %v10645_v52, %v1974_v33  ;;  %v14856_v52 = vld [vmem:[#allocation6_spill] sm:$0xff] }
 0x2bb   :  { %v2086_v29 = vpop.f32.mrf.mxu1 }
 0x2bc   :  { %v2109_v27 = vmax.f32 %v2069_v25, %v2093_v54  ;;  %v2087_v48 = vadd.f32 %v2086_v29, %v1968_v0  ;;  %v14859_v25 = vld [vmem:[#allocation17_spill] sm:$0xff]  ;;  %v14860_v0 = vld [vmem:[#allocation11_spill] sm:$0xff]  ;;  %v12888_v54 = vand.u32 4294901760, %v2833_v18  ;;  %v14862_v29 = vld [vmem:[#allocation16_spill] sm:$0xff] }
 0x2bd   :  { %v10648_v58 = vpop.f32.mrf.mxu1 }
 0x2be   :  { %v2137_v7 = vadd.f32 %v2124_v19, %v2109_v27  ;;  %v2108_v56 = vmax.f32 %v2063_v24, %v2087_v48  ;;  %v2105_v63 = vadd.f32 %v10648_v58, %v1986_v44  ;;  %v14857_v19 = vld [vmem:[#allocation13_spill] sm:$0xff]  ;;  %v12907_v24 = vsub.f32 %v2833_v18, %v12888_v54  ;;  %v2829_v48 = vld [vmem:[%s14760_s6 + $0x18] sm:$0xff]  ;;  %v14864_v58 = vld [vmem:[#allocation3_spill] sm:$0xff] }
 0x2bf   :  { %v2098_v28 = vpop.f32.mrf.mxu1  ;;  %v2830_v44 = vld [vmem:[%s14760_s6 + $0x20] sm:$0xff]  ;;  %v12921_v27 = vsub.f32 %v2832_v11, %v12902_v50 }
 0x2c0   :  { %v2152_v37 = vsel %vm88_vm2, %v2137_v7, 0  ;;  %v2136_v13 = vadd.f32 %v2119_v32, %v2108_v56  ;;  %v2111_v34 = vmax.f32 %v2081_v30, %v2105_v63  ;;  %v2099_v22 = vadd.f32 %v2098_v28, %v1980_v40  ;;  %v2828_v7 = vld [vmem:[%s14760_s6 + $0x10] sm:$0xff]  ;;  %v14865_v56 = vld [vmem:[#allocation5_spill] sm:$0xff]  ;;  %v2827_v28 = vld [vmem:[%s14760_s6 + $0x8] sm:$0xff] }
 0x2c1   :  { %v12799_v38 = vand.u32 4294901760, %v2152_v37  ;;  %v12929_v61 = vand.u32 4294901760, %v12907_v24  ;;  %v12931_v30 = vand.u32 4294901760, %v2830_v44  ;;  %v12940_v40 = vand.u32 4294901760, %v2829_v48 }
 0x2c2   :  { %v2149_v47 = vsel %vm88_vm2, %v2136_v13, 0  ;;  %v2139_v39 = vadd.f32 %v2134_v35, %v2111_v34  ;;  %v2110_v26 = vmax.f32 %v2075_v16, %v2099_v22  ;;  %v14866_v34 = vld [vmem:[#allocation7_spill] sm:$0xff]  ;;  %v12976_v35 = vand.u32 4294901760, %v2827_v28 }
 0x2c3   :  { %v12803_v31 = vsub.f32 %v2152_v37, %v12799_v38  ;;  %v12805_v21 = vand.u32 4294901760, %v2149_v47  ;;  %v2967_v63 = vsub.f32 %v12907_v24, %v12929_v61  ;;  %v12955_v16 = vsub.f32 %v2830_v44, %v12931_v30  ;;  %v14871_v44 = vld [vmem:[#allocation20_spill] sm:$0xff] }
 0x2c4   :  { %v2158_v43 = vsel %vm88_vm2, %v2139_v39, 0  ;;  %v2138_v46 = vadd.f32 %v2129_v41, %v2110_v26  ;;  %v12970_v13 = vsub.f32 %v2829_v48, %v12940_v40  ;;  %v14867_v41 = vld [vmem:[#allocation9_spill] sm:$0xff] }
 0x2c5   :  { %v12809_v32 = vand.u32 4294901760, %v12803_v31  ;;  %v12812_v5 = vsub.f32 %v2149_v47, %v12805_v21  ;;  %v12814_v9 = vand.u32 4294901760, %v2158_v43  ;;  %10687 = vmatprep.mubr.f32.mxu1 %v12805_v21  ;;  %v2826_v47 = vld [vmem:[%s14760_s6] sm:$0xff]  ;;  %v2968_v39 = vand.u32 4294901760, %v2967_v63 }
 0x2c6   :  { %v2155_v49 = vsel %vm88_vm2, %v2138_v46, 0  ;;  %10688 = vmatmul.mubr.f32.vlgmr.msra.gmra.mxu1 %v12799_v38  ;;  %v12984_v26 = vand.u32 4294901760, %v12955_v16 }
 0x2c7   :  { %v12820_v51 = vsub.f32 %v2158_v43, %v12814_v9  ;;  %v12822_v42 = vand.u32 4294901760, %v2155_v49  ;;  %10716 = vmatpush3.msra.mxu1 %v12679_v59  ;;  %v12826_v45 = vand.u32 4294901760, %v12812_v5  ;;  %v2246_v53 = vsub.f32 %v12803_v31, %v12809_v32 }
 0x2c8   :  { %10717 = vmatprep.subr.mxu1 %v12687_v2 }
 0x2c9   :  { %v12832_v60 = vsub.f32 %v2155_v49, %v12822_v42  ;;  %10718 = vmatpush3.msra.mxu1 %v12687_v2  ;;  %10690 = vmatprep.mubr.f32.mxu1 %v12822_v42  ;;  %v2236_v62 = vsub.f32 %v12812_v5, %v12826_v45  ;;  %v12839_v1 = vand.u32 4294901760, %v12820_v51  ;;  %v12851_v12 = vand.u32 4294901760, %v2246_v53 }
 0x2ca   :  { %10719 = vmatprep.subr.mxu1 %v12700_v8  ;;  %10691 = vmatmul.mubr.f32.gmra.mxu1 %v12814_v9  ;;  %v12996_v49 = vand.u32 4294901760, %v12970_v13  ;;  %v12998_v53 = vand.u32 4294901760, %v2826_v47 }
 0x2cb   :  { %10720 = vmatpush3.msra.mxu1 %v12700_v8  ;;  %10731 = vmatprep.mubr.f32.mxu1 %v12826_v45  ;;  %v12845_v10 = vand.u32 4294901760, %v2236_v62  ;;  %v12848_v4 = vand.u32 4294901760, %v12832_v60  ;;  %v2266_v33 = vsub.f32 %v12820_v51, %v12839_v1  ;;  %v14868_v62 = vld [vmem:[#allocation14_spill] sm:$0xff] }
 0x2cc   :  { %10721 = vmatprep.subr.mxu1 %v12715_v57  ;;  %v13017_v18 = vsub.f32 %v2826_v47, %v12998_v53 }
 0x2cd   :  { %10722 = vmatpush3.msra.mxu1 %v12715_v57  ;;  %10665 = vmatprep.mubr.f32.mxu0 %v12845_v10  ;;  %v2256_v15 = vsub.f32 %v12832_v60, %v12848_v4  ;;  %v12869_v6 = vand.u32 4294901760, %v2266_v33  ;;  %v13003_v33 = vsub.f32 %v2827_v28, %v12976_v35 }
 0x2ce   :  { %10723 = vmatprep.subr.mxu1 %v12731_v36  ;;  %10666 = vmatmul.mubr.f32.vlgmr.msra.gmra.mxu0 %v12851_v12 }
 0x2cf   :  { %10694 = vmatpush3.msra.mxu0 %v12685_v55  ;;  %10724 = vmatpush3.msra.mxu1 %v12731_v36  ;;  %v12863_v17 = vand.u32 4294901760, %v2256_v15  ;;  %v14858_v55 = vld [vmem:[#allocation8_spill] sm:$0xff] }
 0x2d0   :  { %10695 = vmatprep.subr.mxu0 %v14854_v14  ;;  %10725 = vmatprep.subr.mxu1 %v14855_v20 }
 0x2d1   :  { %10696 = vmatpush3.msra.mxu0 %v14854_v14  ;;  %10726 = vmatpush3.msra.mxu1 %v14855_v20  ;;  %v2988_v14 = vsub.f32 %v12955_v16, %v12984_v26 }
 0x2d2   :  { %10668 = vmatprep.mubr.f32.mxu0 %v12863_v17  ;;  %10697 = vmatprep.subr.mxu0 %v14856_v52 }
 0x2d3   :  { %10727 = vmatprep.subr.mxu1 %v14857_v19  ;;  %10669 = vmatmul.mubr.f32.gmra.mxu0 %v12869_v6  ;;  %v2989_v11 = vand.u32 4294901760, %v2988_v14 }
 0x2d4   :  { %10698 = vmatpush3.msra.mxu0 %v14856_v52  ;;  %10728 = vmatpush3.msra.mxu1 %v14857_v19 }
 0x2d5   :  { %10699 = vmatprep.subr.mxu0 %v14858_v55  ;;  %10709 = vmatprep.mubr.f32.mxu0 %v12812_v5 }
 0x2d6   :  { %10729 = vmatprep.subr.mxu1 %v14859_v25  ;;  %10700 = vmatpush3.msra.mxu0 %v14858_v55  ;;  %v2995_v55 = vsub.f32 %v12970_v13, %v12996_v49 }
 0x2d7   :  { %10730 = vmatpush3.msra.mxu1 %v14859_v25  ;;  %10701 = vmatprep.subr.mxu0 %v14860_v0 }
 0x2d8   :  { %10732 = vmatmul.mubr.f32.vlgmr.msra.gmra.mxu1 %v12809_v32  ;;  %10759 = vmatprep.subr.mxu1 %v12679_v59 }
 0x2d9   :  { %10702 = vmatpush3.msra.mxu0 %v14860_v0  ;;  %10734 = vmatprep.mubr.f32.mxu1 %v12848_v4  ;;  %v14870_v0 = vld [vmem:[#allocation18_spill] sm:$0xff] }
 0x2da   :  { %10760 = vmatpush3.msra.mxu1 %v12679_v59  ;;  %10703 = vmatprep.subr.mxu0 %v14861_v3  ;;  %v12911_v59 = vand.u32 4294901760, %v2831_v23 }
 0x2db   :  { %10761 = vmatprep.subr.mxu1 %v12687_v2  ;;  %10704 = vmatpush3.msra.mxu0 %v14861_v3 }
 0x2dc   :  { %10762 = vmatpush3.msra.mxu1 %v12687_v2  ;;  %10705 = vmatprep.subr.mxu0 %v14862_v29  ;;  %v14863_v2 = vld [vmem:[#allocation19_spill] sm:$0xff] }
 0x2dd   :  { %10735 = vmatmul.mubr.f32.gmra.mxu1 %v12839_v1  ;;  %10763 = vmatprep.subr.mxu1 %v12700_v8 }
 0x2de   :  { %10706 = vmatpush3.msra.mxu0 %v14862_v29  ;;  %10764 = vmatpush3.msra.mxu1 %v12700_v8  ;;  %v12936_v8 = vsub.f32 %v2831_v23, %v12911_v59  ;;  %v2996_v23 = vand.u32 4294901760, %v2995_v55  ;;  %v13029_v29 = vand.u32 4294901760, %v13017_v18 }
 0x2df   :  { %10775 = vmatprep.mubr.f32.mxu1 %v12805_v21  ;;  %10707 = vmatprep.subr.mxu0 %v14863_v2 }
 0x2e0   :  { %10765 = vmatprep.subr.mxu1 %v12715_v57  ;;  %10708 = vmatpush3.msra.mxu0 %v14863_v2  ;;  %v12963_v37 = vand.u32 4294901760, %v12936_v8 }
 0x2e1   :  { %10766 = vmatpush3.msra.mxu1 %v12715_v57  ;;  %10710 = vmatmul.mubr.f32.vlgmr.msra.gmra.mxu0 %v12803_v31  ;;  %v12948_v57 = vand.u32 4294901760, %v12921_v27 }
 0x2e2   :  { %10737 = vmatprep.subr.mxu0 %v14864_v58  ;;  %10767 = vmatprep.subr.mxu1 %v12731_v36  ;;  %v2981_v43 = vsub.f32 %v12936_v8, %v12963_v37 }
 0x2e3   :  { %10712 = vmatprep.mubr.f32.mxu0 %v12832_v60  ;;  %10738 = vmatpush3.msra.mxu0 %v14864_v58  ;;  %v2974_v22 = vsub.f32 %v12921_v27, %v12948_v57  ;;  %v3016_v58 = vsub.f32 %v13017_v18, %v13029_v29 }
 0x2e4   :  { %10768 = vmatpush3.msra.mxu1 %v12731_v36  ;;  %10739 = vmatprep.subr.mxu0 %v14865_v56  ;;  %v12965_v36 = vand.u32 4294901760, %v2828_v7 }
 0x2e5   :  { %10769 = vmatprep.subr.mxu1 %v14855_v20  ;;  %10740 = vmatpush3.msra.mxu0 %v14865_v56  ;;  %v2975_v15 = vand.u32 4294901760, %v2974_v22  ;;  %v3017_v56 = vand.u32 4294901760, %v3016_v58 }
 0x2e6   :  { %10770 = vmatpush3.msra.mxu1 %v14855_v20  ;;  %10713 = vmatmul.mubr.f32.gmra.mxu0 %v12820_v51  ;;  %v12991_v46 = vsub.f32 %v2828_v7, %v12965_v36  ;;  %v2982_v20 = vand.u32 4294901760, %v2981_v43 }
 0x2e7   :  { %10741 = vmatprep.subr.mxu0 %v14866_v34  ;;  %10771 = vmatprep.subr.mxu1 %v14857_v19 }
 0x2e8   :  { %10742 = vmatpush3.msra.mxu0 %v14866_v34  ;;  %10753 = vmatprep.mubr.f32.mxu0 %v12805_v21  ;;  %v13011_v52 = vand.u32 4294901760, %v12991_v46 }
 0x2e9   :  { %10772 = vmatpush3.msra.mxu1 %v14857_v19  ;;  %10743 = vmatprep.subr.mxu0 %v14867_v41  ;;  %v14869_v19 = vld [vmem:[#allocation15_spill] sm:$0xff] }
 0x2ea   :  { %10773 = vmatprep.subr.mxu1 %v14859_v25  ;;  %10744 = vmatpush3.msra.mxu0 %v14867_v41  ;;  %v3002_v3 = vsub.f32 %v12991_v46, %v13011_v52 }
 0x2eb   :  { %10774 = vmatpush3.msra.mxu1 %v14859_v25  ;;  %10745 = vmatprep.subr.mxu0 %v14868_v62  ;;  %v13021_v25 = vand.u32 4294901760, %v13003_v33 }
 0x2ec   :  { %10776 = vmatmul.mubr.f32.vlgmr.msra.gmra.mxu1 %v12799_v38  ;;  %10803 = vmatprep.subr.mxu1 %v2968_v39  ;;  %v3003_v48 = vand.u32 4294901760, %v3002_v3 }
 0x2ed   :  { %10746 = vmatpush3.msra.mxu0 %v14868_v62  ;;  %10778 = vmatprep.mubr.f32.mxu1 %v12822_v42  ;;  %v3009_v2 = vsub.f32 %v13003_v33, %v13021_v25 }
 0x2ee   :  { %10804 = vmatpush3.msra.mxu1 %v2968_v39  ;;  %10747 = vmatprep.subr.mxu0 %v14869_v19 }
 0x2ef   :  { %10805 = vmatprep.subr.mxu1 %v2975_v15  ;;  %10748 = vmatpush3.msra.mxu0 %v14869_v19  ;;  %v3010_v7 = vand.u32 4294901760, %v3009_v2 }
 0x2f0   :  { %10806 = vmatpush3.msra.mxu1 %v2975_v15  ;;  %10749 = vmatprep.subr.mxu0 %v14870_v0 }
 0x2f1   :  { %10779 = vmatmul.mubr.f32.gmra.mxu1 %v12814_v9  ;;  %10807 = vmatprep.subr.mxu1 %v2982_v20 }
 0x2f2   :  { %10750 = vmatpush3.msra.mxu0 %v14870_v0  ;;  %10808 = vmatpush3.msra.mxu1 %v2982_v20 }
 0x2f3   :  { %10819 = vmatprep.mubr.f32.mxu1 %v12805_v21  ;;  %10751 = vmatprep.subr.mxu0 %v14871_v44 }
 0x2f4   :  { %10809 = vmatprep.subr.mxu1 %v2989_v11  ;;  %10752 = vmatpush3.msra.mxu0 %v14871_v44 }
 0x2f5   :  { %10810 = vmatpush3.msra.mxu1 %v2989_v11  ;;  %10754 = vmatmul.mubr.f32.vlgmr.msra.gmra.mxu0 %v12799_v38 }
 0x2f6   :  { %10781 = vmatprep.subr.mxu0 %v12888_v54  ;;  %10811 = vmatprep.subr.mxu1 %v2996_v23 }
 0x2f7   :  { %10756 = vmatprep.mubr.f32.mxu0 %v12822_v42  ;;  %10782 = vmatpush3.msra.mxu0 %v12888_v54 }
 0x2f8   :  { %10812 = vmatpush3.msra.mxu1 %v2996_v23  ;;  %10783 = vmatprep.subr.mxu0 %v12902_v50 }
 0x2f9   :  { %10813 = vmatprep.subr.mxu1 %v3003_v48  ;;  %10784 = vmatpush3.msra.mxu0 %v12902_v50 }
 0x2fa   :  { %10814 = vmatpush3.msra.mxu1 %v3003_v48  ;;  %10757 = vmatmul.mubr.f32.gmra.mxu0 %v12814_v9 }
 0x2fb   :  { %10785 = vmatprep.subr.mxu0 %v12911_v59  ;;  %10815 = vmatprep.subr.mxu1 %v3010_v7 }
 0x2fc   :  { %10786 = vmatpush3.msra.mxu0 %v12911_v59  ;;  %10797 = vmatprep.mubr.f32.mxu0 %v12845_v10 }
 0x2fd   :  { %10816 = vmatpush3.msra.mxu1 %v3010_v7  ;;  %10787 = vmatprep.subr.mxu0 %v12931_v30 }
 0x2fe   :  { %10817 = vmatprep.subr.mxu1 %v3017_v56  ;;  %10788 = vmatpush3.msra.mxu0 %v12931_v30 }
 0x2ff   :  { %10818 = vmatpush3.msra.mxu1 %v3017_v56  ;;  %10789 = vmatprep.subr.mxu0 %v12940_v40 }
 0x300   :  { %10820 = vmatmul.mubr.f32.vlgmr.msra.gmra.mxu1 %v12799_v38  ;;  %10847 = vmatprep.subr.mxu1 %v12888_v54 }
 0x301   :  { %10790 = vmatpush3.msra.mxu0 %v12940_v40  ;;  %10822 = vmatprep.mubr.f32.mxu1 %v12822_v42 }
 0x302   :  { %10848 = vmatpush3.msra.mxu1 %v12888_v54  ;;  %10791 = vmatprep.subr.mxu0 %v12965_v36 }
 0x303   :  { %10849 = vmatprep.subr.mxu1 %v12902_v50  ;;  %10792 = vmatpush3.msra.mxu0 %v12965_v36 }
 0x304   :  { %10850 = vmatpush3.msra.mxu1 %v12902_v50  ;;  %10793 = vmatprep.subr.mxu0 %v12976_v35 }
 0x305   :  { %10823 = vmatmul.mubr.f32.gmra.mxu1 %v12814_v9  ;;  %10851 = vmatprep.subr.mxu1 %v12911_v59 }
 0x306   :  { %10794 = vmatpush3.msra.mxu0 %v12976_v35  ;;  %10852 = vmatpush3.msra.mxu1 %v12911_v59 }
 0x307   :  { %10863 = vmatprep.mubr.f32.mxu1 %v12826_v45  ;;  %10795 = vmatprep.subr.mxu0 %v12998_v53 }
 0x308   :  { %10853 = vmatprep.subr.mxu1 %v12931_v30  ;;  %10796 = vmatpush3.msra.mxu0 %v12998_v53 }
 0x309   :  { %10854 = vmatpush3.msra.mxu1 %v12931_v30  ;;  %10798 = vmatmul.mubr.f32.vlgmr.msra.gmra.mxu0 %v12851_v12 }
 0x30a   :  { %10825 = vmatprep.subr.mxu0 %v12907_v24  ;;  %10855 = vmatprep.subr.mxu1 %v12940_v40 }
 0x30b   :  { %10800 = vmatprep.mubr.f32.mxu0 %v12863_v17  ;;  %10826 = vmatpush3.msra.mxu0 %v12907_v24 }
 0x30c   :  { %10856 = vmatpush3.msra.mxu1 %v12940_v40  ;;  %10827 = vmatprep.subr.mxu0 %v12921_v27 }
 0x30d   :  { %10857 = vmatprep.subr.mxu1 %v12965_v36  ;;  %10828 = vmatpush3.msra.mxu0 %v12921_v27 }
 0x30e   :  { %10858 = vmatpush3.msra.mxu1 %v12965_v36  ;;  %10801 = vmatmul.mubr.f32.gmra.mxu0 %v12869_v6 }
 0x30f   :  { %10829 = vmatprep.subr.mxu0 %v12936_v8  ;;  %10859 = vmatprep.subr.mxu1 %v12976_v35 }
 0x310   :  { %10830 = vmatpush3.msra.mxu0 %v12936_v8  ;;  %10841 = vmatprep.mubr.f32.mxu0 %v12812_v5 }
 0x311   :  { %10860 = vmatpush3.msra.mxu1 %v12976_v35  ;;  %10831 = vmatprep.subr.mxu0 %v12955_v16 }
 0x312   :  { %10861 = vmatprep.subr.mxu1 %v12998_v53  ;;  %10832 = vmatpush3.msra.mxu0 %v12955_v16 }
 0x313   :  { %10862 = vmatpush3.msra.mxu1 %v12998_v53  ;;  %10833 = vmatprep.subr.mxu0 %v12970_v13 }
 0x314   :  { %10864 = vmatmul.mubr.f32.vlgmr.msra.gmra.mxu1 %v12809_v32  ;;  %10891 = vmatprep.subr.mxu1 %v12888_v54  ;;  %v3510_v32 = vld [vmem:[%s14761_s7 + $0x10] sm:$0xff] }
 0x315   :  { %10834 = vmatpush3.msra.mxu0 %v12970_v13  ;;  %10866 = vmatprep.mubr.f32.mxu1 %v12848_v4 }
 0x316   :  { %10892 = vmatpush3.msra.mxu1 %v12888_v54  ;;  %10835 = vmatprep.subr.mxu0 %v12991_v46 }
 0x317   :  { %10893 = vmatprep.subr.mxu1 %v12902_v50  ;;  %10836 = vmatpush3.msra.mxu0 %v12991_v46 }
 0x318   :  { %10894 = vmatpush3.msra.mxu1 %v12902_v50  ;;  %10837 = vmatprep.subr.mxu0 %v13003_v33 }
 0x319   :  { %10867 = vmatmul.mubr.f32.gmra.mxu1 %v12839_v1  ;;  %10895 = vmatprep.subr.mxu1 %v12911_v59 }
 0x31a   :  { %10838 = vmatpush3.msra.mxu0 %v13003_v33  ;;  %10896 = vmatpush3.msra.mxu1 %v12911_v59 }
 0x31b   :  { %10907 = vmatprep.mubr.f32.mxu1 %v12805_v21  ;;  %10839 = vmatprep.subr.mxu0 %v13017_v18 }
 0x31c   :  { %10897 = vmatprep.subr.mxu1 %v12931_v30  ;;  %10840 = vmatpush3.msra.mxu0 %v13017_v18 }
 0x31d   :  { %10898 = vmatpush3.msra.mxu1 %v12931_v30  ;;  %10842 = vmatmul.mubr.f32.vlgmr.msra.gmra.mxu0 %v12803_v31  ;;  %v3511_v31 = vld [vmem:[%s14761_s7 + $0x18] sm:$0xff] }
 0x31e   :  { %10869 = vmatprep.subr.mxu0 %v12929_v61  ;;  %10899 = vmatprep.subr.mxu1 %v12940_v40 }
 0x31f   :  { %10844 = vmatprep.mubr.f32.mxu0 %v12832_v60  ;;  %10870 = vmatpush3.msra.mxu0 %v12929_v61  ;;  %v3508_v60 = vld [vmem:[%s14761_s7] sm:$0xff] }
 0x320   :  { %10900 = vmatpush3.msra.mxu1 %v12940_v40  ;;  %10871 = vmatprep.subr.mxu0 %v12948_v57  ;;  %v13183_v12 = vand.u32 4294901760, %v3508_v60 }
 0x321   :  { %10901 = vmatprep.subr.mxu1 %v12965_v36  ;;  %10872 = vmatpush3.msra.mxu0 %v12948_v57 }
 0x322   :  { %10902 = vmatpush3.msra.mxu1 %v12965_v36  ;;  %10845 = vmatmul.mubr.f32.gmra.mxu0 %v12820_v51  ;;  %v13155_v51 = vand.u32 4294901760, %v3510_v32  ;;  %v13193_v50 = vsub.f32 %v3508_v60, %v13183_v12 }
 0x323   :  { %10873 = vmatprep.subr.mxu0 %v12963_v37  ;;  %10903 = vmatprep.subr.mxu1 %v12976_v35 }
 0x324   :  { %10874 = vmatpush3.msra.mxu0 %v12963_v37  ;;  %10885 = vmatprep.mubr.f32.mxu0 %v12805_v21  ;;  %v13147_v21 = vand.u32 4294901760, %v3511_v31  ;;  %v13200_v27 = vand.u32 4294901760, %v13193_v50 }
 0x325   :  { %10904 = vmatpush3.msra.mxu1 %v12976_v35  ;;  %10875 = vmatprep.subr.mxu0 %v12984_v26 }
 0x326   :  { %10905 = vmatprep.subr.mxu1 %v12998_v53  ;;  %10876 = vmatpush3.msra.mxu0 %v12984_v26  ;;  %v13153_v5 = vsub.f32 %v3511_v31, %v13147_v21  ;;  %14875 = vst [vmem:[#allocation13_spill] sm:$0xff] %v13200_v27  ;;  %v3682_v30 = vsub.f32 %v13193_v50, %v13200_v27 }
 0x327   :  { %10906 = vmatpush3.msra.mxu1 %v12998_v53  ;;  %10877 = vmatprep.subr.mxu0 %v12996_v49 }
 0x328   :  { %10908 = vmatmul.mubr.f32.vlgmr.msra.gmra.mxu1 %v12799_v38  ;;  %10878 = vmatpush3.msra.mxu0 %v12996_v49  ;;  %v3683_v8 = vand.u32 4294901760, %v3682_v30 }
 0x329   :  { %10910 = vmatprep.mubr.f32.mxu1 %v12822_v42  ;;  %10879 = vmatprep.subr.mxu0 %v13011_v52 }
 0x32a   :  { %10880 = vmatpush3.msra.mxu0 %v13011_v52 }
 0x32b   :  { %10881 = vmatprep.subr.mxu0 %v13021_v25 }
 0x32c   :  { %10911 = vmatmul.mubr.f32.gmra.mxu1 %v12814_v9  ;;  %10882 = vmatpush3.msra.mxu0 %v13021_v25 }
 0x32d   :  { %10883 = vmatprep.subr.mxu0 %v13029_v29 }
 0x32e   :  { %10884 = vmatpush3.msra.mxu0 %v13029_v29 }
 0x32f   :  { %10886 = vmatmul.mubr.f32.vlgmr.msra.gmra.mxu0 %v12799_v38  ;;  %10913 = vmatprep.subr.mxu0 %v13147_v21  ;;  %v3509_v38 = vld [vmem:[%s14761_s7 + $0x8] sm:$0xff] }
 0x330   :  { %10888 = vmatprep.mubr.f32.mxu0 %v12822_v42  ;;  %10914 = vmatpush3.msra.mxu0 %v13147_v21  ;;  %v13166_v42 = vsub.f32 %v3510_v32, %v13155_v51  ;;  %v13168_v45 = vand.u32 4294901760, %v3509_v38 }
 0x331   :  { %10915 = vmatprep.subr.mxu0 %v13155_v51 }
 0x332   :  { %10916 = vmatpush3.msra.mxu0 %v13155_v51  ;;  %v13178_v10 = vand.u32 4294901760, %v13166_v42  ;;  %v13181_v4 = vsub.f32 %v3509_v38, %v13168_v45 }
 0x333   :  { %10889 = vmatmul.mubr.f32.gmra.mxu0 %v12814_v9  ;;  %v13163_v9 = vand.u32 4294901760, %v13153_v5  ;;  %10917 = vmatprep.subr.mxu0 %v13168_v45 }
 0x334   :  { %14873 = vst [vmem:[#allocation10_spill] sm:$0xff] %v13178_v10  ;;  %10918 = vmatpush3.msra.mxu0 %v13168_v45  ;;  %v3668_v6 = vsub.f32 %v13166_v42, %v13178_v10  ;;  %v13190_v54 = vand.u32 4294901760, %v13181_v4 }
 0x335   :  { %14872 = vst [vmem:[#allocation4_spill] sm:$0xff] %v13163_v9  ;;  %v3661_v1 = vsub.f32 %v13153_v5, %v13163_v9  ;;  %10919 = vmatprep.subr.mxu0 %v13183_v12 }
 0x336   :  { %14874 = vst [vmem:[#allocation6_spill] sm:$0xff] %v13190_v54  ;;  %10920 = vmatpush3.msra.mxu0 %v13183_v12  ;;  %v3669_v24 = vand.u32 4294901760, %v3668_v6  ;;  %v3675_v59 = vsub.f32 %v13181_v4, %v13190_v54 }
 0x337   :  { %v3662_v17 = vand.u32 4294901760, %v3661_v1  ;;  %10941 = vmatprep.subr.mxu0 %v13153_v5 }
 0x338   :  { %v3676_v61 = vand.u32 4294901760, %v3675_v59 }
 0x339   :  { %10927 = vmatprep.subr.mxu1 %v3662_v17 }
 0x33a   :  { %10928 = vmatpush3.msra.mxu1 %v3662_v17 }
 0x33b   :  { %10929 = vmatprep.subr.mxu1 %v3669_v24 }
 0x33c   :  { %10930 = vmatpush3.msra.mxu1 %v3669_v24 }
 0x33d   :  { %10931 = vmatprep.subr.mxu1 %v3676_v61 }
 0x33e   :  { %10932 = vmatpush3.msra.mxu1 %v3676_v61 }
 0x33f   :  { %10933 = vmatprep.subr.mxu1 %v3683_v8 }
 0x340   :  { %10934 = vmatpush3.msra.mxu1 %v3683_v8 }
 0x341   :  { %10955 = vmatprep.subr.mxu1 %v13147_v21 }
 0x386   :  { %v10689_v40 = vpop.f32.mrf.mxu1 }
 0x388   :  { %v2380_v63 = vpop.f32.mrf.mxu1 }
 0x38a   :  { %v10692_v28 = vpop.f32.mrf.mxu1 }
 0x38c   :  { %v2392_v36 = vpop.f32.mrf.mxu1 }
 0x38e   :  { %v10667_v57 = vpop.f32.mrf.mxu0 }
 0x38f   :  { %v2387_v48 = vadd.f32 %v10689_v40, %v10667_v57 }
 0x390   :  { %v2239_v16 = vpop.f32.mrf.mxu0 }
 0x391   :  { %v2381_v7 = vadd.f32 %v2380_v63, %v2239_v16 }
 0x393   :  { %v10670_v37 = vpop.f32.mrf.mxu0 }
 0x394   :  { %v2399_v32 = vadd.f32 %v10692_v28, %v10670_v37 }
 0x395   :  { %v2259_v34 = vpop.f32.mrf.mxu0 }
 0x396   :  { %v2393_v27 = vadd.f32 %v2392_v36, %v2259_v34 }
 0x398   :  { %v10733_v13 = vpop.f32.mrf.mxu1 }
 0x39a   :  { %v2588_v35 = vpop.f32.mrf.mxu1 }
 0x39d   :  { %v10736_v39 = vpop.f32.mrf.mxu1 }
 0x39f   :  { %v2604_v41 = vpop.f32.mrf.mxu1 }
 0x3a1   :  { %v10711_v22 = vpop.f32.mrf.mxu0 }
 0x3a2   :  { %v2494_v56 = vadd.f32 %v10711_v22, %v2387_v48 }
 0x3a3   :  { %v2486_v47 = vpop.f32.mrf.mxu0 }
 0x3a4   :  { %v2487_v38 = vadd.f32 %v2486_v47, %v2381_v7  ;;  %v2597_v59 = vadd.f32 %v10733_v13, %v2494_v56 }
 0x3a6   :  { %v10714_v26 = vpop.f32.mrf.mxu0  ;;  %v2589_v54 = vadd.f32 %v2588_v35, %v2487_v38 }
 0x3a7   :  { %v2508_v24 = vadd.f32 %v10714_v26, %v2399_v32 }
 0x3a8   :  { %v2500_v46 = vpop.f32.mrf.mxu0 }
 0x3a9   :  { %v2501_v16 = vadd.f32 %v2500_v46, %v2393_v27  ;;  %v2613_v28 = vadd.f32 %v10736_v39, %v2508_v24 }
 0x3ab   :  { %v2605_v35 = vadd.f32 %v2604_v41, %v2501_v16 }
 0x3ac   :  { %v10777_v43 = vpop.f32.mrf.mxu1 }
 0x3ae   :  { %v2804_v53 = vpop.f32.mrf.mxu1 }
 0x3b1   :  { %v10780_v15 = vpop.f32.mrf.mxu1 }
 0x3b3   :  { %v13206_v14 = vpop.f32.mrf.mxu1 }
 0x3b5   :  { %v10755_v49 = vpop.f32.mrf.mxu0 }
 0x3b6   :  { %v2714_v9 = vadd.f32 %v10755_v49, %v2597_v59 }
 0x3b7   :  { %v2707_v62 = vpop.f32.mrf.mxu0 }
 0x3b8   :  { %v2708_v22 = vadd.f32 %v2707_v62, %v2589_v54 }
 0x3ba   :  { %v10758_v33 = vpop.f32.mrf.mxu0  ;;  %v2805_v34 = vadd.f32 %v2804_v53, %v2708_v22 }
 0x3bb   :  { %v2726_v26 = vadd.f32 %v10758_v33, %v2613_v28  ;;  %v4139_v28 = vld [vmem:[%s14762_s8 + $0x8] sm:$0xff] }
 0x3bc   :  { %v2719_v52 = vpop.f32.mrf.mxu0 }
 0x3bd   :  { %v2823_v39 = vadd.f32 %v10780_v15, %v2726_v26  ;;  %v2720_v46 = vadd.f32 %v2719_v52, %v2605_v35  ;;  %v4138_v26 = vld [vmem:[%s14762_s8] sm:$0xff] }
 0x3c0   :  { %v10821_v20 = vpop.f32.mrf.mxu1 }
 0x3c2   :  { %v3054_v55 = vpop.f32.mrf.mxu1 }
 0x3c5   :  { %v10824_v25 = vpop.f32.mrf.mxu1 }
 0x3c7   :  { %v3066_v11 = vpop.f32.mrf.mxu1 }
 0x3c9   :  { %v10799_v19 = vpop.f32.mrf.mxu0 }
 0x3ca   :  { %v3061_v31 = vadd.f32 %v10821_v20, %v10799_v19 }
 0x3cb   :  { %v2913_v18 = vpop.f32.mrf.mxu0 }
 0x3cc   :  { %v3055_v1 = vadd.f32 %v3054_v55, %v2913_v18  ;;  %v2811_v18 = vadd.f32 %v10777_v43, %v2714_v9 }
 0x3ce   :  { %v10802_v0 = vpop.f32.mrf.mxu0 }
 0x3cf   :  { %v3073_v61 = vadd.f32 %v10824_v25, %v10802_v0 }
 0x3d0   :  { %v2933_v23 = vpop.f32.mrf.mxu0 }
 0x3d1   :  { %v3067_v40 = vadd.f32 %v3066_v11, %v2933_v23 }
 0x3d4   :  { %v10865_v3 = vpop.f32.mrf.mxu1 }
 0x3d6   :  { %v3262_v44 = vpop.f32.mrf.mxu1 }
 0x3d9   :  { %v10868_v58 = vpop.f32.mrf.mxu1 }
 0x3db   :  { %v3278_v17 = vpop.f32.mrf.mxu1 }
 0x3dd   :  { %v10843_v29 = vpop.f32.mrf.mxu0 }
 0x3de   :  { %v3168_v6 = vadd.f32 %v10843_v29, %v3061_v31 }
 0x3df   :  { %v3160_v2 = vpop.f32.mrf.mxu0 }
 0x3e0   :  { %v3161_v30 = vadd.f32 %v3160_v2, %v3055_v1  ;;  %v3271_v63 = vadd.f32 %v10865_v3, %v3168_v6  ;;  %v2817_v2 = vadd.f32 %v13206_v14, %v2720_v46  ;;  %v4141_v14 = vld [vmem:[%s14762_s8 + $0x18] sm:$0xff] }
 0x3e2   :  { %v10846_v60 = vpop.f32.mrf.mxu0  ;;  %v3263_v55 = vadd.f32 %v3262_v44, %v3161_v30  ;;  %v4140_v30 = vld [vmem:[%s14762_s8 + $0x10] sm:$0xff] }
 0x3e3   :  { %v3182_v57 = vadd.f32 %v10846_v60, %v3073_v61  ;;  %v13252_v61 = vand.u32 4294901760, %v4141_v14  ;;  %v13273_v22 = vand.u32 4294901760, %v4140_v30 }
 0x3e4   :  { %v3174_v10 = vpop.f32.mrf.mxu0 }
 0x3e5   :  { %v3175_v47 = vadd.f32 %v3174_v10, %v3067_v40  ;;  %v3287_v36 = vadd.f32 %v10868_v58, %v3182_v57 }
 0x3e7   :  { %v3279_v54 = vadd.f32 %v3278_v17, %v3175_v47  ;;  %v13282_v47 = vsub.f32 %v4141_v14, %v13252_v61 }
 0x3e8   :  { %v10909_v8 = vpop.f32.mrf.mxu1 }
 0x3ea   :  { %v3478_v20 = vpop.f32.mrf.mxu1 }
 0x3ec   :  { %v10912_v11 = vpop.f32.mrf.mxu1 }
 0x3ee   :  { %v3490_v9 = vpop.f32.mrf.mxu1 }
 0x3ef   :  { %v10887_v37 = vpop.f32.mrf.mxu0 }
 0x3f0   :  { %v3388_v19 = vadd.f32 %v10887_v37, %v3271_v63 }
 0x3f1   :  { %v3381_v13 = vpop.f32.mrf.mxu0 }
 0x3f2   :  { %v3485_v25 = vadd.f32 %v10909_v8, %v3388_v19  ;;  %v3382_v0 = vadd.f32 %v3381_v13, %v3263_v55  ;;  %v13293_v55 = vand.u32 4294901760, %v4139_v28 }
 0x3f3   :  { %v10890_v49 = vpop.f32.mrf.mxu0 }
 0x3f4   :  { %v3501_v23 = vmax.f32 %v2811_v18, %v3485_v25  ;;  %v3479_v3 = vadd.f32 %v3478_v20, %v3382_v0  ;;  %v3400_v27 = vadd.f32 %v10890_v49, %v3287_v36  ;;  %v13305_v25 = vsub.f32 %v4140_v30, %v13273_v22 }
 0x3f5   :  { %v3393_v10 = vpop.f32.mrf.mxu0  ;;  %v13310_v0 = vand.u32 4294901760, %v13282_v47  ;;  %v13321_v35 = vsub.f32 %v4139_v28, %v13293_v55 }
 0x3f6   :  { %v13208_v62 = vmax.f32 %v3501_v23, 0.0  ;;  %v3500_v29 = vmax.f32 %v2805_v34, %v3479_v3  ;;  %v3497_v33 = vadd.f32 %v10912_v11, %v3400_v27  ;;  %v3394_v44 = vadd.f32 %v3393_v10, %v3279_v54  ;;  %v14877_v54 = vld [vmem:[#allocation10_spill] sm:$0xff]  ;;  %v14879_v10 = vld [vmem:[#allocation13_spill] sm:$0xff] }
 0x3f7   :  { %v13316_v34 = vand.u32 4294901760, %v4138_v26  ;;  %v13342_v23 = vand.u32 4294901760, %v13321_v35 }
 0x3f8   :  { %v3516_v43 = vsel %vm61_vm0, %v13208_v62, 0  ;;  %v13212_v53 = vmax.f32 %v3500_v29, 0.0  ;;  %v3503_v41 = vmax.f32 %v2823_v39, %v3497_v33  ;;  %v3491_v58 = vadd.f32 %v3490_v9, %v3394_v44  ;;  %v14878_v39 = vld [vmem:[#allocation6_spill] sm:$0xff]  ;;  %v4756_v29 = vld [vmem:[%s14763_s9] sm:$0xff] }
 0x3f9   :  { %v13215_v48 = vand.u32 4294901760, %v3516_v43  ;;  %v13337_v11 = vsub.f32 %v4138_v26, %v13316_v34  ;;  %v4766_v33 = vsel %vm4764_vm4, %v4756_v29, 0 }
 0x3fa   :  { %v3513_v15 = vsel %vm61_vm0, %v13212_v53, 0  ;;  %v13219_v52 = vmax.f32 %v3503_v41, 0.0  ;;  %v3502_v31 = vmax.f32 %v2817_v2, %v3491_v58  ;;  %v13447_v44 = vand.u32 4294901760, %v4766_v33 }
 0x3fb   :  { %v13222_v7 = vsub.f32 %v3516_v43, %v13215_v48  ;;  %v13224_v56 = vand.u32 4294901760, %v3513_v15  ;;  %v13353_v3 = vand.u32 4294901760, %v13337_v11 }
 0x3fc   :  { %v3522_v32 = vsel %vm61_vm0, %v13219_v52, 0  ;;  %v13236_v1 = vmax.f32 %v3502_v31, 0.0  ;;  %v13450_v9 = vsub.f32 %v4766_v33, %v13447_v44 }
 0x3fd   :  { %v13232_v38 = vsub.f32 %v3513_v15, %v13224_v56  ;;  %v13234_v60 = vand.u32 4294901760, %v3522_v32  ;;  %10935 = vmatprep.mubr.f32.mxu1 %v13224_v56  ;;  %v13240_v17 = vand.u32 4294901760, %v13222_v7 }
 0x3fe   :  { %10936 = vmatmul.mubr.f32.vlgmr.msra.gmra.mxu1 %v13215_v48  ;;  %v3519_v24 = vsel %vm61_vm0, %v13236_v1, 0  ;;  %v4868_v43 = vand.u32 4294901760, %v13450_v9 }
 0x3ff   :  { %v13244_v6 = vsub.f32 %v3522_v32, %v13234_v60  ;;  %10956 = vmatpush3.msra.mxu1 %v13147_v21  ;;  %v13250_v59 = vand.u32 4294901760, %v13232_v38  ;;  %v13257_v8 = vand.u32 4294901760, %v3519_v24  ;;  %v3606_v40 = vsub.f32 %v13222_v7, %v13240_v17 }
 0x400   :  { %10957 = vmatprep.subr.mxu1 %v13155_v51  ;;  %v4869_v41 = vsub.f32 %v13450_v9, %v4868_v43 }
 0x401   :  { %10958 = vmatpush3.msra.mxu1 %v13155_v51  ;;  %v3596_v57 = vsub.f32 %v13232_v38, %v13250_v59  ;;  %v13266_v63 = vsub.f32 %v3519_v24, %v13257_v8  ;;  %10938 = vmatprep.mubr.f32.mxu1 %v13257_v8  ;;  %v13271_v16 = vand.u32 4294901760, %v13244_v6  ;;  %v13286_v20 = vand.u32 4294901760, %v3606_v40 }
 0x402   :  { %10959 = vmatprep.subr.mxu1 %v13168_v45  ;;  %10939 = vmatmul.mubr.f32.gmra.mxu1 %v13234_v60  ;;  %v4870_v2 = vand.u32 4294901760, %v4869_v41 }
 0x403   :  { %v13279_v37 = vand.u32 4294901760, %v3596_v57  ;;  %10960 = vmatpush3.msra.mxu1 %v13168_v45  ;;  %10963 = vmatprep.mubr.f32.mxu1 %v13250_v59  ;;  %v13289_v19 = vand.u32 4294901760, %v13266_v63  ;;  %v3626_v18 = vsub.f32 %v13244_v6, %v13271_v16 }
 0x404   :  { %10961 = vmatprep.subr.mxu1 %v13183_v12 }
 0x405   :  { %10921 = vmatprep.mubr.f32.mxu0 %v13279_v37  ;;  %10962 = vmatpush3.msra.mxu1 %v13183_v12  ;;  %v3616_v13 = vsub.f32 %v13266_v63, %v13289_v19  ;;  %v13325_v49 = vand.u32 4294901760, %v3626_v18 }
 0x406   :  { %10922 = vmatmul.mubr.f32.vlgmr.msra.gmra.mxu0 %v13286_v20  ;;  %10964 = vmatmul.mubr.f32.vlgmr.msra.gmra.mxu1 %v13240_v17 }
 0x407   :  { %10983 = vmatprep.subr.mxu1 %v13147_v21  ;;  %10942 = vmatpush3.msra.mxu0 %v13153_v5  ;;  %v13314_v36 = vand.u32 4294901760, %v3616_v13  ;;  %v13328_v5 = vand.u32 4294901760, %v13305_v25 }
 0x408   :  { %10966 = vmatprep.mubr.f32.mxu1 %v13289_v19  ;;  %10984 = vmatpush3.msra.mxu1 %v13147_v21  ;;  %v4279_v21 = vsub.f32 %v13282_v47, %v13310_v0 }
 0x409   :  { %10943 = vmatprep.subr.mxu0 %v13166_v42  ;;  %10985 = vmatprep.subr.mxu1 %v13155_v51 }
 0x40a   :  { %10924 = vmatprep.mubr.f32.mxu0 %v13314_v36  ;;  %10944 = vmatpush3.msra.mxu0 %v13166_v42  ;;  %v4280_v42 = vand.u32 4294901760, %v4279_v21 }
 0x40b   :  { %10986 = vmatpush3.msra.mxu1 %v13155_v51  ;;  %10925 = vmatmul.mubr.f32.gmra.mxu0 %v13325_v49  ;;  %v4286_v51 = vsub.f32 %v13305_v25, %v13328_v5 }
 0x40c   :  { %10945 = vmatprep.subr.mxu0 %v13181_v4  ;;  %10967 = vmatmul.mubr.f32.gmra.mxu1 %v13271_v16 }
 0x40d   :  { %10987 = vmatprep.subr.mxu1 %v13168_v45  ;;  %10946 = vmatpush3.msra.mxu0 %v13181_v4  ;;  %v4293_v4 = vsub.f32 %v13321_v35, %v13342_v23  ;;  %v4287_v27 = vand.u32 4294901760, %v4286_v51 }
 0x40e   :  { %10949 = vmatprep.mubr.f32.mxu0 %v13232_v38  ;;  %10988 = vmatpush3.msra.mxu1 %v13168_v45  ;;  %v14876_v45 = vld [vmem:[#allocation4_spill] sm:$0xff] }
 0x40f   :  { %10991 = vmatprep.mubr.f32.mxu1 %v13224_v56  ;;  %10947 = vmatprep.subr.mxu0 %v13193_v50 }
 0x410   :  { %10989 = vmatprep.subr.mxu1 %v13183_v12  ;;  %10948 = vmatpush3.msra.mxu0 %v13193_v50  ;;  %v4300_v50 = vsub.f32 %v13337_v11, %v13353_v3 }
 0x411   :  { %10990 = vmatpush3.msra.mxu1 %v13183_v12  ;;  %10950 = vmatmul.mubr.f32.vlgmr.msra.gmra.mxu0 %v13222_v7  ;;  %v4294_v12 = vand.u32 4294901760, %v4293_v4 }
 0x412   :  { %10969 = vmatprep.subr.mxu0 %v14876_v45  ;;  %10992 = vmatmul.mubr.f32.vlgmr.msra.gmra.mxu1 %v13215_v48  ;;  %v4301_v46 = vand.u32 4294901760, %v4300_v50 }
 0x413   :  { %11011 = vmatprep.subr.mxu1 %v4280_v42  ;;  %10952 = vmatprep.mubr.f32.mxu0 %v13266_v63 }
 0x414   :  { %10970 = vmatpush3.msra.mxu0 %v14876_v45  ;;  %10994 = vmatprep.mubr.f32.mxu1 %v13257_v8 }
 0x415   :  { %11012 = vmatpush3.msra.mxu1 %v4280_v42  ;;  %10971 = vmatprep.subr.mxu0 %v14877_v54 }
 0x416   :  { %11013 = vmatprep.subr.mxu1 %v4287_v27  ;;  %10972 = vmatpush3.msra.mxu0 %v14877_v54 }
 0x417   :  { %11014 = vmatpush3.msra.mxu1 %v4287_v27  ;;  %10953 = vmatmul.mubr.f32.gmra.mxu0 %v13244_v6 }
 0x418   :  { %10973 = vmatprep.subr.mxu0 %v14878_v39  ;;  %10995 = vmatmul.mubr.f32.gmra.mxu1 %v13234_v60 }
 0x419   :  { %11015 = vmatprep.subr.mxu1 %v4294_v12  ;;  %10974 = vmatpush3.msra.mxu0 %v14878_v39 }
 0x41a   :  { %10977 = vmatprep.mubr.f32.mxu0 %v13224_v56  ;;  %11016 = vmatpush3.msra.mxu1 %v4294_v12 }
 0x41b   :  { %11019 = vmatprep.mubr.f32.mxu1 %v13224_v56  ;;  %10975 = vmatprep.subr.mxu0 %v14879_v10 }
 0x41c   :  { %11017 = vmatprep.subr.mxu1 %v4301_v46  ;;  %10976 = vmatpush3.msra.mxu0 %v14879_v10 }
 0x41d   :  { %11018 = vmatpush3.msra.mxu1 %v4301_v46  ;;  %10978 = vmatmul.mubr.f32.vlgmr.msra.gmra.mxu0 %v13215_v48 }
 0x41e   :  { %10997 = vmatprep.subr.mxu0 %v13252_v61  ;;  %11020 = vmatmul.mubr.f32.vlgmr.msra.gmra.mxu1 %v13215_v48 }
 0x41f   :  { %11039 = vmatprep.subr.mxu1 %v13252_v61  ;;  %10980 = vmatprep.mubr.f32.mxu0 %v13257_v8 }
 0x420   :  { %10998 = vmatpush3.msra.mxu0 %v13252_v61  ;;  %11022 = vmatprep.mubr.f32.mxu1 %v13257_v8 }
 0x421   :  { %11040 = vmatpush3.msra.mxu1 %v13252_v61  ;;  %10999 = vmatprep.subr.mxu0 %v13273_v22 }
 0x422   :  { %11041 = vmatprep.subr.mxu1 %v13273_v22  ;;  %11000 = vmatpush3.msra.mxu0 %v13273_v22 }
 0x423   :  { %11042 = vmatpush3.msra.mxu1 %v13273_v22  ;;  %10981 = vmatmul.mubr.f32.gmra.mxu0 %v13234_v60 }
 0x424   :  { %11001 = vmatprep.subr.mxu0 %v13293_v55  ;;  %11023 = vmatmul.mubr.f32.gmra.mxu1 %v13234_v60 }
 0x425   :  { %11043 = vmatprep.subr.mxu1 %v13293_v55  ;;  %11002 = vmatpush3.msra.mxu0 %v13293_v55 }
 0x426   :  { %11005 = vmatprep.mubr.f32.mxu0 %v13279_v37  ;;  %11044 = vmatpush3.msra.mxu1 %v13293_v55 }
 0x427   :  { %11047 = vmatprep.mubr.f32.mxu1 %v13250_v59  ;;  %11003 = vmatprep.subr.mxu0 %v13316_v34 }
 0x428   :  { %11045 = vmatprep.subr.mxu1 %v13316_v34  ;;  %11004 = vmatpush3.msra.mxu0 %v13316_v34 }
 0x429   :  { %11046 = vmatpush3.msra.mxu1 %v13316_v34  ;;  %11006 = vmatmul.mubr.f32.vlgmr.msra.gmra.mxu0 %v13286_v20 }
 0x42a   :  { %11025 = vmatprep.subr.mxu0 %v13282_v47  ;;  %11048 = vmatmul.mubr.f32.vlgmr.msra.gmra.mxu1 %v13240_v17 }
 0x42b   :  { %11067 = vmatprep.subr.mxu1 %v13252_v61  ;;  %11008 = vmatprep.mubr.f32.mxu0 %v13314_v36 }
 0x42c   :  { %11026 = vmatpush3.msra.mxu0 %v13282_v47  ;;  %11050 = vmatprep.mubr.f32.mxu1 %v13289_v19 }
 0x42d   :  { %11068 = vmatpush3.msra.mxu1 %v13252_v61  ;;  %11027 = vmatprep.subr.mxu0 %v13305_v25 }
 0x42e   :  { %11069 = vmatprep.subr.mxu1 %v13273_v22  ;;  %11028 = vmatpush3.msra.mxu0 %v13305_v25 }
 0x42f   :  { %11070 = vmatpush3.msra.mxu1 %v13273_v22  ;;  %11009 = vmatmul.mubr.f32.gmra.mxu0 %v13325_v49 }
 0x430   :  { %11029 = vmatprep.subr.mxu0 %v13321_v35  ;;  %11051 = vmatmul.mubr.f32.gmra.mxu1 %v13271_v16 }
 0x431   :  { %11071 = vmatprep.subr.mxu1 %v13293_v55  ;;  %11030 = vmatpush3.msra.mxu0 %v13321_v35 }
 0x432   :  { %11033 = vmatprep.mubr.f32.mxu0 %v13232_v38  ;;  %11072 = vmatpush3.msra.mxu1 %v13293_v55 }
 0x433   :  { %11075 = vmatprep.mubr.f32.mxu1 %v13224_v56  ;;  %11031 = vmatprep.subr.mxu0 %v13337_v11 }
 0x434   :  { %11073 = vmatprep.subr.mxu1 %v13316_v34  ;;  %11032 = vmatpush3.msra.mxu0 %v13337_v11 }
 0x435   :  { %11074 = vmatpush3.msra.mxu1 %v13316_v34  ;;  %11034 = vmatmul.mubr.f32.vlgmr.msra.gmra.mxu0 %v13222_v7 }
 0x436   :  { %11053 = vmatprep.subr.mxu0 %v13310_v0  ;;  %11076 = vmatmul.mubr.f32.vlgmr.msra.gmra.mxu1 %v13215_v48 }
 0x437   :  { %11036 = vmatprep.mubr.f32.mxu0 %v13266_v63  ;;  %11054 = vmatpush3.msra.mxu0 %v13310_v0 }
 0x438   :  { %11078 = vmatprep.mubr.f32.mxu1 %v13257_v8  ;;  %11055 = vmatprep.subr.mxu0 %v13328_v5 }
 0x439   :  { %11056 = vmatpush3.msra.mxu0 %v13328_v5 }
 0x43a   :  { %11037 = vmatmul.mubr.f32.gmra.mxu0 %v13244_v6  ;;  %11057 = vmatprep.subr.mxu0 %v13342_v23 }
 0x43b   :  { %11079 = vmatmul.mubr.f32.gmra.mxu1 %v13234_v60  ;;  %11058 = vmatpush3.msra.mxu0 %v13342_v23 }
 0x43c   :  { %11061 = vmatprep.mubr.f32.mxu0 %v13224_v56  ;;  %11059 = vmatprep.subr.mxu0 %v13353_v3 }
 0x43d   :  { %11060 = vmatpush3.msra.mxu0 %v13353_v3  ;;  %11141 = vmatprep.mubr.f32.mxu1 %v13447_v44 }
 0x43e   :  { %11062 = vmatmul.mubr.f32.vlgmr.msra.gmra.mxu0 %v13215_v48 }
 0x43f   :  { %11064 = vmatprep.mubr.f32.mxu0 %v13257_v8 }
 0x442   :  { %11065 = vmatmul.mubr.f32.gmra.mxu0 %v13234_v60 }
 0x443   :  { %11105 = vmatprep.mubr.f32.mxu0 %v4870_v2 }
 0x4be   :  { %v10937_v48 = vpop.f32.mrf.mxu1 }
 0x4c0   :  { %v13457_v58 = vpop.f32.mrf.mxu1 }
 0x4c2   :  { %v10940_v15 = vpop.f32.mrf.mxu1 }
 0x4c4   :  { %v3732_v7 = vpop.f32.mrf.mxu1 }
 0x4c6   :  { %v10923_v56 = vpop.f32.mrf.mxu0  ;;  %v13459_v31 = vpop.f32.mrf.mxu1 }
 0x4c8   :  { %v13461_v32 = vpop.f32.mrf.mxu0  ;;  %v13463_v14 = vpop.f32.mrf.mxu1 }
 0x4cb   :  { %v10926_v38 = vpop.f32.mrf.mxu0 }
 0x4cc   :  { %v13465_v60 = vpop.f32.mrf.mxu1  ;;  %v3739_v46 = vadd.f32 %v10940_v15, %v10926_v38  ;;  %v3721_v15 = vadd.f32 %v13457_v58, %v13461_v32 }
 0x4cd   :  { %v3619_v17 = vpop.f32.mrf.mxu0 }
 0x4ce   :  { %v13467_v6 = vpop.f32.mrf.mxu1  ;;  %v3733_v41 = vadd.f32 %v3732_v7, %v3619_v17 }
 0x4d1   :  { %v10951_v24 = vpop.f32.mrf.mxu0 }
 0x4d2   :  { %v13469_v59 = vpop.f32.mrf.mxu1 }
 0x4d3   :  { %v13471_v61 = vpop.f32.mrf.mxu0 }
 0x4d4   :  { %v13473_v30 = vpop.f32.mrf.mxu1 }
 0x4d7   :  { %v10954_v8 = vpop.f32.mrf.mxu0 }
 0x4d8   :  { %v13475_v40 = vpop.f32.mrf.mxu1 }
 0x4d9   :  { %v3832_v57 = vpop.f32.mrf.mxu0 }
 0x4da   :  { %v13477_v63 = vpop.f32.mrf.mxu1 }
 0x4dd   :  { %v13479_v16 = vpop.f32.mrf.mxu0 }
 0x4de   :  { %v11021_v22 = vpop.f32.mrf.mxu1 }
 0x4df   :  { %v13481_v28 = vpop.f32.mrf.mxu0 }
 0x4e0   :  { %v4338_v37 = vpop.f32.mrf.mxu1 }
 0x4e3   :  { %v10982_v47 = vpop.f32.mrf.mxu0 }
 0x4e4   :  { %v11024_v20 = vpop.f32.mrf.mxu1 }
 0x4e5   :  { %v4035_v19 = vpop.f32.mrf.mxu0 }
 0x4e6   :  { %v4350_v55 = vpop.f32.mrf.mxu1 }
 0x4e9   :  { %v11007_v26 = vpop.f32.mrf.mxu0 }
 0x4ea   :  { %v11049_v13 = vpop.f32.mrf.mxu1  ;;  %v4345_v5 = vadd.f32 %v11021_v22, %v11007_v26  ;;  %v3840_v22 = vadd.f32 %v10954_v8, %v3739_v46 }
 0x4eb   :  { %v4217_v18 = vpop.f32.mrf.mxu0 }
 0x4ec   :  { %v4534_v25 = vpop.f32.mrf.mxu1  ;;  %v4339_v11 = vadd.f32 %v4338_v37, %v4217_v18  ;;  %v3941_v7 = vadd.f32 %v13465_v60, %v3840_v22  ;;  %v4757_v60 = vld [vmem:[%s14763_s9 + $0x8] sm:$0xff] }
 0x4ef   :  { %v11010_v0 = vpop.f32.mrf.mxu0 }
 0x4f0   :  { %v11052_v34 = vpop.f32.mrf.mxu1  ;;  %v4357_v3 = vadd.f32 %v11024_v20, %v11010_v0 }
 0x4f1   :  { %v4237_v36 = vpop.f32.mrf.mxu0 }
 0x4f2   :  { %v4550_v49 = vpop.f32.mrf.mxu1  ;;  %v4351_v27 = vadd.f32 %v4350_v55, %v4237_v36 }
 0x4f5   :  { %v11035_v35 = vpop.f32.mrf.mxu0 }
 0x4f6   :  { %v4444_v23 = vadd.f32 %v11035_v35, %v4345_v5  ;;  %v11077_v51 = vpop.f32.mrf.mxu1  ;;  %v3727_v35 = vadd.f32 %v10937_v48, %v10923_v56  ;;  %v3833_v5 = vadd.f32 %v3832_v57, %v3733_v41  ;;  %v13491_v48 = vand.u32 4294901760, %v13219_v52 }
 0x4f7   :  { %v4436_v21 = vpop.f32.mrf.mxu0  ;;  %v3819_v56 = vadd.f32 %v13471_v61, %v3721_v15  ;;  %v4759_v15 = vld [vmem:[%s14763_s9 + $0x18] sm:$0xff] }
 0x4f8   :  { %v4437_v4 = vadd.f32 %v4436_v21, %v4339_v11  ;;  %v4543_v12 = vadd.f32 %v11049_v13, %v4444_v23  ;;  %v4734_v54 = vpop.f32.mrf.mxu1  ;;  %v3826_v38 = vadd.f32 %v10951_v24, %v3727_v35  ;;  %v3933_v57 = vadd.f32 %v13467_v6, %v3833_v5 }
 0x4f9   :  { %v13504_v24 = vand.u32 4294901760, %v13208_v62 }
 0x4fa   :  { %v11038_v42 = vpop.f32.mrf.mxu0  ;;  %v4535_v33 = vadd.f32 %v4534_v25, %v4437_v4  ;;  %v3925_v6 = vadd.f32 %v13459_v31, %v3826_v38  ;;  %v4036_v61 = vadd.f32 %v4035_v19, %v3933_v57  ;;  %v13521_v4 = vsub.f32 %v13219_v52, %v13491_v48 }
 0x4fb   :  { %v4458_v50 = vadd.f32 %v11038_v42, %v4357_v3  ;;  %v11080_v20 = vpop.f32.mrf.mxu1  ;;  %v4769_v31 = vsel %vm4764_vm4, %v4757_v60, 0  ;;  %v4775_v60 = vsel %vm4764_vm4, %v4759_v15, 0 }
 0x4fc   :  { %v4450_v45 = vpop.f32.mrf.mxu0 }
 0x4fd   :  { %v4451_v10 = vadd.f32 %v4450_v45, %v4351_v27  ;;  %v4559_v18 = vadd.f32 %v11052_v34, %v4458_v50  ;;  %v4746_v11 = vpop.f32.mrf.mxu1  ;;  %v4030_v45 = vadd.f32 %v13479_v16, %v3925_v6  ;;  %v3917_v27 = vadd.f32 %v13463_v14, %v3819_v56 }
 0x4fe   :  { %v11063_v39 = vpop.f32.mrf.mxu0  ;;  %v13539_v16 = vand.u32 4294901760, %v13212_v53 }
 0x4ff   :  { %v4648_v29 = vadd.f32 %v11063_v39, %v4543_v12  ;;  %v4551_v36 = vadd.f32 %v4550_v49, %v4451_v10  ;;  %v4042_v49 = vadd.f32 %v10982_v47, %v3941_v7 }
 0x500   :  { %v4641_v2 = vpop.f32.mrf.mxu0 }
 0x501   :  { %v4741_v26 = vadd.f32 %v11077_v51, %v4648_v29  ;;  %v4642_v37 = vadd.f32 %v4641_v2, %v4535_v33  ;;  %v13507_v51 = vand.u32 4294901760, %v13236_v1  ;;  %v4135_v19 = vadd.f32 %v13475_v40, %v4042_v49 }
 0x502   :  { %v11066_v0 = vpop.f32.mrf.mxu0  ;;  %v4024_v40 = vadd.f32 %v13481_v28, %v3917_v27  ;;  %v4123_v28 = vadd.f32 %v13469_v59, %v4030_v45  ;;  %v13566_v29 = vand.u32 4294901760, %v4769_v31  ;;  %v13577_v59 = vsub.f32 %v13212_v53, %v13539_v16 }
 0x503   :  { %v13483_v21 = vand.u32 4294901760, %v4741_v26  ;;  %v4735_v55 = vadd.f32 %v4734_v54, %v4642_v37  ;;  %v4660_v13 = vadd.f32 %v11066_v0, %v4559_v18  ;;  %v13543_v14 = vsub.f32 %v13236_v1, %v13507_v51 }
 0x504   :  { %v4653_v25 = vpop.f32.mrf.mxu0  ;;  %v4129_v54 = vadd.f32 %v13477_v63, %v4036_v61  ;;  %v13559_v1 = vsub.f32 %v13208_v62, %v13504_v24  ;;  %v13564_v63 = vand.u32 4294901760, %v13521_v4  ;;  %v13568_v33 = vand.u32 4294901760, %v4135_v19  ;;  %v4760_v61 = vld [vmem:[%s14763_s9 + $0x20] sm:$0xff] }
 0x505   :  { %v13488_v17 = vand.u32 4294901760, %v4735_v55  ;;  %v4753_v8 = vadd.f32 %v11080_v20, %v4660_v13  ;;  %v4654_v34 = vadd.f32 %v4653_v25, %v4551_v36  ;;  %v13496_v23 = vsub.f32 %v4741_v26, %v13483_v21  ;;  %v4758_v13 = vld [vmem:[%s14763_s9 + $0x10] sm:$0xff] }
 0x506   :  { %v13581_v22 = vand.u32 4294901760, %v13543_v14  ;;  %v4117_v26 = vadd.f32 %v13473_v30, %v4024_v40  ;;  %v13584_v37 = vand.u32 4294901760, %v4129_v54  ;;  %v13591_v53 = vand.u32 4294901760, %v13559_v1  ;;  %v4761_v40 = vld [vmem:[%s14763_s9 + $0x28] sm:$0xff] }
 0x507   :  { %v13498_v58 = vand.u32 4294901760, %v4753_v8  ;;  %v4747_v32 = vadd.f32 %v4746_v11, %v4654_v34  ;;  %v13511_v47 = vsub.f32 %v4735_v55, %v13488_v17  ;;  %v13536_v52 = vand.u32 4294901760, %v13496_v23 }
 0x508   :  { %v13594_v5 = vsub.f32 %v4769_v31, %v13566_v29  ;;  %v13596_v20 = vand.u32 4294901760, %v4123_v28  ;;  %v13599_v30 = vsub.f32 %v4135_v19, %v13568_v33  ;;  %v4986_v55 = vsub.f32 %v13521_v4, %v13564_v63 }
 0x509   :  { %v13514_v42 = vsub.f32 %v4753_v8, %v13498_v58  ;;  %v13516_v3 = vand.u32 4294901760, %v4747_v32  ;;  %11081 = vmatprep.subr.mxu0 %v13498_v58  ;;  %v13555_v10 = vand.u32 4294901760, %v13511_v47  ;;  %v4972_v62 = vsub.f32 %v13496_v23, %v13536_v52 }
 0x50a   :  { %11082 = vmatpush3.msra.mxu0 %v13498_v58  ;;  %v13609_v36 = vand.u32 4294901760, %v13577_v59  ;;  %v13614_v38 = vand.u32 4294901760, %v4117_v26  ;;  %v13617_v25 = vsub.f32 %v4129_v54, %v13584_v37  ;;  %v4993_v8 = vsub.f32 %v13543_v14, %v13581_v22 }
 0x50b   :  { %v13529_v50 = vsub.f32 %v4747_v32, %v13516_v3  ;;  %11083 = vmatprep.subr.mxu0 %v13516_v3  ;;  %v13533_v12 = vand.u32 4294901760, %v13514_v42  ;;  %v4979_v35 = vsub.f32 %v13511_v47, %v13555_v10  ;;  %v4973_v0 = vand.u32 4294901760, %v4972_v62 }
 0x50c   :  { %11084 = vmatpush3.msra.mxu0 %v13516_v3  ;;  %v5000_v34 = vsub.f32 %v13559_v1, %v13591_v53  ;;  %v4878_v56 = vand.u32 4294901760, %v13594_v5  ;;  %v4772_v57 = vsel %vm4764_vm4, %v4758_v13, 0  ;;  %v13628_v11 = vsub.f32 %v4123_v28, %v13596_v20 }
 0x50d   :  { %11085 = vmatprep.subr.mxu0 %v13483_v21  ;;  %v4958_v39 = vsub.f32 %v13514_v42, %v13533_v12  ;;  %v13552_v46 = vand.u32 4294901760, %v13529_v50  ;;  %v4980_v7 = vand.u32 4294901760, %v4979_v35  ;;  %v4987_v49 = vand.u32 4294901760, %v4986_v55 }
 0x50e   :  { %11086 = vmatpush3.msra.mxu0 %v13483_v21  ;;  %v13632_v32 = vand.u32 4294901760, %v13599_v30  ;;  %v5007_v6 = vsub.f32 %v13577_v59, %v13609_v36  ;;  %v13642_v45 = vsub.f32 %v4117_v26, %v13614_v38  ;;  %v4994_v27 = vand.u32 4294901760, %v4993_v8  ;;  %v4762_v8 = vld [vmem:[%s14763_s9 + $0x30] sm:$0xff] }
 0x50f   :  { %11087 = vmatprep.subr.mxu0 %v13488_v17  ;;  %v4959_v41 = vand.u32 4294901760, %v4958_v39  ;;  %v4965_v2 = vsub.f32 %v13529_v50, %v13552_v46  ;;  %v13646_v31 = vand.u32 4294901760, %v13617_v25  ;;  %v13648_v19 = vand.u32 4294901760, %v4772_v57 }
 0x510   :  { %11088 = vmatpush3.msra.mxu0 %v13488_v17  ;;  %v4879_v54 = vsub.f32 %v13594_v5, %v4878_v56  ;;  %v13657_v39 = vand.u32 4294901760, %v4775_v60  ;;  %v5001_v28 = vand.u32 4294901760, %v5000_v34  ;;  %v4778_v62 = vsel %vm4764_vm4, %v4760_v61, 0 }
 0x511   :  { %11089 = vmatprep.subr.mxu0 %v13491_v48  ;;  %11117 = vmatprep.subr.mxu1 %v4959_v41  ;;  %v4966_v18 = vand.u32 4294901760, %v4965_v2  ;;  %v13663_v2 = vand.u32 4294901760, %v13628_v11  ;;  %v4781_v26 = vsel %vm4764_vm4, %v4761_v40, 0  ;;  %v5021_v35 = vsub.f32 %v13617_v25, %v13646_v31 }
 0x512   :  { %11090 = vmatpush3.msra.mxu0 %v13491_v48  ;;  %11118 = vmatpush3.msra.mxu1 %v4959_v41  ;;  %v5014_v41 = vsub.f32 %v13599_v30, %v13632_v32  ;;  %v13675_v55 = vsub.f32 %v4772_v57, %v13648_v19  ;;  %v4880_v13 = vand.u32 4294901760, %v4879_v54  ;;  %v13679_v15 = vsub.f32 %v4775_v60, %v13657_v39  ;;  %v4763_v60 = vld [vmem:[%s14763_s9 + $0x38] sm:$0xff] }
 0x513   :  { %11091 = vmatprep.subr.mxu0 %v13507_v51  ;;  %11119 = vmatprep.subr.mxu1 %v4966_v18  ;;  %v5028_v57 = vsub.f32 %v13628_v11, %v13663_v2  ;;  %v4784_v40 = vsel %vm4764_vm4, %v4762_v8, 0 }
 0x514   :  { %11092 = vmatpush3.msra.mxu0 %v13507_v51  ;;  %11120 = vmatpush3.msra.mxu1 %v4966_v18  ;;  %v5008_v18 = vand.u32 4294901760, %v5007_v6  ;;  %v5015_v34 = vand.u32 4294901760, %v5014_v41  ;;  %v5022_v6 = vand.u32 4294901760, %v5021_v35  ;;  %v4898_v54 = vand.u32 4294901760, %v13679_v15 }
 0x515   :  { %11093 = vmatprep.subr.mxu0 %v13504_v24  ;;  %11121 = vmatprep.subr.mxu1 %v4973_v0  ;;  %v4787_v41 = vsel %vm4764_vm4, %v4763_v60, 0  ;;  %v13710_v8 = vand.u32 4294901760, %v4784_v40 }
 0x516   :  { %11094 = vmatpush3.msra.mxu0 %v13504_v24  ;;  %11122 = vmatpush3.msra.mxu1 %v4973_v0  ;;  %v13672_v0 = vand.u32 4294901760, %v13642_v45 }
 0x517   :  { %11095 = vmatprep.subr.mxu0 %v13539_v16  ;;  %11123 = vmatprep.subr.mxu1 %v4980_v7 }
 0x518   :  { %11096 = vmatpush3.msra.mxu0 %v13539_v16  ;;  %11124 = vmatpush3.msra.mxu1 %v4980_v7  ;;  %v13681_v7 = vand.u32 4294901760, %v4778_v62  ;;  %v5035_v61 = vsub.f32 %v13642_v45, %v13672_v0 }
 0x519   :  { %11097 = vmatprep.subr.mxu0 %v13568_v33  ;;  %11125 = vmatprep.subr.mxu1 %v4987_v49 }
 0x51a   :  { %11098 = vmatpush3.msra.mxu0 %v13568_v33  ;;  %11126 = vmatpush3.msra.mxu1 %v4987_v49  ;;  %v13689_v49 = vand.u32 4294901760, %v4781_v26 }
 0x51b   :  { %11099 = vmatprep.subr.mxu0 %v13584_v37  ;;  %11127 = vmatprep.subr.mxu1 %v4994_v27 }
 0x51c   :  { %11100 = vmatpush3.msra.mxu0 %v13584_v37  ;;  %11128 = vmatpush3.msra.mxu1 %v4994_v27  ;;  %v4888_v27 = vand.u32 4294901760, %v13675_v55  ;;  %v13707_v35 = vsub.f32 %v4781_v26, %v13689_v49 }
 0x51d   :  { %11101 = vmatprep.subr.mxu0 %v13596_v20  ;;  %11129 = vmatprep.subr.mxu1 %v5001_v28 }
 0x51e   :  { %11102 = vmatpush3.msra.mxu0 %v13596_v20  ;;  %11130 = vmatpush3.msra.mxu1 %v5001_v28  ;;  %v13702_v28 = vsub.f32 %v4778_v62, %v13681_v7  ;;  %v4889_v62 = vsub.f32 %v13675_v55, %v4888_v27 }
 0x51f   :  { %11103 = vmatprep.subr.mxu0 %v13614_v38  ;;  %11131 = vmatprep.subr.mxu1 %v5008_v18 }
 0x520   :  { %11104 = vmatpush3.msra.mxu0 %v13614_v38  ;;  %11132 = vmatpush3.msra.mxu1 %v5008_v18  ;;  %v5029_v18 = vand.u32 4294901760, %v5028_v57  ;;  %v4908_v26 = vand.u32 4294901760, %v13702_v28  ;;  %v13727_v57 = vsub.f32 %v4784_v40, %v13710_v8  ;;  %v4890_v60 = vand.u32 4294901760, %v4889_v62 }
 0x521   :  { %11133 = vmatprep.subr.mxu1 %v5015_v34  ;;  %11153 = vmatprep.subr.mxu0 %v13514_v42 }
 0x522   :  { %11106 = vmatmul.mubr.f32.vlgmr.msra.gmra.mxu0 %v4880_v13  ;;  %11134 = vmatpush3.msra.mxu1 %v5015_v34  ;;  %v5036_v13 = vand.u32 4294901760, %v5035_v61  ;;  %v13716_v34 = vand.u32 4294901760, %v4787_v41  ;;  %v4909_v61 = vsub.f32 %v13702_v28, %v4908_v26  ;;  %v4928_v40 = vand.u32 4294901760, %v13727_v57 }
 0x523   :  { %11154 = vmatpush3.msra.mxu0 %v13514_v42  ;;  %11135 = vmatprep.subr.mxu1 %v5022_v6  ;;  %v4899_v42 = vsub.f32 %v13679_v15, %v4898_v54 }
 0x524   :  { %11155 = vmatprep.subr.mxu0 %v13529_v50  ;;  %11136 = vmatpush3.msra.mxu1 %v5022_v6  ;;  %v13732_v6 = vsub.f32 %v4787_v41, %v13716_v34 }
 0x525   :  { %11156 = vmatpush3.msra.mxu0 %v13529_v50  ;;  %11137 = vmatprep.subr.mxu1 %v5029_v18  ;;  %v4918_v50 = vand.u32 4294901760, %v13707_v35 }
 0x526   :  { %11157 = vmatprep.subr.mxu0 %v13496_v23  ;;  %11138 = vmatpush3.msra.mxu1 %v5029_v18  ;;  %v4938_v41 = vand.u32 4294901760, %v13732_v6 }
 0x527   :  { %11158 = vmatpush3.msra.mxu0 %v13496_v23  ;;  %11139 = vmatprep.subr.mxu1 %v5036_v13  ;;  %v4900_v23 = vand.u32 4294901760, %v4899_v42 }
 0x528   :  { %11159 = vmatprep.subr.mxu0 %v13511_v47  ;;  %11140 = vmatpush3.msra.mxu1 %v5036_v13  ;;  %v4929_v13 = vsub.f32 %v13727_v57, %v4928_v40 }
 0x529   :  { %11160 = vmatpush3.msra.mxu0 %v13511_v47  ;;  %11142 = vmatmul.mubr.f32.vlgmr.msra.gmra.mxu1 %v13566_v29  ;;  %v4919_v47 = vsub.f32 %v13707_v35, %v4918_v50 }
 0x52a   :  { %11161 = vmatprep.subr.mxu0 %v13521_v4  ;;  %11189 = vmatprep.subr.mxu1 %v13498_v58 }
 0x52b   :  { %11162 = vmatpush3.msra.mxu0 %v13521_v4  ;;  %11190 = vmatpush3.msra.mxu1 %v13498_v58  ;;  %v4910_v4 = vand.u32 4294901760, %v4909_v61  ;;  %v4920_v18 = vand.u32 4294901760, %v4919_v47 }
 0x52c   :  { %11163 = vmatprep.subr.mxu0 %v13543_v14  ;;  %11191 = vmatprep.subr.mxu1 %v13516_v3 }
 0x52d   :  { %11108 = vmatprep.mubr.f32.mxu0 %v4890_v60  ;;  %11164 = vmatpush3.msra.mxu0 %v13543_v14  ;;  %v4939_v14 = vsub.f32 %v13732_v6, %v4938_v41 }
 0x52e   :  { %11192 = vmatpush3.msra.mxu1 %v13516_v3  ;;  %11109 = vmatmul.mubr.f32.gmra.mxu0 %v4900_v23 }
 0x52f   :  { %11165 = vmatprep.subr.mxu0 %v13559_v1  ;;  %11193 = vmatprep.subr.mxu1 %v13483_v21  ;;  %v4940_v62 = vand.u32 4294901760, %v4939_v14 }
 0x530   :  { %11166 = vmatpush3.msra.mxu0 %v13559_v1  ;;  %11194 = vmatpush3.msra.mxu1 %v13483_v21  ;;  %v4930_v1 = vand.u32 4294901760, %v4929_v13 }
 0x531   :  { %11167 = vmatprep.subr.mxu0 %v13577_v59  ;;  %11195 = vmatprep.subr.mxu1 %v13488_v17 }
 0x532   :  { %11111 = vmatprep.mubr.f32.mxu0 %v4910_v4  ;;  %11168 = vmatpush3.msra.mxu0 %v13577_v59 }
 0x533   :  { %11196 = vmatpush3.msra.mxu1 %v13488_v17  ;;  %11112 = vmatmul.mubr.f32.gmra.mxu0 %v4920_v18 }
 0x534   :  { %11169 = vmatprep.subr.mxu0 %v13599_v30  ;;  %11197 = vmatprep.subr.mxu1 %v13491_v48 }
 0x535   :  { %11144 = vmatprep.mubr.f32.mxu1 %v13648_v19  ;;  %11170 = vmatpush3.msra.mxu0 %v13599_v30 }
 0x536   :  { %11198 = vmatpush3.msra.mxu1 %v13491_v48  ;;  %11171 = vmatprep.subr.mxu0 %v13617_v25 }
 0x537   :  { %11145 = vmatmul.mubr.f32.gmra.mxu1 %v13657_v39  ;;  %11199 = vmatprep.subr.mxu1 %v13507_v51 }
 0x538   :  { %11114 = vmatprep.mubr.f32.mxu0 %v4930_v1  ;;  %11172 = vmatpush3.msra.mxu0 %v13617_v25 }
 0x539   :  { %11200 = vmatpush3.msra.mxu1 %v13507_v51  ;;  %11115 = vmatmul.mubr.f32.gmra.mxu0 %v4940_v62 }
 0x53a   :  { %11173 = vmatprep.subr.mxu0 %v13628_v11  ;;  %11201 = vmatprep.subr.mxu1 %v13504_v24 }
 0x53b   :  { %11147 = vmatprep.mubr.f32.mxu1 %v13681_v7  ;;  %11174 = vmatpush3.msra.mxu0 %v13628_v11 }
 0x53c   :  { %11202 = vmatpush3.msra.mxu1 %v13504_v24  ;;  %11175 = vmatprep.subr.mxu0 %v13642_v45 }
 0x53d   :  { %11148 = vmatmul.mubr.f32.gmra.mxu1 %v13689_v49  ;;  %11203 = vmatprep.subr.mxu1 %v13539_v16 }
 0x53e   :  { %11176 = vmatpush3.msra.mxu0 %v13642_v45  ;;  %11177 = vmatprep.mubr.f32.mxu0 %v13450_v9 }
 0x53f   :  { %11204 = vmatpush3.msra.mxu1 %v13539_v16  ;;  %11178 = vmatmul.mubr.f32.vlgmr.msra.gmra.mxu0 %v13594_v5 }
 0x540   :  { %11205 = vmatprep.subr.mxu1 %v13568_v33  ;;  %11225 = vmatprep.subr.mxu0 %v13533_v12 }
 0x541   :  { %11150 = vmatprep.mubr.f32.mxu1 %v13710_v8  ;;  %11206 = vmatpush3.msra.mxu1 %v13568_v33 }
 0x542   :  { %11226 = vmatpush3.msra.mxu0 %v13533_v12  ;;  %11151 = vmatmul.mubr.f32.gmra.mxu1 %v13716_v34 }
 0x543   :  { %11207 = vmatprep.subr.mxu1 %v13584_v37  ;;  %11227 = vmatprep.subr.mxu0 %v13552_v46 }
 0x544   :  { %11180 = vmatprep.mubr.f32.mxu0 %v13675_v55  ;;  %11208 = vmatpush3.msra.mxu1 %v13584_v37 }
 0x545   :  { %11228 = vmatpush3.msra.mxu0 %v13552_v46  ;;  %11209 = vmatprep.subr.mxu1 %v13596_v20 }
 0x546   :  { %11181 = vmatmul.mubr.f32.gmra.mxu0 %v13679_v15  ;;  %11229 = vmatprep.subr.mxu0 %v13536_v52 }
 0x547   :  { %11210 = vmatpush3.msra.mxu1 %v13596_v20  ;;  %11230 = vmatpush3.msra.mxu0 %v13536_v52 }
 0x548   :  { %11211 = vmatprep.subr.mxu1 %v13614_v38  ;;  %11231 = vmatprep.subr.mxu0 %v13555_v10 }
 0x549   :  { %11183 = vmatprep.mubr.f32.mxu0 %v13702_v28  ;;  %11212 = vmatpush3.msra.mxu1 %v13614_v38 }
 0x54a   :  { %11213 = vmatprep.mubr.f32.mxu1 %v4868_v43  ;;  %11232 = vmatpush3.msra.mxu0 %v13555_v10  ;;  %v5713_v43 = vld [vmem:[%s14764_s11 + $0x10] sm:$0xff] }
 0x54b   :  { %11184 = vmatmul.mubr.f32.gmra.mxu0 %v13707_v35  ;;  %11214 = vmatmul.mubr.f32.vlgmr.msra.gmra.mxu1 %v4878_v56 }
 0x54c   :  { %11233 = vmatprep.subr.mxu0 %v13564_v63  ;;  %11261 = vmatprep.subr.mxu1 %v13498_v58 }
 0x54d   :  { %11234 = vmatpush3.msra.mxu0 %v13564_v63  ;;  %11262 = vmatpush3.msra.mxu1 %v13498_v58 }
 0x54e   :  { %11235 = vmatprep.subr.mxu0 %v13581_v22  ;;  %11263 = vmatprep.subr.mxu1 %v13516_v3 }
 0x54f   :  { %11186 = vmatprep.mubr.f32.mxu0 %v13727_v57  ;;  %11216 = vmatprep.mubr.f32.mxu1 %v4888_v27 }
 0x550   :  { %11236 = vmatpush3.msra.mxu0 %v13581_v22  ;;  %11264 = vmatpush3.msra.mxu1 %v13516_v3  ;;  %v5711_v3 = vld [vmem:[%s14764_s11] sm:$0xff] }
 0x551   :  { %11187 = vmatmul.mubr.f32.gmra.mxu0 %v13732_v6  ;;  %11217 = vmatmul.mubr.f32.gmra.mxu1 %v4898_v54  ;;  %v13921_v46 = vand.u32 4294901760, %v5711_v3 }
 0x552   :  { %11237 = vmatprep.subr.mxu0 %v13591_v53  ;;  %11265 = vmatprep.subr.mxu1 %v13483_v21 }
 0x553   :  { %11238 = vmatpush3.msra.mxu0 %v13591_v53  ;;  %11266 = vmatpush3.msra.mxu1 %v13483_v21 }
 0x554   :  { %11239 = vmatprep.subr.mxu0 %v13609_v36  ;;  %11267 = vmatprep.subr.mxu1 %v13488_v17 }
 0x555   :  { %11219 = vmatprep.mubr.f32.mxu1 %v4908_v26  ;;  %11240 = vmatpush3.msra.mxu0 %v13609_v36 }
 0x556   :  { %11268 = vmatpush3.msra.mxu1 %v13488_v17  ;;  %11241 = vmatprep.subr.mxu0 %v13632_v32  ;;  %v13894_v17 = vand.u32 4294901760, %v5713_v43 }
 0x557   :  { %11220 = vmatmul.mubr.f32.gmra.mxu1 %v4918_v50  ;;  %11269 = vmatprep.subr.mxu1 %v13491_v48 }
 0x558   :  { %11242 = vmatpush3.msra.mxu0 %v13632_v32  ;;  %11270 = vmatpush3.msra.mxu1 %v13491_v48  ;;  %v5712_v48 = vld [vmem:[%s14764_s11 + $0x8] sm:$0xff] }
 0x559   :  { %11243 = vmatprep.subr.mxu0 %v13646_v31  ;;  %11271 = vmatprep.subr.mxu1 %v13507_v51 }
 0x55a   :  { %11222 = vmatprep.mubr.f32.mxu1 %v4928_v40  ;;  %11244 = vmatpush3.msra.mxu0 %v13646_v31 }
 0x55b   :  { %11272 = vmatpush3.msra.mxu1 %v13507_v51  ;;  %11245 = vmatprep.subr.mxu0 %v13663_v2  ;;  %v13907_v51 = vand.u32 4294901760, %v5712_v48 }
 0x55c   :  { %11223 = vmatmul.mubr.f32.gmra.mxu1 %v4938_v41  ;;  %11273 = vmatprep.subr.mxu1 %v13504_v24 }
 0x55d   :  { %11246 = vmatpush3.msra.mxu0 %v13663_v2  ;;  %11274 = vmatpush3.msra.mxu1 %v13504_v24  ;;  %v13904_v24 = vsub.f32 %v5713_v43, %v13894_v17 }
 0x55e   :  { %11247 = vmatprep.subr.mxu0 %v13672_v0  ;;  %11275 = vmatprep.subr.mxu1 %v13539_v16 }
 0x55f   :  { %11248 = vmatpush3.msra.mxu0 %v13672_v0  ;;  %11249 = vmatprep.mubr.f32.mxu0 %v13447_v44  ;;  %v13916_v52 = vand.u32 4294901760, %v13904_v24 }
 0x560   :  { %11276 = vmatpush3.msra.mxu1 %v13539_v16  ;;  %11250 = vmatmul.mubr.f32.vlgmr.msra.gmra.mxu0 %v13566_v29  ;;  %v13919_v16 = vsub.f32 %v5712_v48, %v13907_v51 }
 0x561   :  { %11277 = vmatprep.subr.mxu1 %v13568_v33  ;;  %11252 = vmatprep.mubr.f32.mxu0 %v13648_v19  ;;  %14881 = vst [vmem:[#allocation17_spill] sm:$0xff] %v13916_v52  ;;  %v5871_v63 = vsub.f32 %v13904_v24, %v13916_v52 }
 0x562   :  { %11278 = vmatpush3.msra.mxu1 %v13568_v33  ;;  %11285 = vmatprep.mubr.f32.mxu1 %v13447_v44  ;;  %v5714_v44 = vld [vmem:[%s14764_s11 + $0x18] sm:$0xff]  ;;  %14882 = vst [vmem:[#allocation11_spill] sm:$0xff] %v13919_v16  ;;  %v13931_v33 = vsub.f32 %v5711_v3, %v13921_v46 }
 0x563   :  { %11279 = vmatprep.subr.mxu1 %v13584_v37  ;;  %v13885_v9 = vand.u32 4294901760, %v5714_v44  ;;  %v5872_v59 = vand.u32 4294901760, %v5871_v63 }
 0x564   :  { %11280 = vmatpush3.msra.mxu1 %v13584_v37  ;;  %11253 = vmatmul.mubr.f32.gmra.mxu0 %v13657_v39  ;;  %14884 = vst [vmem:[#allocation16_spill] sm:$0xff] %v13931_v33  ;;  %v13938_v37 = vand.u32 4294901760, %v13931_v33 }
 0x565   :  { %11281 = vmatprep.subr.mxu1 %v13596_v20  ;;  %11255 = vmatprep.mubr.f32.mxu0 %v13681_v7  ;;  %v13892_v21 = vsub.f32 %v5714_v44, %v13885_v9 }
 0x566   :  { %11282 = vmatpush3.msra.mxu1 %v13596_v20  ;;  %11297 = vmatprep.subr.mxu0 %v13885_v9  ;;  %14885 = vst [vmem:[#allocation19_spill] sm:$0xff] %v13938_v37  ;;  %v5885_v5 = vsub.f32 %v13931_v33, %v13938_v37 }
 0x567   :  { %11283 = vmatprep.subr.mxu1 %v13614_v38  ;;  %11298 = vmatpush3.msra.mxu0 %v13885_v9  ;;  %v13901_v58 = vand.u32 4294901760, %v13892_v21 }
 0x568   :  { %11284 = vmatpush3.msra.mxu1 %v13614_v38  ;;  %11256 = vmatmul.mubr.f32.gmra.mxu0 %v13689_v49  ;;  %v5886_v20 = vand.u32 4294901760, %v5885_v5 }
 0x569   :  { %11286 = vmatmul.mubr.f32.vlgmr.msra.gmra.mxu1 %v13566_v29  ;;  %11258 = vmatprep.mubr.f32.mxu0 %v13710_v8  ;;  %14880 = vst [vmem:[#allocation8_spill] sm:$0xff] %v13901_v58  ;;  %v5864_v12 = vsub.f32 %v13892_v21, %v13901_v58  ;;  %v13928_v29 = vand.u32 4294901760, %v13919_v16 }
 0x56a   :  { %11288 = vmatprep.mubr.f32.mxu1 %v13648_v19  ;;  %11299 = vmatprep.subr.mxu0 %v13894_v17 }
 0x56b   :  { %11300 = vmatpush3.msra.mxu0 %v13894_v17  ;;  %v5865_v10 = vand.u32 4294901760, %v5864_v12  ;;  %14883 = vst [vmem:[#allocation12_spill] sm:$0xff] %v13928_v29  ;;  %v5878_v22 = vsub.f32 %v13919_v16, %v13928_v29 }
 0x56c   :  { %11259 = vmatmul.mubr.f32.gmra.mxu0 %v13716_v34  ;;  %11301 = vmatprep.subr.mxu0 %v13907_v51 }
 0x56d   :  { %11289 = vmatmul.mubr.f32.gmra.mxu1 %v13657_v39  ;;  %11302 = vmatpush3.msra.mxu0 %v13907_v51  ;;  %v5879_v53 = vand.u32 4294901760, %v5878_v22 }
 0x56e   :  { %11291 = vmatprep.mubr.f32.mxu1 %v13681_v7  ;;  %11303 = vmatprep.subr.mxu0 %v13921_v46 }
 0x56f   :  { %11304 = vmatpush3.msra.mxu0 %v13921_v46  ;;  %11311 = vmatprep.subr.mxu1 %v5865_v10 }
 0x570   :  { %11325 = vmatprep.subr.mxu0 %v13892_v21  ;;  %11312 = vmatpush3.msra.mxu1 %v5865_v10 }
 0x571   :  { %11292 = vmatmul.mubr.f32.gmra.mxu1 %v13689_v49  ;;  %11313 = vmatprep.subr.mxu1 %v5872_v59 }
 0x572   :  { %11294 = vmatprep.mubr.f32.mxu1 %v13710_v8  ;;  %11314 = vmatpush3.msra.mxu1 %v5872_v59 }
 0x573   :  { %11315 = vmatprep.subr.mxu1 %v5879_v53 }
 0x574   :  { %11316 = vmatpush3.msra.mxu1 %v5879_v53 }
 0x575   :  { %11295 = vmatmul.mubr.f32.gmra.mxu1 %v13716_v34  ;;  %11317 = vmatprep.subr.mxu1 %v5886_v20 }
 0x576   :  { %11318 = vmatpush3.msra.mxu1 %v5886_v20 }
 0x577   :  { %11339 = vmatprep.subr.mxu1 %v13885_v9 }
 0x5e2   :  { %v11107_v30 = vpop.f32.mrf.mxu0 }
 0x5e4   :  { %v4872_v36 = vpop.f32.mrf.mxu0 }
 0x5e9   :  { %v11143_v56 = vpop.f32.mrf.mxu1 }
 0x5ea   :  { %v5080_v1 = vadd.f32 %v11143_v56, %v11107_v30 }
 0x5eb   :  { %v5073_v32 = vpop.f32.mrf.mxu1 }
 0x5ec   :  { %v5074_v48 = vadd.f32 %v5073_v32, %v4872_v36 }
 0x5ee   :  { %v11110_v38 = vpop.f32.mrf.mxu0 }
 0x5f0   :  { %v4892_v25 = vpop.f32.mrf.mxu0 }
 0x5f3   :  { %v11113_v11 = vpop.f32.mrf.mxu0 }
 0x5f5   :  { %v4912_v45 = vpop.f32.mrf.mxu0 }
 0x5f7   :  { %v11146_v31 = vpop.f32.mrf.mxu1 }
 0x5f8   :  { %v5092_v63 = vadd.f32 %v11146_v31, %v11110_v38 }
 0x5f9   :  { %v5085_v19 = vpop.f32.mrf.mxu1  ;;  %v11116_v39 = vpop.f32.mrf.mxu0 }
 0x5fa   :  { %v5086_v29 = vadd.f32 %v5085_v19, %v4892_v25 }
 0x5fb   :  { %v4932_v0 = vpop.f32.mrf.mxu0 }
 0x5fd   :  { %v11149_v2 = vpop.f32.mrf.mxu1 }
 0x5fe   :  { %v5104_v62 = vadd.f32 %v11149_v2, %v11113_v11 }
 0x5ff   :  { %v5097_v55 = vpop.f32.mrf.mxu1  ;;  %v11179_v15 = vpop.f32.mrf.mxu0 }
 0x600   :  { %v5098_v3 = vadd.f32 %v5097_v55, %v4912_v45  ;;  %v5219_v12 = vadd.f32 %v11179_v15, %v5080_v1 }
 0x601   :  { %v5211_v49 = vpop.f32.mrf.mxu0 }
 0x602   :  { %v11152_v7 = vpop.f32.mrf.mxu1  ;;  %v5212_v53 = vadd.f32 %v5211_v49, %v5074_v48  ;;  %v6344_v48 = vld [vmem:[%s14765_s12 + $0x18] sm:$0xff] }
 0x603   :  { %v5116_v59 = vadd.f32 %v11152_v7, %v11116_v39  ;;  %v5695_v39 = vpop.permute.xlu0 %5694 }
 0x604   :  { %v5109_v27 = vpop.f32.mrf.mxu1 }
 0x605   :  { %v5110_v52 = vadd.f32 %v5109_v27, %v4932_v0 }
 0x606   :  { %v11182_v54 = vpop.f32.mrf.mxu0 }
 0x607   :  { %v5233_v58 = vadd.f32 %v11182_v54, %v5092_v63 }
 0x608   :  { %v5225_v35 = vpop.f32.mrf.mxu0 }
 0x609   :  { %v5226_v32 = vadd.f32 %v5225_v35, %v5086_v29 }
 0x60b   :  { %v11215_v28 = vpop.f32.mrf.mxu1  ;;  %v11185_v34 = vpop.f32.mrf.mxu0 }
 0x60c   :  { %v5247_v10 = vadd.f32 %v11185_v34, %v5104_v62  ;;  %v5354_v5 = vadd.f32 %v11215_v28, %v5219_v12 }
 0x60d   :  { %v5345_v8 = vpop.f32.mrf.mxu1  ;;  %v5239_v26 = vpop.f32.mrf.mxu0 }
 0x60e   :  { %v5240_v20 = vadd.f32 %v5239_v26, %v5098_v3  ;;  %v5346_v56 = vadd.f32 %v5345_v8, %v5212_v53 }
 0x611   :  { %v11218_v42 = vpop.f32.mrf.mxu1  ;;  %v11188_v57 = vpop.f32.mrf.mxu0 }
 0x612   :  { %v5261_v33 = vadd.f32 %v11188_v57, %v5116_v59  ;;  %v5370_v45 = vadd.f32 %v11218_v42, %v5233_v58 }
 0x613   :  { %v5361_v50 = vpop.f32.mrf.mxu1  ;;  %v5253_v6 = vpop.f32.mrf.mxu0 }
 0x614   :  { %v5254_v55 = vadd.f32 %v5253_v6, %v5110_v52  ;;  %v5362_v25 = vadd.f32 %v5361_v50, %v5226_v32  ;;  %v6342_v32 = vld [vmem:[%s14765_s12 + $0x8] sm:$0xff] }
 0x617   :  { %v11221_v60 = vpop.f32.mrf.mxu1 }
 0x618   :  { %v5386_v37 = vadd.f32 %v11221_v60, %v5247_v10 }
 0x619   :  { %v5377_v23 = vpop.f32.mrf.mxu1 }
 0x61a   :  { %v5378_v11 = vadd.f32 %v5377_v23, %v5240_v20  ;;  %v6343_v20 = vld [vmem:[%s14765_s12 + $0x10] sm:$0xff] }
 0x61c   :  { %v11224_v40 = vpop.f32.mrf.mxu1 }
 0x61d   :  { %v5402_v38 = vadd.f32 %v11224_v40, %v5261_v33 }
 0x61e   :  { %v5393_v18 = vpop.f32.mrf.mxu1 }
 0x61f   :  { %v5394_v19 = vadd.f32 %v5393_v18, %v5254_v55 }
 0x620   :  { %v11251_v61 = vpop.f32.mrf.mxu0 }
 0x621   :  { %v5515_v2 = vadd.f32 %v11251_v61, %v5354_v5  ;;  %v13977_v5 = vand.u32 4294901760, %v6344_v48 }
 0x622   :  { %v5508_v47 = vpop.f32.mrf.mxu0 }
 0x623   :  { %v5509_v15 = vadd.f32 %v5508_v47, %v5346_v56 }
 0x624   :  { %v11254_v41 = vpop.f32.mrf.mxu0 }
 0x625   :  { %v5527_v0 = vadd.f32 %v11254_v41, %v5370_v45  ;;  %v5705_v41 = vpop.permute.xlu0 %5704 }
 0x626   :  { %v5520_v4 = vpop.f32.mrf.mxu0 }
 0x627   :  { %v5521_v29 = vadd.f32 %v5520_v4, %v5362_v25 }
 0x628   :  { %v11257_v13 = vpop.f32.mrf.mxu0 }
 0x629   :  { %v11287_v14 = vpop.f32.mrf.mxu1  ;;  %v5539_v36 = vadd.f32 %v11257_v13, %v5386_v37  ;;  %v5690_v37 = vpop.permute.xlu1 %5689 }
 0x62a   :  { %v5532_v44 = vpop.f32.mrf.mxu0  ;;  %v5640_v7 = vadd.f32 %v11287_v14, %v5515_v2 }
 0x62b   :  { %v5633_v43 = vpop.f32.mrf.mxu1  ;;  %v5533_v49 = vadd.f32 %v5532_v44, %v5378_v11 }
 0x62c   :  { %v11260_v16 = vpop.f32.mrf.mxu0  ;;  %v5634_v34 = vadd.f32 %v5633_v43, %v5509_v15 }
 0x62d   :  { %v11290_v22 = vpop.f32.mrf.mxu1  ;;  %v5551_v8 = vadd.f32 %v11260_v16, %v5402_v38  ;;  %v5700_v14 = vpop.permute.xlu1 %5699  ;;  %v14010_v38 = vsub.f32 %v6344_v48, %v13977_v5 }
 0x62e   :  { %v5544_v27 = vpop.f32.mrf.mxu0  ;;  %v5652_v58 = vadd.f32 %v11290_v22, %v5527_v0 }
 0x62f   :  { %v5645_v30 = vpop.f32.mrf.mxu1  ;;  %v5545_v33 = vadd.f32 %v5544_v27, %v5394_v19  ;;  %v14036_v19 = vand.u32 4294901760, %v14010_v38 }
 0x630   :  { %v5646_v6 = vadd.f32 %v5645_v30, %v5521_v29  ;;  %v14888_v29 = vld [vmem:[#allocation8_spill] sm:$0xff] }
 0x631   :  { %v11293_v31 = vpop.f32.mrf.mxu1 }
 0x632   :  { %v5664_v28 = vadd.f32 %v11293_v31, %v5539_v36  ;;  %v13997_v36 = vand.u32 4294901760, %v6343_v20 }
 0x633   :  { %v5657_v54 = vpop.f32.mrf.mxu1 }
 0x634   :  { %v5680_v26 = vmax.f32 %v5640_v7, %v5664_v28  ;;  %v5658_v57 = vadd.f32 %v5657_v54, %v5533_v49  ;;  %v14021_v7 = vand.u32 4294901760, %v6342_v32  ;;  %v6341_v49 = vld [vmem:[%s14765_s12] sm:$0xff]  ;;  %v14029_v28 = vsub.f32 %v6343_v20, %v13997_v36 }
 0x635   :  { %v11296_v52 = vpop.f32.mrf.mxu1  ;;  %v14040_v0 = vand.u32 4294901760, %v6341_v49 }
 0x636   :  { %v5708_v35 = vadd.f32 %v5695_v39, %v5680_v26  ;;  %v5679_v42 = vmax.f32 %v5634_v34, %v5658_v57  ;;  %v5676_v60 = vadd.f32 %v11296_v52, %v5551_v8  ;;  %v14047_v54 = vsub.f32 %v6342_v32, %v14021_v7  ;;  %v14886_v34 = vld [vmem:[#allocation11_spill] sm:$0xff]  ;;  %v14887_v26 = vld [vmem:[#allocation16_spill] sm:$0xff]  ;;  %v14889_v52 = vld [vmem:[#allocation17_spill] sm:$0xff] }
 0x637   :  { %v5669_v23 = vpop.f32.mrf.mxu1  ;;  %v14061_v8 = vsub.f32 %v6341_v49, %v14040_v0 }
 0x638   :  { %v5719_v50 = vsel %vm61_vm0, %v5708_v35, 0  ;;  %v5707_v61 = vadd.f32 %v5690_v37, %v5679_v42  ;;  %v5682_v47 = vmax.f32 %v5652_v58, %v5676_v60  ;;  %v5670_v40 = vadd.f32 %v5669_v23, %v5545_v33  ;;  %v14890_v35 = vld [vmem:[#allocation12_spill] sm:$0xff]  ;;  %v14891_v60 = vld [vmem:[#allocation19_spill] sm:$0xff] }
 0x639   :  { %v13945_v18 = vand.u32 4294901760, %v5719_v50  ;;  %v14077_v37 = vand.u32 4294901760, %v14061_v8 }
 0x63a   :  { %v5716_v16 = vsel %vm61_vm0, %v5707_v61, 0  ;;  %v5710_v13 = vadd.f32 %v5705_v41, %v5682_v47  ;;  %v5681_v4 = vmax.f32 %v5646_v6, %v5670_v40  ;;  %v6968_v6 = vld [vmem:[%s14766_s13 + $0x8] sm:$0xff] }
 0x63b   :  { %v13949_v1 = vsub.f32 %v5719_v50, %v13945_v18  ;;  %v13951_v62 = vand.u32 4294901760, %v5716_v16  ;;  %v14169_v23 = vand.u32 4294901760, %v6968_v6  ;;  %v6967_v50 = vld [vmem:[%s14766_s13] sm:$0xff] }
 0x63c   :  { %v5725_v44 = vsel %vm61_vm0, %v5710_v13, 0  ;;  %v5709_v43 = vadd.f32 %v5700_v14, %v5681_v4  ;;  %v14177_v47 = vand.u32 4294901760, %v6967_v50 }
 0x63d   :  { %v13958_v3 = vand.u32 4294901760, %v13949_v1  ;;  %v13961_v12 = vsub.f32 %v5716_v16, %v13951_v62  ;;  %v13963_v10 = vand.u32 4294901760, %v5725_v44  ;;  %11319 = vmatprep.mubr.f32.mxu1 %v13951_v62  ;;  %v14175_v61 = vsub.f32 %v6968_v6, %v14169_v23 }
 0x63e   :  { %v5722_v63 = vsel %vm61_vm0, %v5709_v43, 0  ;;  %11320 = vmatmul.mubr.f32.vlgmr.msra.gmra.mxu1 %v13945_v18  ;;  %v14185_v41 = vsub.f32 %v6967_v50, %v14177_v47 }
 0x63f   :  { %v13969_v59 = vsub.f32 %v5725_v44, %v13963_v10  ;;  %v13971_v22 = vand.u32 4294901760, %v5722_v63  ;;  %11340 = vmatpush3.msra.mxu1 %v13885_v9  ;;  %v13975_v53 = vand.u32 4294901760, %v13961_v12  ;;  %v5809_v30 = vsub.f32 %v13949_v1, %v13958_v3 }
 0x640   :  { %11341 = vmatprep.subr.mxu1 %v13894_v17  ;;  %v14182_v40 = vand.u32 4294901760, %v14175_v61  ;;  %v14192_v16 = vand.u32 4294901760, %v14185_v41 }
 0x641   :  { %v13986_v56 = vsub.f32 %v5722_v63, %v13971_v22  ;;  %11322 = vmatprep.mubr.f32.mxu1 %v13971_v22  ;;  %11342 = vmatpush3.msra.mxu1 %v13894_v17  ;;  %v5799_v11 = vsub.f32 %v13961_v12, %v13975_v53  ;;  %v13993_v2 = vand.u32 4294901760, %v13969_v59  ;;  %v14013_v31 = vand.u32 4294901760, %v5809_v30 }
 0x642   :  { %11323 = vmatmul.mubr.f32.gmra.mxu1 %v13963_v10  ;;  %11343 = vmatprep.subr.mxu1 %v13907_v51  ;;  %v7128_v4 = vsub.f32 %v14185_v41, %v14192_v16 }
 0x643   :  { %11344 = vmatpush3.msra.mxu1 %v13907_v51  ;;  %11347 = vmatprep.mubr.f32.mxu1 %v13975_v53  ;;  %v14004_v45 = vand.u32 4294901760, %v5799_v11  ;;  %v14007_v55 = vand.u32 4294901760, %v13986_v56  ;;  %v5829_v15 = vsub.f32 %v13969_v59, %v13993_v2 }
 0x644   :  { %11345 = vmatprep.subr.mxu1 %v13921_v46  ;;  %v7129_v14 = vand.u32 4294901760, %v7128_v4 }
 0x645   :  { %11305 = vmatprep.mubr.f32.mxu0 %v14004_v45  ;;  %11346 = vmatpush3.msra.mxu1 %v13921_v46  ;;  %v5819_v39 = vsub.f32 %v13986_v56, %v14007_v55  ;;  %v14044_v27 = vand.u32 4294901760, %v5829_v15 }
 0x646   :  { %11306 = vmatmul.mubr.f32.vlgmr.msra.gmra.mxu0 %v14013_v31  ;;  %11348 = vmatmul.mubr.f32.vlgmr.msra.gmra.mxu1 %v13958_v3 }
 0x647   :  { %11367 = vmatprep.subr.mxu1 %v13885_v9  ;;  %11326 = vmatpush3.msra.mxu0 %v13892_v21  ;;  %v14033_v25 = vand.u32 4294901760, %v5819_v39  ;;  %v14052_v21 = vand.u32 4294901760, %v14029_v28 }
 0x648   :  { %11350 = vmatprep.mubr.f32.mxu1 %v14007_v55  ;;  %11368 = vmatpush3.msra.mxu1 %v13885_v9  ;;  %v6482_v9 = vsub.f32 %v14010_v38, %v14036_v19 }
 0x649   :  { %11327 = vmatprep.subr.mxu0 %v13904_v24  ;;  %11369 = vmatprep.subr.mxu1 %v13894_v17 }
 0x64a   :  { %11308 = vmatprep.mubr.f32.mxu0 %v14033_v25  ;;  %11328 = vmatpush3.msra.mxu0 %v13904_v24  ;;  %v14066_v24 = vand.u32 4294901760, %v14047_v54  ;;  %v6483_v57 = vand.u32 4294901760, %v6482_v9 }
 0x64b   :  { %11370 = vmatpush3.msra.mxu1 %v13894_v17  ;;  %11309 = vmatmul.mubr.f32.gmra.mxu0 %v14044_v27  ;;  %v6489_v17 = vsub.f32 %v14029_v28, %v14052_v21 }
 0x64c   :  { %11329 = vmatprep.subr.mxu0 %v14886_v34  ;;  %11351 = vmatmul.mubr.f32.gmra.mxu1 %v13993_v2 }
 0x64d   :  { %11371 = vmatprep.subr.mxu1 %v13907_v51  ;;  %11330 = vmatpush3.msra.mxu0 %v14886_v34  ;;  %v6490_v58 = vand.u32 4294901760, %v6489_v17 }
 0x64e   :  { %11333 = vmatprep.mubr.f32.mxu0 %v13961_v12  ;;  %11372 = vmatpush3.msra.mxu1 %v13907_v51  ;;  %v6496_v51 = vsub.f32 %v14047_v54, %v14066_v24 }
 0x64f   :  { %11375 = vmatprep.mubr.f32.mxu1 %v13951_v62  ;;  %11331 = vmatprep.subr.mxu0 %v14887_v26 }
 0x650   :  { %11373 = vmatprep.subr.mxu1 %v13921_v46  ;;  %11332 = vmatpush3.msra.mxu0 %v14887_v26  ;;  %v6497_v33 = vand.u32 4294901760, %v6496_v51 }
 0x651   :  { %11374 = vmatpush3.msra.mxu1 %v13921_v46  ;;  %11334 = vmatmul.mubr.f32.vlgmr.msra.gmra.mxu0 %v13949_v1  ;;  %v6503_v46 = vsub.f32 %v14061_v8, %v14077_v37 }
 0x652   :  { %11353 = vmatprep.subr.mxu0 %v14888_v29  ;;  %11376 = vmatmul.mubr.f32.vlgmr.msra.gmra.mxu1 %v13945_v18 }
 0x653   :  { %11395 = vmatprep.subr.mxu1 %v6483_v57  ;;  %11336 = vmatprep.mubr.f32.mxu0 %v13986_v56  ;;  %v6504_v42 = vand.u32 4294901760, %v6503_v46 }
 0x654   :  { %11354 = vmatpush3.msra.mxu0 %v14888_v29  ;;  %11378 = vmatprep.mubr.f32.mxu1 %v13971_v22 }
 0x655   :  { %11396 = vmatpush3.msra.mxu1 %v6483_v57  ;;  %11355 = vmatprep.subr.mxu0 %v14889_v52 }
 0x656   :  { %11397 = vmatprep.subr.mxu1 %v6490_v58  ;;  %11356 = vmatpush3.msra.mxu0 %v14889_v52 }
 0x657   :  { %11398 = vmatpush3.msra.mxu1 %v6490_v58  ;;  %11337 = vmatmul.mubr.f32.gmra.mxu0 %v13969_v59 }
 0x658   :  { %11357 = vmatprep.subr.mxu0 %v14890_v35  ;;  %11379 = vmatmul.mubr.f32.gmra.mxu1 %v13963_v10 }
 0x659   :  { %11399 = vmatprep.subr.mxu1 %v6497_v33  ;;  %11358 = vmatpush3.msra.mxu0 %v14890_v35 }
 0x65a   :  { %11361 = vmatprep.mubr.f32.mxu0 %v13951_v62  ;;  %11400 = vmatpush3.msra.mxu1 %v6497_v33 }
 0x65b   :  { %11403 = vmatprep.mubr.f32.mxu1 %v13951_v62  ;;  %11359 = vmatprep.subr.mxu0 %v14891_v60 }
 0x65c   :  { %11401 = vmatprep.subr.mxu1 %v6504_v42  ;;  %11360 = vmatpush3.msra.mxu0 %v14891_v60 }
 0x65d   :  { %11402 = vmatpush3.msra.mxu1 %v6504_v42  ;;  %11362 = vmatmul.mubr.f32.vlgmr.msra.gmra.mxu0 %v13945_v18 }
 0x65e   :  { %11381 = vmatprep.subr.mxu0 %v13977_v5  ;;  %11404 = vmatmul.mubr.f32.vlgmr.msra.gmra.mxu1 %v13945_v18 }
 0x65f   :  { %11423 = vmatprep.subr.mxu1 %v13977_v5  ;;  %11364 = vmatprep.mubr.f32.mxu0 %v13971_v22 }
 0x660   :  { %11382 = vmatpush3.msra.mxu0 %v13977_v5  ;;  %11406 = vmatprep.mubr.f32.mxu1 %v13971_v22 }
 0x661   :  { %11424 = vmatpush3.msra.mxu1 %v13977_v5  ;;  %11383 = vmatprep.subr.mxu0 %v13997_v36 }
 0x662   :  { %11425 = vmatprep.subr.mxu1 %v13997_v36  ;;  %11384 = vmatpush3.msra.mxu0 %v13997_v36 }
 0x663   :  { %11426 = vmatpush3.msra.mxu1 %v13997_v36  ;;  %11365 = vmatmul.mubr.f32.gmra.mxu0 %v13963_v10 }
 0x664   :  { %11385 = vmatprep.subr.mxu0 %v14021_v7  ;;  %11407 = vmatmul.mubr.f32.gmra.mxu1 %v13963_v10 }
 0x665   :  { %11427 = vmatprep.subr.mxu1 %v14021_v7  ;;  %11386 = vmatpush3.msra.mxu0 %v14021_v7 }
 0x666   :  { %11389 = vmatprep.mubr.f32.mxu0 %v14004_v45  ;;  %11428 = vmatpush3.msra.mxu1 %v14021_v7 }
 0x667   :  { %11431 = vmatprep.mubr.f32.mxu1 %v13975_v53  ;;  %11387 = vmatprep.subr.mxu0 %v14040_v0 }
 0x668   :  { %11429 = vmatprep.subr.mxu1 %v14040_v0  ;;  %11388 = vmatpush3.msra.mxu0 %v14040_v0 }
 0x669   :  { %11430 = vmatpush3.msra.mxu1 %v14040_v0  ;;  %11390 = vmatmul.mubr.f32.vlgmr.msra.gmra.mxu0 %v14013_v31 }
 0x66a   :  { %11409 = vmatprep.subr.mxu0 %v14010_v38  ;;  %11432 = vmatmul.mubr.f32.vlgmr.msra.gmra.mxu1 %v13958_v3 }
 0x66b   :  { %11451 = vmatprep.subr.mxu1 %v13977_v5  ;;  %11392 = vmatprep.mubr.f32.mxu0 %v14033_v25 }
 0x66c   :  { %11410 = vmatpush3.msra.mxu0 %v14010_v38  ;;  %11434 = vmatprep.mubr.f32.mxu1 %v14007_v55 }
 0x66d   :  { %11452 = vmatpush3.msra.mxu1 %v13977_v5  ;;  %11411 = vmatprep.subr.mxu0 %v14029_v28 }
 0x66e   :  { %11453 = vmatprep.subr.mxu1 %v13997_v36  ;;  %11412 = vmatpush3.msra.mxu0 %v14029_v28 }
 0x66f   :  { %11454 = vmatpush3.msra.mxu1 %v13997_v36  ;;  %11393 = vmatmul.mubr.f32.gmra.mxu0 %v14044_v27 }
 0x670   :  { %11413 = vmatprep.subr.mxu0 %v14047_v54  ;;  %11435 = vmatmul.mubr.f32.gmra.mxu1 %v13993_v2 }
 0x671   :  { %11455 = vmatprep.subr.mxu1 %v14021_v7  ;;  %11414 = vmatpush3.msra.mxu0 %v14047_v54 }
 0x672   :  { %11417 = vmatprep.mubr.f32.mxu0 %v13961_v12  ;;  %11456 = vmatpush3.msra.mxu1 %v14021_v7 }
 0x673   :  { %11459 = vmatprep.mubr.f32.mxu1 %v13951_v62  ;;  %11415 = vmatprep.subr.mxu0 %v14061_v8 }
 0x674   :  { %11457 = vmatprep.subr.mxu1 %v14040_v0  ;;  %11416 = vmatpush3.msra.mxu0 %v14061_v8 }
 0x675   :  { %11458 = vmatpush3.msra.mxu1 %v14040_v0  ;;  %11418 = vmatmul.mubr.f32.vlgmr.msra.gmra.mxu0 %v13949_v1 }
 0x676   :  { %11437 = vmatprep.subr.mxu0 %v14036_v19  ;;  %11460 = vmatmul.mubr.f32.vlgmr.msra.gmra.mxu1 %v13945_v18 }
 0x677   :  { %11420 = vmatprep.mubr.f32.mxu0 %v13986_v56  ;;  %11438 = vmatpush3.msra.mxu0 %v14036_v19 }
 0x678   :  { %11462 = vmatprep.mubr.f32.mxu1 %v13971_v22  ;;  %11439 = vmatprep.subr.mxu0 %v14052_v21 }
 0x679   :  { %11440 = vmatpush3.msra.mxu0 %v14052_v21 }
 0x67a   :  { %11421 = vmatmul.mubr.f32.gmra.mxu0 %v13969_v59  ;;  %11441 = vmatprep.subr.mxu0 %v14066_v24 }
 0x67b   :  { %11463 = vmatmul.mubr.f32.gmra.mxu1 %v13963_v10  ;;  %11442 = vmatpush3.msra.mxu0 %v14066_v24 }
 0x67c   :  { %11445 = vmatprep.mubr.f32.mxu0 %v13951_v62  ;;  %11443 = vmatprep.subr.mxu0 %v14077_v37 }
 0x67d   :  { %11444 = vmatpush3.msra.mxu0 %v14077_v37 }
 0x67e   :  { %11446 = vmatmul.mubr.f32.vlgmr.msra.gmra.mxu0 %v13945_v18  ;;  %11465 = vmatprep.subr.mxu0 %v14169_v23  ;;  %v7121_v18 = vsub.f32 %v14175_v61, %v14182_v40 }
 0x67f   :  { %11448 = vmatprep.mubr.f32.mxu0 %v13971_v22  ;;  %11466 = vmatpush3.msra.mxu0 %v14169_v23 }
 0x680   :  { %11467 = vmatprep.subr.mxu0 %v14177_v47  ;;  %v7122_v13 = vand.u32 4294901760, %v7121_v18 }
 0x681   :  { %11468 = vmatpush3.msra.mxu0 %v14177_v47 }
 0x682   :  { %11449 = vmatmul.mubr.f32.gmra.mxu0 %v13963_v10  ;;  %11485 = vmatprep.subr.mxu0 %v14175_v61 }
 0x683   :  { %11475 = vmatprep.subr.mxu1 %v7122_v13 }
 0x684   :  { %11476 = vmatpush3.msra.mxu1 %v7122_v13 }
 0x685   :  { %11477 = vmatprep.subr.mxu1 %v7129_v14 }
 0x686   :  { %11478 = vmatpush3.msra.mxu1 %v7129_v14 }
 0x687   :  { %11495 = vmatprep.subr.mxu1 %v14169_v23 }
 0x6fe   :  { %v11321_v1 = vpop.f32.mrf.mxu1 }
 0x700   :  { %v5923_v62 = vpop.f32.mrf.mxu1 }
 0x702   :  { %v11324_v44 = vpop.f32.mrf.mxu1 }
 0x704   :  { %v5935_v43 = vpop.f32.mrf.mxu1 }
 0x706   :  { %v11307_v48 = vpop.f32.mrf.mxu0  ;;  %v11349_v3 = vpop.f32.mrf.mxu1 }
 0x707   :  { %v5930_v9 = vadd.f32 %v11321_v1, %v11307_v48 }
 0x708   :  { %v5802_v12 = vpop.f32.mrf.mxu0  ;;  %v6119_v10 = vpop.f32.mrf.mxu1 }
 0x709   :  { %v5924_v8 = vadd.f32 %v5923_v62, %v5802_v12 }
 0x70b   :  { %v11310_v63 = vpop.f32.mrf.mxu0 }
 0x70c   :  { %v11352_v59 = vpop.f32.mrf.mxu1  ;;  %v5942_v37 = vadd.f32 %v11324_v44, %v11310_v63 }
 0x70d   :  { %v5822_v22 = vpop.f32.mrf.mxu0 }
 0x70e   :  { %v6135_v53 = vpop.f32.mrf.mxu1  ;;  %v5936_v46 = vadd.f32 %v5935_v43, %v5822_v22 }
 0x711   :  { %v11335_v5 = vpop.f32.mrf.mxu0 }
 0x712   :  { %v11377_v20 = vpop.f32.mrf.mxu1  ;;  %v6029_v17 = vadd.f32 %v11335_v5, %v5930_v9 }
 0x713   :  { %v6021_v30 = vpop.f32.mrf.mxu0 }
 0x714   :  { %v6319_v56 = vpop.f32.mrf.mxu1  ;;  %v6022_v51 = vadd.f32 %v6021_v30, %v5924_v8  ;;  %v6128_v42 = vadd.f32 %v11349_v3, %v6029_v17 }
 0x716   :  { %v6120_v18 = vadd.f32 %v6119_v10, %v6022_v51 }
 0x717   :  { %v11338_v11 = vpop.f32.mrf.mxu0 }
 0x718   :  { %v14198_v2 = vpop.f32.mrf.mxu1  ;;  %v6043_v52 = vadd.f32 %v11338_v11, %v5942_v37 }
 0x719   :  { %v6035_v36 = vpop.f32.mrf.mxu0 }
 0x71a   :  { %v14200_v32 = vpop.f32.mrf.mxu1  ;;  %v6036_v50 = vadd.f32 %v6035_v36, %v5936_v46  ;;  %v6144_v12 = vadd.f32 %v11352_v59, %v6043_v52 }
 0x71c   :  { %v6136_v11 = vadd.f32 %v6135_v53, %v6036_v50 }
 0x71d   :  { %v11363_v45 = vpop.f32.mrf.mxu0 }
 0x71e   :  { %v11405_v55 = vpop.f32.mrf.mxu1  ;;  %v6233_v4 = vadd.f32 %v11363_v45, %v6128_v42 }
 0x71f   :  { %v6226_v38 = vpop.f32.mrf.mxu0 }
 0x720   :  { %v6541_v31 = vpop.f32.mrf.mxu1  ;;  %v6227_v48 = vadd.f32 %v6226_v38, %v6120_v18  ;;  %v6326_v3 = vadd.f32 %v11377_v20, %v6233_v4 }
 0x722   :  { %v6320_v10 = vadd.f32 %v6319_v56, %v6227_v48 }
 0x723   :  { %v11366_v39 = vpop.f32.mrf.mxu0 }
 0x724   :  { %v11408_v15 = vpop.f32.mrf.mxu1  ;;  %v6245_v22 = vadd.f32 %v11366_v39, %v6144_v12 }
 0x725   :  { %v6238_v7 = vpop.f32.mrf.mxu0 }
 0x726   :  { %v6553_v49 = vpop.f32.mrf.mxu1 }
 0x729   :  { %v11391_v28 = vpop.f32.mrf.mxu0 }
 0x72a   :  { %v11433_v25 = vpop.f32.mrf.mxu1  ;;  %v6548_v26 = vadd.f32 %v11405_v55, %v11391_v28  ;;  %v6239_v28 = vadd.f32 %v6238_v7, %v6136_v11 }
 0x72b   :  { %v6420_v19 = vpop.f32.mrf.mxu0 }
 0x72c   :  { %v6737_v0 = vpop.f32.mrf.mxu1  ;;  %v6542_v29 = vadd.f32 %v6541_v31, %v6420_v19  ;;  %v6332_v20 = vadd.f32 %v14200_v32, %v6239_v28 }
 0x72f   :  { %v11394_v27 = vpop.f32.mrf.mxu0 }
 0x730   :  { %v11436_v21 = vpop.f32.mrf.mxu1  ;;  %v6560_v60 = vadd.f32 %v11408_v15, %v11394_v27  ;;  %v6338_v27 = vadd.f32 %v14198_v2, %v6245_v22 }
 0x731   :  { %v6440_v54 = vpop.f32.mrf.mxu0 }
 0x732   :  { %v6753_v24 = vpop.f32.mrf.mxu1  ;;  %v6554_v14 = vadd.f32 %v6553_v49, %v6440_v54 }
 0x735   :  { %v11419_v34 = vpop.f32.mrf.mxu0 }
 0x736   :  { %v6647_v58 = vadd.f32 %v11419_v34, %v6548_v26  ;;  %v11461_v33 = vpop.f32.mrf.mxu1 }
 0x737   :  { %v6639_v57 = vpop.f32.mrf.mxu0 }
 0x738   :  { %v6640_v6 = vadd.f32 %v6639_v57, %v6542_v29  ;;  %v6746_v62 = vadd.f32 %v11433_v25, %v6647_v58  ;;  %v6937_v44 = vpop.f32.mrf.mxu1  ;;  %v7571_v57 = vld [vmem:[%s14767_s14 + $0x8] sm:$0xff] }
 0x73a   :  { %v11422_v35 = vpop.f32.mrf.mxu0  ;;  %v6738_v43 = vadd.f32 %v6737_v0, %v6640_v6 }
 0x73b   :  { %v6661_v1 = vadd.f32 %v11422_v35, %v6560_v60  ;;  %v11464_v45 = vpop.f32.mrf.mxu1  ;;  %v7570_v35 = vld [vmem:[%s14767_s14] sm:$0xff] }
 0x73c   :  { %v6653_v13 = vpop.f32.mrf.mxu0 }
 0x73d   :  { %v6654_v5 = vadd.f32 %v6653_v13, %v6554_v14  ;;  %v6762_v36 = vadd.f32 %v11436_v21, %v6661_v1  ;;  %v6949_v34 = vpop.f32.mrf.mxu1  ;;  %v14245_v13 = vand.u32 4294901760, %v7570_v35 }
 0x73e   :  { %v11447_v63 = vpop.f32.mrf.mxu0 }
 0x73f   :  { %v6851_v30 = vadd.f32 %v11447_v63, %v6746_v62  ;;  %v6754_v59 = vadd.f32 %v6753_v24, %v6654_v5  ;;  %v14273_v5 = vsub.f32 %v7570_v35, %v14245_v13 }
 0x740   :  { %v6844_v55 = vpop.f32.mrf.mxu0 }
 0x741   :  { %v6944_v31 = vadd.f32 %v11461_v33, %v6851_v30  ;;  %v6845_v15 = vadd.f32 %v6844_v55, %v6738_v43  ;;  %v14226_v33 = vand.u32 4294901760, %v7571_v57  ;;  %v14292_v55 = vand.u32 4294901760, %v14273_v5 }
 0x742   :  { %v11450_v49 = vpop.f32.mrf.mxu0 }
 0x743   :  { %v6960_v19 = vmax.f32 %v6326_v3, %v6944_v31  ;;  %v6938_v25 = vadd.f32 %v6937_v44, %v6845_v15  ;;  %v6863_v38 = vadd.f32 %v11450_v49, %v6762_v36  ;;  %v14258_v62 = vsub.f32 %v7571_v57, %v14226_v33 }
 0x744   :  { %v6856_v54 = vpop.f32.mrf.mxu0 }
 0x745   :  { %v6964_v0 = vmax.f32 %v6960_v19, 0.0  ;;  %v6959_v39 = vmax.f32 %v6320_v10, %v6938_v25  ;;  %v6956_v53 = vadd.f32 %v11464_v45, %v6863_v38  ;;  %v6857_v9 = vadd.f32 %v6856_v54, %v6754_v59  ;;  %v8750_v38 = vld [vmem:[%s14769_s16] sm:$0xff] }
 0x746   :  { %v14279_v43 = vand.u32 4294901760, %v14258_v62  ;;  %v8765_v59 = vsel %vm4764_vm4, %v8750_v38, 0 }
 0x747   :  { %v6974_v56 = vsel %vm6969_vm5, %v6964_v0, 0  ;;  %v6963_v7 = vmax.f32 %v6959_v39, 0.0  ;;  %v6962_v21 = vmax.f32 %v6338_v27, %v6956_v53  ;;  %v6950_v8 = vadd.f32 %v6949_v34, %v6857_v9 }
 0x748   :  { %v14205_v17 = vand.u32 4294901760, %v6974_v56  ;;  %v14438_v27 = vand.u32 4294901760, %v8765_v59 }
 0x749   :  { %v6971_v24 = vsel %vm6969_vm5, %v6963_v7, 0  ;;  %v6966_v26 = vmax.f32 %v6962_v21, 0.0  ;;  %v6961_v2 = vmax.f32 %v6332_v20, %v6950_v8 }
 0x74a   :  { %v14212_v37 = vsub.f32 %v6974_v56, %v14205_v17  ;;  %v14214_v32 = vand.u32 4294901760, %v6971_v24  ;;  %v14441_v54 = vsub.f32 %v8765_v59, %v14438_v27 }
 0x74b   :  { %v6980_v51 = vsel %vm6969_vm5, %v6966_v26, 0  ;;  %v6965_v29 = vmax.f32 %v6961_v2, 0.0 }
 0x74c   :  { %v14218_v58 = vand.u32 4294901760, %v14212_v37  ;;  %v14221_v46 = vsub.f32 %v6971_v24, %v14214_v32  ;;  %v14223_v52 = vand.u32 4294901760, %v6980_v51  ;;  %11479 = vmatprep.mubr.f32.mxu1 %v14214_v32  ;;  %v8849_v0 = vand.u32 4294901760, %v14441_v54 }
 0x74d   :  { %v6977_v42 = vsel %vm6969_vm5, %v6965_v29, 0  ;;  %11480 = vmatmul.mubr.f32.vlgmr.msra.gmra.mxu1 %v14205_v17 }
 0x74e   :  { %v14234_v60 = vsub.f32 %v6980_v51, %v14223_v52  ;;  %v14236_v6 = vand.u32 4294901760, %v6977_v42  ;;  %11496 = vmatpush3.msra.mxu1 %v14169_v23  ;;  %v14240_v50 = vand.u32 4294901760, %v14221_v46  ;;  %v7062_v18 = vsub.f32 %v14212_v37, %v14218_v58 }
 0x74f   :  { %11497 = vmatprep.subr.mxu1 %v14177_v47  ;;  %v8850_v39 = vsub.f32 %v14441_v54, %v8849_v0 }
 0x750   :  { %v14248_v4 = vsub.f32 %v6977_v42, %v14236_v6  ;;  %11482 = vmatprep.mubr.f32.mxu1 %v14236_v6  ;;  %v7052_v14 = vsub.f32 %v14221_v46, %v14240_v50  ;;  %11498 = vmatpush3.msra.mxu1 %v14177_v47  ;;  %v14255_v1 = vand.u32 4294901760, %v14234_v60  ;;  %v14268_v44 = vand.u32 4294901760, %v7062_v18 }
 0x751   :  { %11483 = vmatmul.mubr.f32.gmra.mxu1 %v14223_v52  ;;  %11515 = vmatprep.subr.mxu1 %v14169_v23  ;;  %v8851_v53 = vand.u32 4294901760, %v8850_v39 }
 0x752   :  { %11499 = vmatprep.mubr.f32.mxu1 %v14240_v50  ;;  %v14263_v48 = vand.u32 4294901760, %v7052_v14  ;;  %v14266_v12 = vand.u32 4294901760, %v14248_v4  ;;  %v7082_v63 = vsub.f32 %v14234_v60, %v14255_v1 }
 0x754   :  { %11469 = vmatprep.mubr.f32.mxu0 %v14263_v48  ;;  %v7072_v30 = vsub.f32 %v14248_v4, %v14266_v12  ;;  %v14287_v11 = vand.u32 4294901760, %v7082_v63 }
 0x755   :  { %11470 = vmatmul.mubr.f32.vlgmr.msra.gmra.mxu0 %v14268_v44  ;;  %11500 = vmatmul.mubr.f32.vlgmr.msra.gmra.mxu1 %v14218_v58 }
 0x756   :  { %11486 = vmatpush3.msra.mxu0 %v14175_v61  ;;  %11502 = vmatprep.mubr.f32.mxu1 %v14266_v12  ;;  %v14285_v22 = vand.u32 4294901760, %v7072_v30  ;;  %v7711_v61 = vsub.f32 %v14258_v62, %v14279_v43 }
 0x757   :  { %11487 = vmatprep.subr.mxu0 %v14185_v41  ;;  %11516 = vmatpush3.msra.mxu1 %v14169_v23  ;;  %v7718_v23 = vsub.f32 %v14273_v5, %v14292_v55 }
 0x758   :  { %11472 = vmatprep.mubr.f32.mxu0 %v14285_v22  ;;  %11488 = vmatpush3.msra.mxu0 %v14185_v41  ;;  %v7712_v41 = vand.u32 4294901760, %v7711_v61 }
 0x759   :  { %11473 = vmatmul.mubr.f32.gmra.mxu0 %v14287_v11  ;;  %11503 = vmatmul.mubr.f32.gmra.mxu1 %v14255_v1  ;;  %v7719_v3 = vand.u32 4294901760, %v7718_v23 }
 0x75a   :  { %11489 = vmatprep.mubr.f32.mxu0 %v14221_v46  ;;  %11519 = vmatprep.mubr.f32.mxu1 %v14214_v32 }
 0x75b   :  { %11517 = vmatprep.subr.mxu1 %v14177_v47  ;;  %11505 = vmatprep.subr.mxu0 %v14182_v40 }
 0x75c   :  { %11518 = vmatpush3.msra.mxu1 %v14177_v47  ;;  %v8161_v47 = vld [vmem:[%s14768_s15 + $0x8] sm:$0xff] }
 0x75d   :  { %11490 = vmatmul.mubr.f32.vlgmr.msra.gmra.mxu0 %v14212_v37  ;;  %11520 = vmatmul.mubr.f32.vlgmr.msra.gmra.mxu1 %v14205_v17 }
 0x75e   :  { %11492 = vmatprep.mubr.f32.mxu0 %v14248_v4  ;;  %11506 = vmatpush3.msra.mxu0 %v14182_v40  ;;  %v14322_v40 = vand.u32 4294901760, %v8161_v47 }
 0x75f   :  { %11522 = vmatprep.mubr.f32.mxu1 %v14236_v6  ;;  %11507 = vmatprep.subr.mxu0 %v14192_v16 }
 0x760   :  { %11535 = vmatprep.subr.mxu1 %v7712_v41  ;;  %11508 = vmatpush3.msra.mxu0 %v14192_v16  ;;  %v8160_v16 = vld [vmem:[%s14768_s15] sm:$0xff]  ;;  %v14338_v15 = vsub.f32 %v8161_v47, %v14322_v40 }
 0x761   :  { %11493 = vmatmul.mubr.f32.gmra.mxu0 %v14234_v60  ;;  %11523 = vmatmul.mubr.f32.gmra.mxu1 %v14223_v52  ;;  %v14333_v31 = vand.u32 4294901760, %v8160_v16 }
 0x762   :  { %11509 = vmatprep.mubr.f32.mxu0 %v14214_v32  ;;  %11536 = vmatpush3.msra.mxu1 %v7712_v41  ;;  %v14352_v10 = vand.u32 4294901760, %v14338_v15 }
 0x763   :  { %11539 = vmatprep.mubr.f32.mxu1 %v14214_v32  ;;  %11537 = vmatprep.subr.mxu1 %v7719_v3  ;;  %v14347_v36 = vsub.f32 %v8160_v16, %v14333_v31 }
 0x764   :  { %11538 = vmatpush3.msra.mxu1 %v7719_v3  ;;  %11525 = vmatprep.subr.mxu0 %v14226_v33  ;;  %v8301_v45 = vsub.f32 %v14338_v15, %v14352_v10 }
 0x765   :  { %11510 = vmatmul.mubr.f32.vlgmr.msra.gmra.mxu0 %v14205_v17  ;;  %11540 = vmatmul.mubr.f32.vlgmr.msra.gmra.mxu1 %v14205_v17  ;;  %v14361_v28 = vand.u32 4294901760, %v14347_v36 }
 0x766   :  { %11512 = vmatprep.mubr.f32.mxu0 %v14236_v6  ;;  %11526 = vmatpush3.msra.mxu0 %v14226_v33  ;;  %v8302_v19 = vand.u32 4294901760, %v8301_v45 }
 0x767   :  { %11542 = vmatprep.mubr.f32.mxu1 %v14236_v6  ;;  %11527 = vmatprep.subr.mxu0 %v14245_v13  ;;  %v8308_v49 = vsub.f32 %v14347_v36, %v14361_v28 }
 0x768   :  { %11555 = vmatprep.subr.mxu1 %v14226_v33  ;;  %11528 = vmatpush3.msra.mxu0 %v14245_v13 }
 0x769   :  { %11513 = vmatmul.mubr.f32.gmra.mxu0 %v14223_v52  ;;  %11543 = vmatmul.mubr.f32.gmra.mxu1 %v14223_v52  ;;  %v8309_v25 = vand.u32 4294901760, %v8308_v49 }
 0x76a   :  { %11529 = vmatprep.mubr.f32.mxu0 %v14263_v48  ;;  %11556 = vmatpush3.msra.mxu1 %v14226_v33 }
 0x76b   :  { %11559 = vmatprep.mubr.f32.mxu1 %v14240_v50  ;;  %11557 = vmatprep.subr.mxu1 %v14245_v13 }
 0x76c   :  { %11558 = vmatpush3.msra.mxu1 %v14245_v13  ;;  %11545 = vmatprep.subr.mxu0 %v14258_v62 }
 0x76d   :  { %11530 = vmatmul.mubr.f32.vlgmr.msra.gmra.mxu0 %v14268_v44  ;;  %11560 = vmatmul.mubr.f32.vlgmr.msra.gmra.mxu1 %v14218_v58 }
 0x76e   :  { %11532 = vmatprep.mubr.f32.mxu0 %v14285_v22  ;;  %11546 = vmatpush3.msra.mxu0 %v14258_v62 }
 0x76f   :  { %11562 = vmatprep.mubr.f32.mxu1 %v14266_v12  ;;  %11547 = vmatprep.subr.mxu0 %v14273_v5 }
 0x770   :  { %11575 = vmatprep.subr.mxu1 %v14226_v33  ;;  %11548 = vmatpush3.msra.mxu0 %v14273_v5 }
 0x771   :  { %11533 = vmatmul.mubr.f32.gmra.mxu0 %v14287_v11  ;;  %11563 = vmatmul.mubr.f32.gmra.mxu1 %v14255_v1 }
 0x772   :  { %11549 = vmatprep.mubr.f32.mxu0 %v14221_v46  ;;  %11576 = vmatpush3.msra.mxu1 %v14226_v33 }
 0x773   :  { %11579 = vmatprep.mubr.f32.mxu1 %v14214_v32  ;;  %11577 = vmatprep.subr.mxu1 %v14245_v13 }
 0x774   :  { %11578 = vmatpush3.msra.mxu1 %v14245_v13  ;;  %11565 = vmatprep.subr.mxu0 %v14279_v43 }
 0x775   :  { %11550 = vmatmul.mubr.f32.vlgmr.msra.gmra.mxu0 %v14212_v37  ;;  %11580 = vmatmul.mubr.f32.vlgmr.msra.gmra.mxu1 %v14205_v17 }
 0x776   :  { %11552 = vmatprep.mubr.f32.mxu0 %v14248_v4  ;;  %11566 = vmatpush3.msra.mxu0 %v14279_v43 }
 0x777   :  { %11582 = vmatprep.mubr.f32.mxu1 %v14236_v6  ;;  %11567 = vmatprep.subr.mxu0 %v14292_v55 }
 0x778   :  { %11595 = vmatprep.subr.mxu1 %v8302_v19  ;;  %11568 = vmatpush3.msra.mxu0 %v14292_v55 }
 0x779   :  { %11553 = vmatmul.mubr.f32.gmra.mxu0 %v14234_v60  ;;  %11583 = vmatmul.mubr.f32.gmra.mxu1 %v14223_v52 }
 0x77a   :  { %11569 = vmatprep.mubr.f32.mxu0 %v14214_v32  ;;  %11596 = vmatpush3.msra.mxu1 %v8302_v19 }
 0x77b   :  { %11599 = vmatprep.mubr.f32.mxu1 %v14214_v32  ;;  %11597 = vmatprep.subr.mxu1 %v8309_v25 }
 0x77c   :  { %11598 = vmatpush3.msra.mxu1 %v8309_v25  ;;  %11585 = vmatprep.subr.mxu0 %v14322_v40 }
 0x77d   :  { %11570 = vmatmul.mubr.f32.vlgmr.msra.gmra.mxu0 %v14205_v17  ;;  %11600 = vmatmul.mubr.f32.vlgmr.msra.gmra.mxu1 %v14205_v17 }
 0x77e   :  { %11572 = vmatprep.mubr.f32.mxu0 %v14236_v6  ;;  %11586 = vmatpush3.msra.mxu0 %v14322_v40 }
 0x77f   :  { %11602 = vmatprep.mubr.f32.mxu1 %v14236_v6  ;;  %11587 = vmatprep.subr.mxu0 %v14333_v31 }
 0x780   :  { %11615 = vmatprep.subr.mxu1 %v14322_v40  ;;  %11588 = vmatpush3.msra.mxu0 %v14333_v31 }
 0x781   :  { %11573 = vmatmul.mubr.f32.gmra.mxu0 %v14223_v52  ;;  %11603 = vmatmul.mubr.f32.gmra.mxu1 %v14223_v52 }
 0x782   :  { %11589 = vmatprep.mubr.f32.mxu0 %v14263_v48  ;;  %11616 = vmatpush3.msra.mxu1 %v14322_v40 }
 0x783   :  { %11619 = vmatprep.mubr.f32.mxu1 %v14240_v50  ;;  %11617 = vmatprep.subr.mxu1 %v14333_v31 }
 0x784   :  { %11618 = vmatpush3.msra.mxu1 %v14333_v31  ;;  %11605 = vmatprep.subr.mxu0 %v14338_v15 }
 0x785   :  { %11590 = vmatmul.mubr.f32.vlgmr.msra.gmra.mxu0 %v14268_v44  ;;  %11620 = vmatmul.mubr.f32.vlgmr.msra.gmra.mxu1 %v14218_v58 }
 0x786   :  { %11592 = vmatprep.mubr.f32.mxu0 %v14285_v22  ;;  %11606 = vmatpush3.msra.mxu0 %v14338_v15 }
 0x787   :  { %11622 = vmatprep.mubr.f32.mxu1 %v14266_v12  ;;  %11607 = vmatprep.subr.mxu0 %v14347_v36 }
 0x788   :  { %11635 = vmatprep.subr.mxu1 %v14322_v40  ;;  %11608 = vmatpush3.msra.mxu0 %v14347_v36 }
 0x789   :  { %11593 = vmatmul.mubr.f32.gmra.mxu0 %v14287_v11  ;;  %11623 = vmatmul.mubr.f32.gmra.mxu1 %v14255_v1 }
 0x78a   :  { %11609 = vmatprep.mubr.f32.mxu0 %v14221_v46  ;;  %11636 = vmatpush3.msra.mxu1 %v14322_v40 }
 0x78b   :  { %11639 = vmatprep.mubr.f32.mxu1 %v14214_v32  ;;  %11637 = vmatprep.subr.mxu1 %v14333_v31 }
 0x78c   :  { %11638 = vmatpush3.msra.mxu1 %v14333_v31  ;;  %11625 = vmatprep.subr.mxu0 %v14352_v10 }
 0x78d   :  { %11610 = vmatmul.mubr.f32.vlgmr.msra.gmra.mxu0 %v14212_v37  ;;  %11640 = vmatmul.mubr.f32.vlgmr.msra.gmra.mxu1 %v14205_v17 }
 0x78e   :  { %11612 = vmatprep.mubr.f32.mxu0 %v14248_v4  ;;  %11626 = vmatpush3.msra.mxu0 %v14352_v10 }
 0x78f   :  { %11642 = vmatprep.mubr.f32.mxu1 %v14236_v6  ;;  %11627 = vmatprep.subr.mxu0 %v14361_v28 }
 0x790   :  { %11628 = vmatpush3.msra.mxu0 %v14361_v28 }
 0x791   :  { %11613 = vmatmul.mubr.f32.gmra.mxu0 %v14234_v60  ;;  %11643 = vmatmul.mubr.f32.gmra.mxu1 %v14223_v52 }
 0x792   :  { %11629 = vmatprep.mubr.f32.mxu0 %v14214_v32  ;;  %11696 = vmatprep.mubr.f32.mxu1 %v14438_v27 }
 0x795   :  { %11630 = vmatmul.mubr.f32.vlgmr.msra.gmra.mxu0 %v14205_v17 }
 0x796   :  { %11632 = vmatprep.mubr.f32.mxu0 %v14236_v6 }
 0x799   :  { %11633 = vmatmul.mubr.f32.gmra.mxu0 %v14223_v52 }
 0x79a   :  { %11669 = vmatprep.mubr.f32.mxu0 %v8851_v53 }
 0x80d   :  { %v11481_v9 = vpop.f32.mrf.mxu1 }
 0x80f   :  { %v7166_v20 = vpop.f32.mrf.mxu1 }
 0x811   :  { %v11484_v34 = vpop.f32.mrf.mxu1 }
 0x813   :  { %v7178_v56 = vpop.f32.mrf.mxu1 }
 0x815   :  { %v11471_v7 = vpop.f32.mrf.mxu0  ;;  %v11501_v21 = vpop.f32.mrf.mxu1 }
 0x816   :  { %v7173_v8 = vadd.f32 %v11481_v9, %v11471_v7 }
 0x817   :  { %v7055_v17 = vpop.f32.mrf.mxu0  ;;  %v7356_v24 = vpop.f32.mrf.mxu1 }
 0x818   :  { %v7167_v26 = vadd.f32 %v7166_v20, %v7055_v17 }
 0x819   :  { %v11474_v2 = vpop.f32.mrf.mxu0  ;;  %v11504_v57 = vpop.f32.mrf.mxu1 }
 0x81a   :  { %v7185_v37 = vadd.f32 %v11484_v34, %v11474_v2 }
 0x81b   :  { %v7075_v32 = vpop.f32.mrf.mxu0  ;;  %v7372_v51 = vpop.f32.mrf.mxu1 }
 0x81c   :  { %v7179_v29 = vadd.f32 %v7178_v56, %v7075_v32 }
 0x81d   :  { %v11491_v58 = vpop.f32.mrf.mxu0  ;;  %v11521_v46 = vpop.f32.mrf.mxu1 }
 0x81e   :  { %v7268_v52 = vadd.f32 %v11491_v58, %v7173_v8 }
 0x81f   :  { %v7260_v33 = vpop.f32.mrf.mxu0  ;;  %v7548_v35 = vpop.f32.mrf.mxu1 }
 0x820   :  { %v7261_v42 = vadd.f32 %v7260_v33, %v7167_v26  ;;  %v7365_v60 = vadd.f32 %v11501_v21, %v7268_v52 }
 0x821   :  { %v11494_v6 = vpop.f32.mrf.mxu0  ;;  %v11524_v50 = vpop.f32.mrf.mxu1 }
 0x822   :  { %v7282_v18 = vadd.f32 %v11494_v6, %v7185_v37  ;;  %v7357_v13 = vadd.f32 %v7356_v24, %v7261_v42 }
 0x823   :  { %v7274_v4 = vpop.f32.mrf.mxu0  ;;  %v7560_v14 = vpop.f32.mrf.mxu1 }
 0x824   :  { %v7275_v1 = vadd.f32 %v7274_v4, %v7179_v29  ;;  %v7381_v62 = vadd.f32 %v11504_v57, %v7282_v18 }
 0x825   :  { %v11511_v48 = vpop.f32.mrf.mxu0  ;;  %v11541_v12 = vpop.f32.mrf.mxu1 }
 0x826   :  { %v7464_v44 = vadd.f32 %v11511_v48, %v7365_v60  ;;  %v7373_v63 = vadd.f32 %v7372_v51, %v7275_v1 }
 0x827   :  { %v7457_v5 = vpop.f32.mrf.mxu0  ;;  %v7756_v30 = vpop.f32.mrf.mxu1 }
 0x828   :  { %v14448_v43 = vadd.f32 %v11521_v46, %v7464_v44  ;;  %v7458_v22 = vadd.f32 %v7457_v5, %v7357_v13 }
 0x829   :  { %v11514_v11 = vpop.f32.mrf.mxu0  ;;  %v11544_v55 = vpop.f32.mrf.mxu1 }
 0x82a   :  { %v14450_v61 = vadd.f32 %v7548_v35, %v7458_v22  ;;  %v7476_v23 = vadd.f32 %v11514_v11, %v7381_v62 }
 0x82b   :  { %v7469_v41 = vpop.f32.mrf.mxu0  ;;  %v7768_v3 = vpop.f32.mrf.mxu1 }
 0x82c   :  { %v14452_v47 = vadd.f32 %v11524_v50, %v7476_v23  ;;  %v7470_v40 = vadd.f32 %v7469_v41, %v7373_v63 }
 0x82d   :  { %v11531_v16 = vpop.f32.mrf.mxu0  ;;  %v11561_v31 = vpop.f32.mrf.mxu1 }
 0x82e   :  { %v14454_v15 = vadd.f32 %v7560_v14, %v7470_v40  ;;  %v7763_v4 = vadd.f32 %v11541_v12, %v11531_v16 }
 0x82f   :  { %v7645_v36 = vpop.f32.mrf.mxu0  ;;  %v14456_v10 = vpop.f32.mrf.mxu1 }
 0x830   :  { %v7757_v63 = vadd.f32 %v7756_v30, %v7645_v36 }
 0x831   :  { %v11534_v28 = vpop.f32.mrf.mxu0  ;;  %v11564_v45 = vpop.f32.mrf.mxu1 }
 0x832   :  { %v7775_v52 = vadd.f32 %v11544_v55, %v11534_v28 }
 0x833   :  { %v7665_v49 = vpop.f32.mrf.mxu0  ;;  %v7962_v19 = vpop.f32.mrf.mxu1 }
 0x834   :  { %v7769_v50 = vadd.f32 %v7768_v3, %v7665_v49 }
 0x835   :  { %v11551_v25 = vpop.f32.mrf.mxu0  ;;  %v14458_v38 = vpop.f32.mrf.mxu1 }
 0x836   :  { %v7858_v5 = vadd.f32 %v11551_v25, %v7763_v4 }
 0x837   :  { %v7850_v59 = vpop.f32.mrf.mxu0  ;;  %v14460_v39 = vpop.f32.mrf.mxu1 }
 0x838   :  { %v7851_v40 = vadd.f32 %v7850_v59, %v7757_v63  ;;  %v7955_v16 = vadd.f32 %v11561_v31, %v7858_v5 }
 0x839   :  { %v11554_v53 = vpop.f32.mrf.mxu0  ;;  %v11584_v9 = vpop.f32.mrf.mxu1 }
 0x83a   :  { %v7872_v60 = vadd.f32 %v11554_v53, %v7775_v52 }
 0x83b   :  { %v7864_v20 = vpop.f32.mrf.mxu0  ;;  %v14462_v34 = vpop.f32.mrf.mxu1 }
 0x83c   :  { %v7865_v62 = vadd.f32 %v7864_v20, %v7769_v50  ;;  %v7971_v22 = vadd.f32 %v11564_v45, %v7872_v60  ;;  %v7947_v45 = vadd.f32 %v14456_v10, %v7851_v40  ;;  %v8751_v10 = vld [vmem:[%s14769_s16 + $0x8] sm:$0x7]  ;;  %s11814_s16 = smov 124  }
 0x83d   :  { %v11571_v56 = vpop.f32.mrf.mxu0  ;;  %v11601_v7 = vpop.f32.mrf.mxu1  ;;  %v8768_v60 = vsel %vm4764_vm4, %v8751_v10, 0 }
 0x83e   :  { %v7963_v3 = vadd.f32 %v7962_v19, %v7865_v62  ;;  %v8054_v36 = vadd.f32 %v11571_v56, %v7955_v16  ;;  %v14559_v16 = vand.u32 4294901760, %v14448_v43 }
 0x83f   :  { %v8047_v21 = vpop.f32.mrf.mxu0  ;;  %v8346_v8 = vpop.f32.mrf.mxu1 }
 0x841   :  { %v11574_v17 = vpop.f32.mrf.mxu0  ;;  %v11604_v24 = vpop.f32.mrf.mxu1 }
 0x842   :  { %v8066_v28 = vadd.f32 %v11574_v17, %v7971_v22 }
 0x843   :  { %v8059_v26 = vpop.f32.mrf.mxu0  ;;  %v8358_v2 = vpop.f32.mrf.mxu1 }
 0x844   :  { %v8060_v20 = vadd.f32 %v8059_v26, %v7963_v3  ;;  %v8157_v25 = vadd.f32 %v11584_v9, %v8066_v28  ;;  %v8145_v9 = vadd.f32 %v14458_v38, %v8054_v36 }
 0x845   :  { %v11591_v57 = vpop.f32.mrf.mxu0  ;;  %v11621_v37 = vpop.f32.mrf.mxu1 }
 0x846   :  { %v8353_v42 = vadd.f32 %v11601_v7, %v11591_v57  ;;  %v8151_v31 = vadd.f32 %v14462_v34, %v8060_v20 }
 0x847   :  { %v8235_v32 = vpop.f32.mrf.mxu0  ;;  %v8536_v51 = vpop.f32.mrf.mxu1 }
 0x848   :  { %v8347_v18 = vadd.f32 %v8346_v8, %v8235_v32 }
 0x849   :  { %v11594_v29 = vpop.f32.mrf.mxu0  ;;  %v11624_v58 = vpop.f32.mrf.mxu1 }
 0x84a   :  { %v8365_v48 = vadd.f32 %v11604_v24, %v11594_v29 }
 0x84b   :  { %v8255_v46 = vpop.f32.mrf.mxu0  ;;  %v8552_v33 = vpop.f32.mrf.mxu1 }
 0x84c   :  { %v8359_v23 = vadd.f32 %v8358_v2, %v8255_v46  ;;  %v8048_v46 = vadd.f32 %v8047_v21, %v7947_v45 }
 0x84d   :  { %v11611_v35 = vpop.f32.mrf.mxu0  ;;  %v11641_v14 = vpop.f32.mrf.mxu1 }
 0x84e   :  { %v8448_v13 = vadd.f32 %v11611_v35, %v8353_v42  ;;  %v8139_v34 = vadd.f32 %v14460_v39, %v8048_v46 }
 0x84f   :  { %v8440_v6 = vpop.f32.mrf.mxu0  ;;  %v8728_v53 = vpop.f32.mrf.mxu1 }
 0x850   :  { %v8441_v44 = vadd.f32 %v8440_v6, %v8347_v18  ;;  %v8545_v41 = vadd.f32 %v11621_v37, %v8448_v13  ;;  %v14483_v6 = vand.u32 4294901760, %v8151_v31  ;;  %v14494_v13 = vand.u32 4294901760, %v8145_v9 }
 0x851   :  { %v11614_v1 = vpop.f32.mrf.mxu0  ;;  %v11644_v2 = vpop.f32.mrf.mxu1  ;;  %v14510_v62 = vand.u32 4294901760, %v8139_v34 }
 0x852   :  { %v8462_v55 = vadd.f32 %v11614_v1, %v8365_v48  ;;  %v8537_v12 = vadd.f32 %v8536_v51, %v8441_v44  ;;  %v14513_v48 = vand.u32 4294901760, %v8768_v60  ;;  %v14516_v44 = vsub.f32 %v8151_v31, %v14483_v6 }
 0x853   :  { %v8454_v11 = vpop.f32.mrf.mxu0  ;;  %v8740_v56 = vpop.f32.mrf.mxu1  ;;  %v14550_v3 = vsub.f32 %v8139_v34, %v14510_v62 }
 0x854   :  { %v8455_v49 = vadd.f32 %v8454_v11, %v8359_v23  ;;  %v8561_v30 = vadd.f32 %v11624_v58, %v8462_v55  ;;  %v14474_v58 = vand.u32 4294901760, %v8157_v25  ;;  %v14528_v11 = vand.u32 4294901760, %v14452_v47 }
 0x855   :  { %v11631_v7 = vpop.f32.mrf.mxu0  ;;  %v14531_v23 = vsub.f32 %v8145_v9, %v14494_v13 }
 0x856   :  { %v8644_v8 = vadd.f32 %v11631_v7, %v8545_v41  ;;  %v8553_v19 = vadd.f32 %v8552_v33, %v8455_v49  ;;  %v14498_v39 = vsub.f32 %v8157_v25, %v14474_v58  ;;  %v14547_v7 = vsub.f32 %v8768_v60, %v14513_v48 }
 0x857   :  { %v8637_v57 = vpop.f32.mrf.mxu0 }
 0x858   :  { %v8735_v24 = vadd.f32 %v11641_v14, %v8644_v8  ;;  %v8638_v32 = vadd.f32 %v8637_v57, %v8537_v12  ;;  %v14540_v28 = vand.u32 4294901760, %v14498_v39  ;;  %v14556_v12 = vand.u32 4294901760, %v14516_v44 }
 0x859   :  { %v11634_v37 = vpop.f32.mrf.mxu0  ;;  %v14564_v57 = vsub.f32 %v14452_v47, %v14528_v11  ;;  %v8859_v36 = vand.u32 4294901760, %v14547_v7 }
 0x85a   :  { %v14465_v59 = vand.u32 4294901760, %v8735_v24  ;;  %v8729_v17 = vadd.f32 %v8728_v53, %v8638_v32  ;;  %v8656_v29 = vadd.f32 %v11634_v37, %v8561_v30  ;;  %v14543_v53 = vand.u32 4294901760, %v14454_v15 }
 0x85b   :  { %v8649_v52 = vpop.f32.mrf.mxu0  ;;  %v14570_v32 = vand.u32 4294901760, %v14531_v23  ;;  %v14573_v30 = vand.u32 4294901760, %v14450_v61  ;;  %v8914_v25 = vsub.f32 %v14516_v44, %v14556_v12  ;;  %v14590_v37 = vsub.f32 %v14448_v43, %v14559_v16 }
 0x85c   :  { %v14468_v51 = vand.u32 4294901760, %v8729_v17  ;;  %v8747_v26 = vadd.f32 %v11644_v2, %v8656_v29  ;;  %v8650_v35 = vadd.f32 %v8649_v52, %v8553_v19  ;;  %v14477_v42 = vsub.f32 %v8735_v24, %v14465_v59 }
 0x85d   :  { %v8907_v24 = vsub.f32 %v14498_v39, %v14540_v28  ;;  %v14579_v47 = vsub.f32 %v14454_v15, %v14543_v53  ;;  %v14585_v2 = vand.u32 4294901760, %v14550_v3  ;;  %v14596_v29 = vand.u32 4294901760, %v14564_v57 }
 0x85e   :  { %v14479_v21 = vand.u32 4294901760, %v8747_v26  ;;  %v8741_v33 = vadd.f32 %v8740_v56, %v8650_v35  ;;  %v14486_v50 = vsub.f32 %v8729_v17, %v14468_v51  ;;  %v14508_v1 = vand.u32 4294901760, %v14477_v42 }
 0x85f   :  { %v8908_v15 = vand.u32 4294901760, %v8907_v24  ;;  %v8921_v17 = vsub.f32 %v14531_v23, %v14570_v32  ;;  %v8860_v19 = vsub.f32 %v14547_v7, %v8859_v36  ;;  %v14604_v43 = vsub.f32 %v14450_v61, %v14573_v30 }
 0x860   :  { %v14489_v38 = vsub.f32 %v8747_v26, %v14479_v21  ;;  %v14491_v18 = vand.u32 4294901760, %v8741_v33  ;;  %11645 = vmatprep.subr.mxu0 %v14479_v21  ;;  %v14525_v22 = vand.u32 4294901760, %v14486_v50  ;;  %v8893_v40 = vsub.f32 %v14477_v42, %v14508_v1 }
 0x861   :  { %11646 = vmatpush3.msra.mxu0 %v14479_v21  ;;  %v8915_v46 = vand.u32 4294901760, %v8914_v25  ;;  %v8928_v52 = vsub.f32 %v14550_v3, %v14585_v2  ;;  %v14610_v31 = vand.u32 4294901760, %v14579_v47  ;;  %v8922_v26 = vand.u32 4294901760, %v8921_v17 }
 0x862   :  { %v14501_v4 = vsub.f32 %v8741_v33, %v14491_v18  ;;  %11647 = vmatprep.subr.mxu0 %v14491_v18  ;;  %v14505_v14 = vand.u32 4294901760, %v14489_v38  ;;  %v8900_v8 = vsub.f32 %v14486_v50, %v14525_v22  ;;  %v8894_v20 = vand.u32 4294901760, %v8893_v40 }
 0x863   :  { %11648 = vmatpush3.msra.mxu0 %v14491_v18  ;;  %v8935_v61 = vsub.f32 %v14564_v57, %v14596_v29  ;;  %v14617_v35 = vand.u32 4294901760, %v14590_v37  ;;  %v8929_v10 = vand.u32 4294901760, %v8928_v52  ;;  %v8861_v9 = vand.u32 4294901760, %v8860_v19 }
 0x864   :  { %11649 = vmatprep.subr.mxu0 %v14465_v59  ;;  %v8879_v63 = vsub.f32 %v14489_v38, %v14505_v14  ;;  %v14522_v5 = vand.u32 4294901760, %v14501_v4  ;;  %v8901_v45 = vand.u32 4294901760, %v8900_v8  ;;  %v8942_v56 = vsub.f32 %v14579_v47, %v14610_v31 }
 0x865   :  { %11650 = vmatpush3.msra.mxu0 %v14465_v59  ;;  %v14624_v33 = vand.u32 4294901760, %v14604_v43  ;;  %v8936_v34 = vand.u32 4294901760, %v8935_v61  ;;  %v8949_v60 = vsub.f32 %v14590_v37, %v14617_v35 }
 0x866   :  { %11651 = vmatprep.subr.mxu0 %v14468_v51  ;;  %v8880_v55 = vand.u32 4294901760, %v8879_v63  ;;  %v8886_v41 = vsub.f32 %v14501_v4, %v14522_v5  ;;  %v8943_v63 = vand.u32 4294901760, %v8942_v56 }
 0x867   :  { %11652 = vmatpush3.msra.mxu0 %v14468_v51 }
 0x868   :  { %11653 = vmatprep.subr.mxu0 %v14474_v58  ;;  %11672 = vmatprep.subr.mxu1 %v8880_v55  ;;  %v8887_v49 = vand.u32 4294901760, %v8886_v41  ;;  %v8950_v41 = vand.u32 4294901760, %v8949_v60 }
 0x869   :  { %11654 = vmatpush3.msra.mxu0 %v14474_v58  ;;  %11673 = vmatpush3.msra.mxu1 %v8880_v55  ;;  %v8956_v55 = vsub.f32 %v14604_v43, %v14624_v33 }
 0x86a   :  { %11655 = vmatprep.subr.mxu0 %v14483_v6  ;;  %11674 = vmatprep.subr.mxu1 %v8887_v49 }
 0x86b   :  { %11656 = vmatpush3.msra.mxu0 %v14483_v6  ;;  %11675 = vmatpush3.msra.mxu1 %v8887_v49  ;;  %v8957_v40 = vand.u32 4294901760, %v8956_v55 }
 0x86c   :  { %11657 = vmatprep.subr.mxu0 %v14494_v13  ;;  %11676 = vmatprep.subr.mxu1 %v8894_v20 }
 0x86d   :  { %11658 = vmatpush3.msra.mxu0 %v14494_v13  ;;  %11677 = vmatpush3.msra.mxu1 %v8894_v20 }
 0x86e   :  { %11659 = vmatprep.subr.mxu0 %v14510_v62  ;;  %11678 = vmatprep.subr.mxu1 %v8901_v45 }
 0x86f   :  { %11660 = vmatpush3.msra.mxu0 %v14510_v62  ;;  %11679 = vmatpush3.msra.mxu1 %v8901_v45 }
 0x870   :  { %11661 = vmatprep.subr.mxu0 %v14528_v11  ;;  %11680 = vmatprep.subr.mxu1 %v8908_v15 }
 0x871   :  { %11662 = vmatpush3.msra.mxu0 %v14528_v11  ;;  %11681 = vmatpush3.msra.mxu1 %v8908_v15 }
 0x872   :  { %11663 = vmatprep.subr.mxu0 %v14543_v53  ;;  %11682 = vmatprep.subr.mxu1 %v8915_v46 }
 0x873   :  { %11664 = vmatpush3.msra.mxu0 %v14543_v53  ;;  %11683 = vmatpush3.msra.mxu1 %v8915_v46 }
 0x874   :  { %11665 = vmatprep.subr.mxu0 %v14559_v16  ;;  %11684 = vmatprep.subr.mxu1 %v8922_v26 }
 0x875   :  { %11666 = vmatpush3.msra.mxu0 %v14559_v16  ;;  %11685 = vmatpush3.msra.mxu1 %v8922_v26 }
 0x876   :  { %11667 = vmatprep.subr.mxu0 %v14573_v30  ;;  %11686 = vmatprep.subr.mxu1 %v8929_v10 }
 0x877   :  { %11668 = vmatpush3.msra.mxu0 %v14573_v30  ;;  %11687 = vmatpush3.msra.mxu1 %v8929_v10 }
 0x878   :  { %11670 = vmatmul.mubr.f32.vlgmr.msra.gmra.mxu0 %v8861_v9  ;;  %11688 = vmatprep.subr.mxu1 %v8936_v34 }
 0x879   :  { %11699 = vmatprep.subr.mxu0 %v14489_v38  ;;  %11689 = vmatpush3.msra.mxu1 %v8936_v34 }
 0x87a   :  { %11700 = vmatpush3.msra.mxu0 %v14489_v38  ;;  %11690 = vmatprep.subr.mxu1 %v8943_v63 }
 0x87b   :  { %11701 = vmatprep.subr.mxu0 %v14501_v4  ;;  %11691 = vmatpush3.msra.mxu1 %v8943_v63 }
 0x87c   :  { %11702 = vmatpush3.msra.mxu0 %v14501_v4  ;;  %11692 = vmatprep.subr.mxu1 %v8950_v41 }
 0x87d   :  { %11703 = vmatprep.subr.mxu0 %v14477_v42  ;;  %11693 = vmatpush3.msra.mxu1 %v8950_v41 }
 0x87e   :  { %11704 = vmatpush3.msra.mxu0 %v14477_v42  ;;  %11694 = vmatprep.subr.mxu1 %v8957_v40  ;;  %v8757_v42 = vpop.permute.xlu1 %8756 }
 0x87f   :  { %11705 = vmatprep.subr.mxu0 %v14486_v50  ;;  %11695 = vmatpush3.msra.mxu1 %v8957_v40 }
 0x880   :  { %11706 = vmatpush3.msra.mxu0 %v14486_v50  ;;  %11697 = vmatmul.mubr.f32.vlgmr.msra.gmra.mxu1 %v14513_v48 }
 0x881   :  { %11707 = vmatprep.subr.mxu0 %v14498_v39  ;;  %11726 = vmatprep.subr.mxu1 %v14479_v21 }
 0x882   :  { %11708 = vmatpush3.msra.mxu0 %v14498_v39  ;;  %11727 = vmatpush3.msra.mxu1 %v14479_v21 }
 0x883   :  { %11709 = vmatprep.subr.mxu0 %v14516_v44  ;;  %11728 = vmatprep.subr.mxu1 %v14491_v18 }
 0x884   :  { %11710 = vmatpush3.msra.mxu0 %v14516_v44  ;;  %11729 = vmatpush3.msra.mxu1 %v14491_v18 }
 0x885   :  { %11711 = vmatprep.subr.mxu0 %v14531_v23  ;;  %11730 = vmatprep.subr.mxu1 %v14465_v59 }
 0x886   :  { %11712 = vmatpush3.msra.mxu0 %v14531_v23  ;;  %11731 = vmatpush3.msra.mxu1 %v14465_v59 }
 0x887   :  { %11713 = vmatprep.subr.mxu0 %v14550_v3  ;;  %11732 = vmatprep.subr.mxu1 %v14468_v51 }
 0x888   :  { %11714 = vmatpush3.msra.mxu0 %v14550_v3  ;;  %11733 = vmatpush3.msra.mxu1 %v14468_v51 }
 0x889   :  { %11715 = vmatprep.subr.mxu0 %v14564_v57  ;;  %11734 = vmatprep.subr.mxu1 %v14474_v58 }
 0x88a   :  { %11716 = vmatpush3.msra.mxu0 %v14564_v57  ;;  %11735 = vmatpush3.msra.mxu1 %v14474_v58 }
 0x88b   :  { %11717 = vmatprep.subr.mxu0 %v14579_v47  ;;  %11736 = vmatprep.subr.mxu1 %v14483_v6 }
 0x88c   :  { %11718 = vmatpush3.msra.mxu0 %v14579_v47  ;;  %11737 = vmatpush3.msra.mxu1 %v14483_v6 }
 0x88d   :  { %11719 = vmatprep.subr.mxu0 %v14590_v37  ;;  %11738 = vmatprep.subr.mxu1 %v14494_v13 }
 0x88e   :  { %11720 = vmatpush3.msra.mxu0 %v14590_v37  ;;  %11739 = vmatpush3.msra.mxu1 %v14494_v13 }
 0x88f   :  { %11721 = vmatprep.subr.mxu0 %v14604_v43  ;;  %11740 = vmatprep.subr.mxu1 %v14510_v62 }
 0x890   :  { %11722 = vmatpush3.msra.mxu0 %v14604_v43  ;;  %11723 = vmatprep.mubr.f32.mxu0 %v14441_v54 }
 0x891   :  { %11741 = vmatpush3.msra.mxu1 %v14510_v62  ;;  %11724 = vmatmul.mubr.f32.vlgmr.msra.gmra.mxu0 %v14547_v7 }
 0x892   :  { %11742 = vmatprep.subr.mxu1 %v14528_v11  ;;  %11753 = vmatprep.subr.mxu0 %v14505_v14 }
 0x893   :  { %11743 = vmatpush3.msra.mxu1 %v14528_v11  ;;  %11754 = vmatpush3.msra.mxu0 %v14505_v14 }
 0x894   :  { %11744 = vmatprep.subr.mxu1 %v14543_v53  ;;  %11755 = vmatprep.subr.mxu0 %v14522_v5 }
 0x895   :  { %11745 = vmatpush3.msra.mxu1 %v14543_v53  ;;  %11756 = vmatpush3.msra.mxu0 %v14522_v5 }
 0x896   :  { %11746 = vmatprep.subr.mxu1 %v14559_v16  ;;  %11757 = vmatprep.subr.mxu0 %v14508_v1 }
 0x897   :  { %11747 = vmatpush3.msra.mxu1 %v14559_v16  ;;  %11758 = vmatpush3.msra.mxu0 %v14508_v1 }
 0x898   :  { %11748 = vmatprep.subr.mxu1 %v14573_v30  ;;  %11759 = vmatprep.subr.mxu0 %v14525_v22 }
 0x899   :  { %11749 = vmatpush3.msra.mxu1 %v14573_v30  ;;  %11750 = vmatprep.mubr.f32.mxu1 %v8849_v0 }
 0x89a   :  { %11760 = vmatpush3.msra.mxu0 %v14525_v22  ;;  %11751 = vmatmul.mubr.f32.vlgmr.msra.gmra.mxu1 %v8859_v36 }
 0x89b   :  { %11761 = vmatprep.subr.mxu0 %v14540_v28  ;;  %11780 = vmatprep.subr.mxu1 %v14479_v21 }
 0x89c   :  { %11762 = vmatpush3.msra.mxu0 %v14540_v28  ;;  %11781 = vmatpush3.msra.mxu1 %v14479_v21 }
 0x89d   :  { %11763 = vmatprep.subr.mxu0 %v14556_v12  ;;  %11782 = vmatprep.subr.mxu1 %v14491_v18 }
 0x89e   :  { %11764 = vmatpush3.msra.mxu0 %v14556_v12  ;;  %11783 = vmatpush3.msra.mxu1 %v14491_v18 }
 0x89f   :  { %11765 = vmatprep.subr.mxu0 %v14570_v32  ;;  %11784 = vmatprep.subr.mxu1 %v14465_v59 }
 0x8a0   :  { %11766 = vmatpush3.msra.mxu0 %v14570_v32  ;;  %11785 = vmatpush3.msra.mxu1 %v14465_v59 }
 0x8a1   :  { %11767 = vmatprep.subr.mxu0 %v14585_v2  ;;  %11786 = vmatprep.subr.mxu1 %v14468_v51 }
 0x8a2   :  { %11768 = vmatpush3.msra.mxu0 %v14585_v2  ;;  %11787 = vmatpush3.msra.mxu1 %v14468_v51  ;;  %v8762_v51 = vpop.permute.xlu0 %8761 }
 0x8a3   :  { %11769 = vmatprep.subr.mxu0 %v14596_v29  ;;  %11788 = vmatprep.subr.mxu1 %v14474_v58 }
 0x8a4   :  { %11770 = vmatpush3.msra.mxu0 %v14596_v29  ;;  %11789 = vmatpush3.msra.mxu1 %v14474_v58 }
 0x8a5   :  { %11771 = vmatprep.subr.mxu0 %v14610_v31  ;;  %11790 = vmatprep.subr.mxu1 %v14483_v6 }
 0x8a6   :  { %11772 = vmatpush3.msra.mxu0 %v14610_v31  ;;  %11791 = vmatpush3.msra.mxu1 %v14483_v6 }
 0x8a7   :  { %11773 = vmatprep.subr.mxu0 %v14617_v35  ;;  %11792 = vmatprep.subr.mxu1 %v14494_v13 }
 0x8a8   :  { %11774 = vmatpush3.msra.mxu0 %v14617_v35  ;;  %11793 = vmatpush3.msra.mxu1 %v14494_v13 }
 0x8a9   :  { %11775 = vmatprep.subr.mxu0 %v14624_v33  ;;  %11794 = vmatprep.subr.mxu1 %v14510_v62 }
 0x8aa   :  { %11776 = vmatpush3.msra.mxu0 %v14624_v33  ;;  %11777 = vmatprep.mubr.f32.mxu0 %v14438_v27 }
 0x8ab   :  { %11795 = vmatpush3.msra.mxu1 %v14510_v62  ;;  %11778 = vmatmul.mubr.f32.vlgmr.msra.gmra.mxu0 %v14513_v48 }
 0x8ac   :  { %11796 = vmatprep.subr.mxu1 %v14528_v11  ;;  %11804 = vmatprep.mubr.f32.mxu1 %v14438_v27 }
 0x8ad   :  { %11797 = vmatpush3.msra.mxu1 %v14528_v11 }
 0x8ae   :  { %11798 = vmatprep.subr.mxu1 %v14543_v53 }
 0x8af   :  { %11799 = vmatpush3.msra.mxu1 %v14543_v53 }
 0x8b0   :  { %11800 = vmatprep.subr.mxu1 %v14559_v16 }
 0x8b1   :  { %11801 = vmatpush3.msra.mxu1 %v14559_v16 }
 0x8b2   :  { %11802 = vmatprep.subr.mxu1 %v14573_v30 }
 0x8b3   :  { %11803 = vmatpush3.msra.mxu1 %v14573_v30 }
 0x8b4   :  { %11805 = vmatmul.mubr.f32.vlgmr.msra.gmra.mxu1 %v14513_v48 }
 0x938   :  { %v11671_v54 = vpop.f32.mrf.mxu0 }
 0x939   :  { %v8864_v21 = vadd.f32 %v11671_v54, %v8762_v51 }
 0x93a   :  { %v8853_v0 = vpop.f32.mrf.mxu0 }
 0x93b   :  { %v8854_v38 = vadd.f32 %v8853_v0, %v8757_v42 }
 0x940   :  { %v11698_v59 = vpop.f32.mrf.mxu1 }
 0x941   :  { %v9001_v18 = vadd.f32 %v11698_v59, %v8864_v21 }
 0x942   :  { %v8994_v58 = vpop.f32.mrf.mxu1 }
 0x943   :  { %v8995_v39 = vadd.f32 %v8994_v58, %v8854_v38 }
 0x951   :  { %v11725_v27 = vpop.f32.mrf.mxu0 }
 0x952   :  { %v9104_v4 = vadd.f32 %v11725_v27, %v9001_v18 }
 0x953   :  { %v9096_v6 = vpop.f32.mrf.mxu0 }
 0x954   :  { %v9097_v1 = vadd.f32 %v9096_v6, %v8995_v39 }
 0x95a   :  { %v11752_v50 = vpop.f32.mrf.mxu1 }
 0x95b   :  { %v9197_v62 = vadd.f32 %v11752_v50, %v9104_v4 }
 0x95c   :  { %v9188_v14 = vpop.f32.mrf.mxu1 }
 0x95d   :  { %v9189_v48 = vadd.f32 %v9188_v14, %v9097_v1 }
 0x96b   :  { %v11779_v13 = vpop.f32.mrf.mxu0 }
 0x96c   :  { %v9310_v5 = vadd.f32 %v11779_v13, %v9197_v62 }
 0x96d   :  { %v9303_v44 = vpop.f32.mrf.mxu0 }
 0x96e   :  { %v9304_v11 = vadd.f32 %v9303_v44, %v9189_v48 }
 0x974   :  { %v11806_v22 = vpop.f32.mrf.mxu1 }
 0x975   :  { %v9399_v23 = vadd.f32 %v11806_v22, %v9310_v5 }
 0x976   :  { %v9392_v28 = vpop.f32.mrf.mxu1 }
 0x977   :  { %v9393_v53 = vadd.f32 %v9392_v28, %v9304_v11  ;;  %9410 = vrot.lane.b32.xlu0 %v9399_v23, %s11814_s16  ;;  %9405 = vst.msk [vmem:[%s14770_s18 + $0x8] sm:$0x7] %vm9404_vm6, %v9399_v23 }
 0x979   :  { %9408 = vrot.lane.b32.xlu1 %v9393_v53, %s11814_s16  ;;  %9403 = vst.msk [vmem:[%s14770_s18] sm:$0xff] %vm9402_vm7, %v9393_v53 }
 0x9e9   :  { %v9411_v7 = vpop.permute.xlu0 %9410 }
 0x9ea   :  { %9424 = vst.msk [vmem:[%s14770_s18 + $0x18] sm:$0x7] %vm9404_vm6, %v9411_v7 }
 0x9eb   :  { %v9409_v3 = vpop.permute.xlu1 %9408 }
 0x9ec   :  { %9423 = vst.msk [vmem:[%s14770_s18 + $0x10] sm:$0xff] %vm9402_vm7, %v9409_v3 }

</bundles_post_ra>
